<compile_context>
chip_gen: v5e
topology: v5e:2x2
jax: 0.10.0
libtpu: 0.0.40
codegen_flags: <defaults>
</compile_context>

<pallas_src>
import functools
import math

import jax
import jax.numpy as jnp
import numpy as np
from jax import lax
from jax.experimental import pallas as pl
from jax.experimental.pallas import tpu as pltpu


def _round_up(x, m):
    return (x + m - 1) // m * m


# ----------------------------------------------------------------------------
# Kernel: single invocation (no grid), full sequence, all layers + head.
# ----------------------------------------------------------------------------
def _lstm_reg_kernel(*refs, seq_len, batch_p, hidden_p, num_layers):
    it = iter(refs)
    x_ref = next(it)                       # (S*Bp, I)
    wih0_ref = next(it)                    # (I, 4Hp)
    whh0_ref = next(it)                    # (Hp, 4Hp)
    b0_ref = next(it)                      # (1, 4Hp)
    if num_layers > 1:
        wih_r_ref = next(it)               # (L-1, Hp, 4Hp)
        whh_r_ref = next(it)               # (L-1, Hp, 4Hp)
        b_r_ref = next(it)                 # (L-1, 1, 4Hp)
    else:
        wih_r_ref = whh_r_ref = b_r_ref = None
    w1_ref = next(it)                      # (Hp, Hp)
    b1_ref = next(it)                      # (1, Hp)
    w2_ref = next(it)                      # (Hp, Op)
    b2_ref = next(it)                      # (1, Op)
    y_ref = next(it)                       # (S*Bp, Op)   lane-dense output slab
    h_seq = next(it)                       # VMEM (S*Bp, Hp)   hidden seq of current layer
    gx_sc = next(it)                       # VMEM (S*Bp, 4Hp)  batched input projections

    S, Bp, Hp = seq_len, batch_p, hidden_p
    unroll = True if S <= 16 else 4

    def run_layer(load_whh):
        """Serial time recurrence; gates_x already resident in gx_sc.
        (h, c) are loop carries (1 vreg each at Bp=8, Hp=128): no VMEM round-trips."""

        def step(t, carry):
            h, c = carry
            r0 = pl.multiple_of(t * Bp, Bp)            # 8-sublane-aligned row offset
            w = load_whh()
            gates = gx_sc[pl.ds(r0, Bp), :] + jnp.dot(
                h.astype(w.dtype), w, preferred_element_type=jnp.float32)
            # PyTorch gate order [i | f | g | o]; slices are 128-lane aligned (Hp%128==0).
            i = jax.nn.sigmoid(gates[:, 0 * Hp:1 * Hp])
            f = jax.nn.sigmoid(gates[:, 1 * Hp:2 * Hp])
            g = jnp.tanh(gates[:, 2 * Hp:3 * Hp])
            o = jax.nn.sigmoid(gates[:, 3 * Hp:4 * Hp])
            c_new = f * c + i * g
            h_new = o * jnp.tanh(c_new)
            h_seq[pl.ds(r0, Bp), :] = h_new.astype(h_seq.dtype)
            return h_new, c_new

        h0 = jnp.zeros((Bp, Hp), jnp.float32)
        c0 = jnp.zeros((Bp, Hp), jnp.float32)
        lax.fori_loop(0, S, step, (h0, c0), unroll=unroll)

    # ---- layer 0: batched input projection over all (t, b) rows --------------
    gx_sc[...] = (jnp.dot(x_ref[...].astype(wih0_ref.dtype), wih0_ref[...],
                          preferred_element_type=jnp.float32)
                  + b0_ref[...]).astype(gx_sc.dtype)
    run_layer(lambda: whh0_ref[...])

    # ---- layers 1 .. L-1 (static unrolled; each gets one batched projection) -
    for l in range(1, num_layers):
        gx_sc[...] = (jnp.dot(h_seq[...], wih_r_ref[l - 1],
                              preferred_element_type=jnp.float32)
                      + b_r_ref[l - 1]).astype(gx_sc.dtype)
        run_layer(lambda l=l: whh_r_ref[l - 1])

    # ---- regression head over all rows; single unmasked 2-D store ------------
    z = jnp.tanh(jnp.dot(h_seq[...], w1_ref[...],
                         preferred_element_type=jnp.float32) + b1_ref[...])
    y = jnp.dot(z.astype(w2_ref.dtype), w2_ref[...],
                preferred_element_type=jnp.float32) + b2_ref[...]
    y_ref[...] = y.astype(y_ref.dtype)


# ----------------------------------------------------------------------------
# Parameter packing: transpose to `act @ W` layout, zero-pad H -> Hp and O -> Op.
# Zero padding keeps the forward pass mathematically exact (padded hidden
# channels stay identically 0, padded head columns are discarded).
# ----------------------------------------------------------------------------
def _pack_params(raw_params, *, hidden, hidden_p, num_layers, out_dim, out_p,
                 dtype=jnp.float32):
    (w_ih0, w_hh0, b0, w_ih_r, w_hh_r, b_r, w1, b1, w2, b2) = raw_params
    H, Hp, O, Op, L = hidden, hidden_p, out_dim, out_p, num_layers
    dH = Hp - H

    def pad_gate_cols(w_t):                 # (in, 4H) -> (in, 4Hp), gate-blockwise
        in_dim = w_t.shape[0]
        w4 = w_t.reshape(in_dim, 4, H)
        w4 = jnp.pad(w4, ((0, 0), (0, 0), (0, dH)))
        return w4.reshape(in_dim, 4 * Hp)

    def pad_w_hidden_in(w):                 # (4H, H) -> (Hp, 4Hp)
        w_t = jnp.pad(w.T, ((0, dH), (0, 0)))
        return pad_gate_cols(w_t)

    def pad_bias(b):                        # (4H,) -> (1, 4Hp)
        b4 = jnp.pad(b.reshape(4, H), ((0, 0), (0, dH)))
        return b4.reshape(1, 4 * Hp)

    params = [
        pad_gate_cols(w_ih0.T),             # (I, 4Hp)
        pad_w_hidden_in(w_hh0),             # (Hp, 4Hp)
        pad_bias(b0),                       # (1, 4Hp)
    ]
    if L > 1:
        params += [
            jnp.stack([pad_w_hidden_in(w) for w in w_ih_r]),   # (L-1, Hp, 4Hp)
            jnp.stack([pad_w_hidden_in(w) for w in w_hh_r]),   # (L-1, Hp, 4Hp)
            jnp.stack([pad_bias(b) for b in b_r]),             # (L-1, 1, 4Hp)
        ]
    params += [
        jnp.pad(w1.T, ((0, dH), (0, dH))),                     # (Hp, Hp)
        jnp.pad(b1.reshape(1, H), ((0, 0), (0, dH))),          # (1, Hp)
        jnp.pad(w2.T, ((0, dH), (0, Op - O))),                 # (Hp, Op)  lane-dense head
        jnp.pad(b2.reshape(1, O), ((0, 0), (0, Op - O))),      # (1, Op)
    ]
    return [p.astype(dtype) for p in params]


# ----------------------------------------------------------------------------
# Wrapper: pad batch, pre-flatten x, pack params, single pallas_call (no grid).
# ----------------------------------------------------------------------------
def user_trace_est_forward(x, raw_params, *, inp_dim, out_dim, mid_dim, mid_layers,
                           param_dtype=jnp.float32):
    S, B, I = x.shape
    assert I == inp_dim
    H, O, L = mid_dim, out_dim, mid_layers
    Bp = _round_up(B, 8)          # 8-sublane alignment for per-timestep row blocks
    Hp = _round_up(H, 128)        # 128-lane alignment for gate slices
    Op = _round_up(O, 128)        # lane-dense output (no masked partial stores)

    kparams = _pack_params(raw_params, hidden=H, hidden_p=Hp, num_layers=L,
                           out_dim=O, out_p=Op, dtype=param_dtype)

    if Bp != B:                   # zero-pad batch (padded rows are discarded)
        x = jnp.pad(x, ((0, 0), (0, Bp - B), (0, 0)))
    x_flat = x.reshape(S * Bp, I).astype(jnp.float32)   # pre-flatten outside kernel

    kernel = functools.partial(_lstm_reg_kernel, seq_len=S, batch_p=Bp,
                               hidden_p=Hp, num_layers=L)
    vmem_spec = pl.BlockSpec(memory_space=pltpu.MemorySpace.VMEM)

    # ---- VMEM budget: io + scratch + one big-dot temp, clamped to chip capacity.
    store_itemsize = jnp.dtype(param_dtype).itemsize
    io_bytes = (x_flat.size * 4 + S * Bp * Op * 4
                + sum(p.size * p.dtype.itemsize for p in kparams))
    scratch_bytes = (S * Bp * Hp + S * Bp * 4 * Hp) * store_itemsize
    headroom = max(4 << 20, S * Bp * 4 * Hp * 4)   # temp for the batched-projection dot
    try:
        vmem_cap = int(pltpu.get_tpu_info().vmem_capacity_bytes)
    except Exception:
        vmem_cap = 64 << 20                         # conservative (v7x per-TC)
    vmem_limit = int(min(max(io_bytes + scratch_bytes + headroom, 16 << 20), vmem_cap))

    y_pad = pl.pallas_call(
        kernel,
        out_shape=jax.ShapeDtypeStruct((S * Bp, Op), jnp.float32),
        in_specs=[vmem_spec] * (1 + len(kparams)),
        out_specs=vmem_spec,
        scratch_shapes=[
            pltpu.VMEM((S * Bp, Hp), param_dtype),       # hidden sequence of current layer
            pltpu.VMEM((S * Bp, 4 * Hp), param_dtype),   # batched input projections
        ],
        compiler_params=pltpu.CompilerParams(vmem_limit_bytes=vmem_limit),
    )(x_flat, *kparams)

    # Wrapper-side slice/reshape back to (S, B, O) — free XLA plumbing.
    return y_pad[:, :O].reshape(S, Bp, O)[:, :B, :]


# ----------------------------------------------------------------------------
# Deterministic raw parameters (PyTorch nn.LSTM / nn.Linear shapes).
# ----------------------------------------------------------------------------
def make_params(key, inp_dim, out_dim, mid_dim, mid_layers):
    H, I, O, L = mid_dim, inp_dim, out_dim, mid_layers
    k = 1.0 / math.sqrt(H)

    def uni(key, shape):
        return jax.random.uniform(key, shape, jnp.float32, minval=-k, maxval=k)

    keys = iter(jax.random.split(key, 4 * L + 4))

    w_ih0 = uni(next(keys), (4 * H, I))
    w_hh0 = uni(next(keys), (4 * H, H))
    b0 = uni(next(keys), (4 * H,)) + uni(next(keys), (4 * H,))   # b_ih + b_hh

    w_ih_r, w_hh_r, b_r = [], [], []
    for _ in range(1, L):
        w_ih_r.append(uni(next(keys), (4 * H, H)))
        w_hh_r.append(uni(next(keys), (4 * H, H)))
        b_r.append(uni(next(keys), (4 * H,)) + uni(next(keys), (4 * H,)))

    w1 = uni(next(keys), (H, H))
    b1 = uni(next(keys), (H,))
    w2 = uni(next(keys), (O, H))
    b2 = uni(next(keys), (O,))

    return (w_ih0, w_hh0, b0, w_ih_r, w_hh_r, b_r, w1, b1, w2, b2)


# ----------------------------------------------------------------------------
# Pure-JAX reference (uses raw, unpadded params) for validation.
# ----------------------------------------------------------------------------
def reference_forward(x, raw_params, *, mid_dim, mid_layers):
    (w_ih0, w_hh0, b0, w_ih_r, w_hh_r, b_r, w1, b1, w2, b2) = raw_params
    S, B, _ = x.shape
    H, L = mid_dim, mid_layers
    hs = [jnp.zeros((B, H), jnp.float32) for _ in range(L)]
    cs = [jnp.zeros((B, H), jnp.float32) for _ in range(L)]
    outs = []
    for t in range(S):
        inp = x[t]
        for l in range(L):
            w_ih = w_ih0 if l == 0 else w_ih_r[l - 1]
            w_hh = w_hh0 if l == 0 else w_hh_r[l - 1]
            b = b0 if l == 0 else b_r[l - 1]
            gates = inp @ w_ih.T + hs[l] @ w_hh.T + b
            i = jax.nn.sigmoid(gates[:, 0 * H:1 * H])
            f = jax.nn.sigmoid(gates[:, 1 * H:2 * H])
            g = jnp.tanh(gates[:, 2 * H:3 * H])
            o = jax.nn.sigmoid(gates[:, 3 * H:4 * H])
            cs[l] = f * cs[l] + i * g
            hs[l] = o * jnp.tanh(cs[l])
            inp = hs[l]
        z = jnp.tanh(inp @ w1.T + b1)
        outs.append(z @ w2.T + b2)
    return jnp.stack(outs)


if __name__ == "__main__":
    # x is (seq_len, batch, inp_dim), matching nn.LSTM's default batch_first=False.
    SEQ, BATCH = 8, 2
    INP_DIM, OUT_DIM, MID_DIM, MID_LAYERS = 8, 4, 32, 2

    key = jax.random.PRNGKey(0)
    kx, kp = jax.random.split(key)
    x = jax.random.normal(kx, (SEQ, BATCH, INP_DIM), jnp.float32)
    raw_params = make_params(kp, INP_DIM, OUT_DIM, MID_DIM, MID_LAYERS)

    y = user_trace_est_forward(x, raw_params, inp_dim=INP_DIM, out_dim=OUT_DIM,
                               mid_dim=MID_DIM, mid_layers=MID_LAYERS)
    y = jax.block_until_ready(y)

    y_ref = reference_forward(x, raw_params, mid_dim=MID_DIM, mid_layers=MID_LAYERS)
    np.testing.assert_allclose(np.asarray(y), np.asarray(y_ref),
                               rtol=2e-3, atol=2e-3)

    assert y.shape == (SEQ, BATCH, OUT_DIM)
    print("KERNEL_OK")
</pallas_src>

<mosaic_0001>
module attributes {stable_mosaic.version = 11 : i64} {
  func.func @_lstm_reg_kernel(%arg0: memref<64x8xf32, #tpu.memory_space<vmem>>, %arg1: memref<8x512xf32, #tpu.memory_space<vmem>>, %arg2: memref<128x512xf32, #tpu.memory_space<vmem>>, %arg3: memref<1x512xf32, #tpu.memory_space<vmem>>, %arg4: memref<1x128x512xf32, #tpu.memory_space<vmem>>, %arg5: memref<1x128x512xf32, #tpu.memory_space<vmem>>, %arg6: memref<1x1x512xf32, #tpu.memory_space<vmem>>, %arg7: memref<128x128xf32, #tpu.memory_space<vmem>>, %arg8: memref<1x128xf32, #tpu.memory_space<vmem>>, %arg9: memref<128x128xf32, #tpu.memory_space<vmem>>, %arg10: memref<1x128xf32, #tpu.memory_space<vmem>>, %arg11: memref<64x128xf32, #tpu.memory_space<vmem>>, %arg12: memref<64x128xf32, #tpu.memory_space<vmem>>, %arg13: memref<64x512xf32, #tpu.memory_space<vmem>>) attributes {dimension_semantics = [], scalar_prefetch = 0 : i64, scratch_operands = 2 : i64, tpu.core_type = #tpu.core_type<tc>} {
    %c0 = arith.constant 0 : index
    %c0_0 = arith.constant 0 : index
    %0 = vector.load %arg0[%c0, %c0_0] : memref<64x8xf32, #tpu.memory_space<vmem>>, vector<64x8xf32>
    %c0_1 = arith.constant 0 : index
    %c0_2 = arith.constant 0 : index
    %1 = vector.load %arg1[%c0_1, %c0_2] : memref<8x512xf32, #tpu.memory_space<vmem>>, vector<8x512xf32>
    %cst = arith.constant dense<0.000000e+00> : vector<64x512xf32>
    %2 = tpu.matmul %0, %1, %cst {dimension_numbers = #tpu.dot_dimension_numbers<[1], [0], [0], [1], [0, 0, 1, 1], [], []>} : vector<64x8xf32>, vector<8x512xf32>, vector<64x512xf32> -> vector<64x512xf32>
    %c0_3 = arith.constant 0 : index
    %c0_4 = arith.constant 0 : index
    %3 = vector.load %arg3[%c0_3, %c0_4] : memref<1x512xf32, #tpu.memory_space<vmem>>, vector<1x512xf32>
    %4 = vector.broadcast %3 : vector<1x512xf32> to vector<64x512xf32>
    %5 = arith.addf %2, %4 : vector<64x512xf32>
    %c0_5 = arith.constant 0 : index
    %c0_6 = arith.constant 0 : index
    %6 = vector.load %arg13[%c0_5, %c0_6] : memref<64x512xf32, #tpu.memory_space<vmem>>, vector<64x512xf32>
    tpu.vector_store %arg13[%c0_5, %c0_6], %5 {strides = array<i32>} : memref<64x512xf32, #tpu.memory_space<vmem>>, vector<64x512xf32>,
    %cst_7 = arith.constant 0.000000e+00 : f32
    %7 = vector.broadcast %cst_7 : f32 to vector<8x128xf32>
    %cst_8 = arith.constant 0.000000e+00 : f32
    %8 = vector.broadcast %cst_8 : f32 to vector<8x128xf32>
    %c0_i32 = arith.constant 0 : i32
    %c8_i32 = arith.constant 8 : i32
    %9 = arith.muli %c0_i32, %c8_i32 : i32
    %10 = tpu.assume_multiple %9, 8 : i32
    %c0_9 = arith.constant 0 : index
    %c0_10 = arith.constant 0 : index
    %11 = vector.load %arg2[%c0_9, %c0_10] : memref<128x512xf32, #tpu.memory_space<vmem>>, vector<128x512xf32>
    %12 = arith.index_cast %10 : i32 to index
    %c0_11 = arith.constant 0 : index
    %13 = vector.load %arg13[%12, %c0_11] : memref<64x512xf32, #tpu.memory_space<vmem>>, vector<8x512xf32>
    %cst_12 = arith.constant dense<0.000000e+00> : vector<8x512xf32>
    %14 = tpu.matmul %7, %11, %cst_12 {dimension_numbers = #tpu.dot_dimension_numbers<[1], [0], [0], [1], [0, 0, 1, 1], [], []>} : vector<8x128xf32>, vector<128x512xf32>, vector<8x512xf32> -> vector<8x512xf32>
    %15 = arith.addf %13, %14 : vector<8x512xf32>
    %16 = vector.extract_strided_slice %15 {offsets = [0, 0], sizes = [8, 128], strides = [1, 1]} : vector<8x512xf32> to vector<8x128xf32>
    %17 = arith.negf %16 : vector<8x128xf32>
    %18 = math.exp %17 : vector<8x128xf32>
    %cst_13 = arith.constant 1.000000e+00 : f32
    %19 = vector.broadcast %cst_13 : f32 to vector<8x128xf32>
    %20 = arith.addf %19, %18 : vector<8x128xf32>
    %21 = arith.divf %19, %20 : vector<8x128xf32>
    %22 = vector.extract_strided_slice %15 {offsets = [0, 128], sizes = [8, 128], strides = [1, 1]} : vector<8x512xf32> to vector<8x128xf32>
    %23 = arith.negf %22 : vector<8x128xf32>
    %24 = math.exp %23 : vector<8x128xf32>
    %cst_14 = arith.constant 1.000000e+00 : f32
    %25 = vector.broadcast %cst_14 : f32 to vector<8x128xf32>
    %26 = arith.addf %25, %24 : vector<8x128xf32>
    %27 = arith.divf %25, %26 : vector<8x128xf32>
    %28 = vector.extract_strided_slice %15 {offsets = [0, 256], sizes = [8, 128], strides = [1, 1]} : vector<8x512xf32> to vector<8x128xf32>
    %29 = math.tanh %28 : vector<8x128xf32>
    %30 = vector.extract_strided_slice %15 {offsets = [0, 384], sizes = [8, 128], strides = [1, 1]} : vector<8x512xf32> to vector<8x128xf32>
    %31 = arith.negf %30 : vector<8x128xf32>
    %32 = math.exp %31 : vector<8x128xf32>
    %cst_15 = arith.constant 1.000000e+00 : f32
    %33 = vector.broadcast %cst_15 : f32 to vector<8x128xf32>
    %34 = arith.addf %33, %32 : vector<8x128xf32>
    %35 = arith.divf %33, %34 : vector<8x128xf32>
    %36 = arith.mulf %27, %8 : vector<8x128xf32>
    %37 = arith.mulf %21, %29 : vector<8x128xf32>
    %38 = arith.addf %36, %37 : vector<8x128xf32>
    %39 = math.tanh %38 : vector<8x128xf32>
    %40 = arith.mulf %35, %39 : vector<8x128xf32>
    %41 = arith.index_cast %10 : i32 to index
    %c0_16 = arith.constant 0 : index
    %42 = vector.load %arg12[%41, %c0_16] : memref<64x128xf32, #tpu.memory_space<vmem>>, vector<8x128xf32>
    tpu.vector_store %arg12[%41, %c0_16], %40 {strides = array<i32>} : memref<64x128xf32, #tpu.memory_space<vmem>>, vector<8x128xf32>,
    %c1_i32 = arith.constant 1 : i32
    %c8_i32_17 = arith.constant 8 : i32
    %43 = arith.muli %c1_i32, %c8_i32_17 : i32
    %44 = tpu.assume_multiple %43, 8 : i32
    %c0_18 = arith.constant 0 : index
    %c0_19 = arith.constant 0 : index
    %45 = vector.load %arg2[%c0_18, %c0_19] : memref<128x512xf32, #tpu.memory_space<vmem>>, vector<128x512xf32>
    %46 = arith.index_cast %44 : i32 to index
    %c0_20 = arith.constant 0 : index
    %47 = vector.load %arg13[%46, %c0_20] : memref<64x512xf32, #tpu.memory_space<vmem>>, vector<8x512xf32>
    %cst_21 = arith.constant dense<0.000000e+00> : vector<8x512xf32>
    %48 = tpu.matmul %40, %45, %cst_21 {dimension_numbers = #tpu.dot_dimension_numbers<[1], [0], [0], [1], [0, 0, 1, 1], [], []>} : vector<8x128xf32>, vector<128x512xf32>, vector<8x512xf32> -> vector<8x512xf32>
    %49 = arith.addf %47, %48 : vector<8x512xf32>
    %50 = vector.extract_strided_slice %49 {offsets = [0, 0], sizes = [8, 128], strides = [1, 1]} : vector<8x512xf32> to vector<8x128xf32>
    %51 = arith.negf %50 : vector<8x128xf32>
    %52 = math.exp %51 : vector<8x128xf32>
    %cst_22 = arith.constant 1.000000e+00 : f32
    %53 = vector.broadcast %cst_22 : f32 to vector<8x128xf32>
    %54 = arith.addf %53, %52 : vector<8x128xf32>
    %55 = arith.divf %53, %54 : vector<8x128xf32>
    %56 = vector.extract_strided_slice %49 {offsets = [0, 128], sizes = [8, 128], strides = [1, 1]} : vector<8x512xf32> to vector<8x128xf32>
    %57 = arith.negf %56 : vector<8x128xf32>
    %58 = math.exp %57 : vector<8x128xf32>
    %cst_23 = arith.constant 1.000000e+00 : f32
    %59 = vector.broadcast %cst_23 : f32 to vector<8x128xf32>
    %60 = arith.addf %59, %58 : vector<8x128xf32>
    %61 = arith.divf %59, %60 : vector<8x128xf32>
    %62 = vector.extract_strided_slice %49 {offsets = [0, 256], sizes = [8, 128], strides = [1, 1]} : vector<8x512xf32> to vector<8x128xf32>
    %63 = math.tanh %62 : vector<8x128xf32>
    %64 = vector.extract_strided_slice %49 {offsets = [0, 384], sizes = [8, 128], strides = [1, 1]} : vector<8x512xf32> to vector<8x128xf32>
    %65 = arith.negf %64 : vector<8x128xf32>
    %66 = math.exp %65 : vector<8x128xf32>
    %cst_24 = arith.constant 1.000000e+00 : f32
    %67 = vector.broadcast %cst_24 : f32 to vector<8x128xf32>
    %68 = arith.addf %67, %66 : vector<8x128xf32>
    %69 = arith.divf %67, %68 : vector<8x128xf32>
    %70 = arith.mulf %61, %38 : vector<8x128xf32>
    %71 = arith.mulf %55, %63 : vector<8x128xf32>
    %72 = arith.addf %70, %71 : vector<8x128xf32>
    %73 = math.tanh %72 : vector<8x128xf32>
    %74 = arith.mulf %69, %73 : vector<8x128xf32>
    %75 = arith.index_cast %44 : i32 to index
    %c0_25 = arith.constant 0 : index
    %76 = vector.load %arg12[%75, %c0_25] : memref<64x128xf32, #tpu.memory_space<vmem>>, vector<8x128xf32>
    tpu.vector_store %arg12[%75, %c0_25], %74 {strides = array<i32>} : memref<64x128xf32, #tpu.memory_space<vmem>>, vector<8x128xf32>,
    %c2_i32 = arith.constant 2 : i32
    %c8_i32_26 = arith.constant 8 : i32
    %77 = arith.muli %c2_i32, %c8_i32_26 : i32
    %78 = tpu.assume_multiple %77, 8 : i32
    %c0_27 = arith.constant 0 : index
    %c0_28 = arith.constant 0 : index
    %79 = vector.load %arg2[%c0_27, %c0_28] : memref<128x512xf32, #tpu.memory_space<vmem>>, vector<128x512xf32>
    %80 = arith.index_cast %78 : i32 to index
    %c0_29 = arith.constant 0 : index
    %81 = vector.load %arg13[%80, %c0_29] : memref<64x512xf32, #tpu.memory_space<vmem>>, vector<8x512xf32>
    %cst_30 = arith.constant dense<0.000000e+00> : vector<8x512xf32>
    %82 = tpu.matmul %74, %79, %cst_30 {dimension_numbers = #tpu.dot_dimension_numbers<[1], [0], [0], [1], [0, 0, 1, 1], [], []>} : vector<8x128xf32>, vector<128x512xf32>, vector<8x512xf32> -> vector<8x512xf32>
    %83 = arith.addf %81, %82 : vector<8x512xf32>
    %84 = vector.extract_strided_slice %83 {offsets = [0, 0], sizes = [8, 128], strides = [1, 1]} : vector<8x512xf32> to vector<8x128xf32>
    %85 = arith.negf %84 : vector<8x128xf32>
    %86 = math.exp %85 : vector<8x128xf32>
    %cst_31 = arith.constant 1.000000e+00 : f32
    %87 = vector.broadcast %cst_31 : f32 to vector<8x128xf32>
    %88 = arith.addf %87, %86 : vector<8x128xf32>
    %89 = arith.divf %87, %88 : vector<8x128xf32>
    %90 = vector.extract_strided_slice %83 {offsets = [0, 128], sizes = [8, 128], strides = [1, 1]} : vector<8x512xf32> to vector<8x128xf32>
    %91 = arith.negf %90 : vector<8x128xf32>
    %92 = math.exp %91 : vector<8x128xf32>
    %cst_32 = arith.constant 1.000000e+00 : f32
    %93 = vector.broadcast %cst_32 : f32 to vector<8x128xf32>
    %94 = arith.addf %93, %92 : vector<8x128xf32>
    %95 = arith.divf %93, %94 : vector<8x128xf32>
    %96 = vector.extract_strided_slice %83 {offsets = [0, 256], sizes = [8, 128], strides = [1, 1]} : vector<8x512xf32> to vector<8x128xf32>
    %97 = math.tanh %96 : vector<8x128xf32>
    %98 = vector.extract_strided_slice %83 {offsets = [0, 384], sizes = [8, 128], strides = [1, 1]} : vector<8x512xf32> to vector<8x128xf32>
    %99 = arith.negf %98 : vector<8x128xf32>
    %100 = math.exp %99 : vector<8x128xf32>
    %cst_33 = arith.constant 1.000000e+00 : f32
    %101 = vector.broadcast %cst_33 : f32 to vector<8x128xf32>
    %102 = arith.addf %101, %100 : vector<8x128xf32>
    %103 = arith.divf %101, %102 : vector<8x128xf32>
    %104 = arith.mulf %95, %72 : vector<8x128xf32>
    %105 = arith.mulf %89, %97 : vector<8x128xf32>
    %106 = arith.addf %104, %105 : vector<8x128xf32>
    %107 = math.tanh %106 : vector<8x128xf32>
    %108 = arith.mulf %103, %107 : vector<8x128xf32>
    %109 = arith.index_cast %78 : i32 to index
    %c0_34 = arith.constant 0 : index
    %110 = vector.load %arg12[%109, %c0_34] : memref<64x128xf32, #tpu.memory_space<vmem>>, vector<8x128xf32>
    tpu.vector_store %arg12[%109, %c0_34], %108 {strides = array<i32>} : memref<64x128xf32, #tpu.memory_space<vmem>>, vector<8x128xf32>,
    %c3_i32 = arith.constant 3 : i32
    %c8_i32_35 = arith.constant 8 : i32
    %111 = arith.muli %c3_i32, %c8_i32_35 : i32
    %112 = tpu.assume_multiple %111, 8 : i32
    %c0_36 = arith.constant 0 : index
    %c0_37 = arith.constant 0 : index
    %113 = vector.load %arg2[%c0_36, %c0_37] : memref<128x512xf32, #tpu.memory_space<vmem>>, vector<128x512xf32>
    %114 = arith.index_cast %112 : i32 to index
    %c0_38 = arith.constant 0 : index
    %115 = vector.load %arg13[%114, %c0_38] : memref<64x512xf32, #tpu.memory_space<vmem>>, vector<8x512xf32>
    %cst_39 = arith.constant dense<0.000000e+00> : vector<8x512xf32>
    %116 = tpu.matmul %108, %113, %cst_39 {dimension_numbers = #tpu.dot_dimension_numbers<[1], [0], [0], [1], [0, 0, 1, 1], [], []>} : vector<8x128xf32>, vector<128x512xf32>, vector<8x512xf32> -> vector<8x512xf32>
    %117 = arith.addf %115, %116 : vector<8x512xf32>
    %118 = vector.extract_strided_slice %117 {offsets = [0, 0], sizes = [8, 128], strides = [1, 1]} : vector<8x512xf32> to vector<8x128xf32>
    %119 = arith.negf %118 : vector<8x128xf32>
    %120 = math.exp %119 : vector<8x128xf32>
    %cst_40 = arith.constant 1.000000e+00 : f32
    %121 = vector.broadcast %cst_40 : f32 to vector<8x128xf32>
    %122 = arith.addf %121, %120 : vector<8x128xf32>
    %123 = arith.divf %121, %122 : vector<8x128xf32>
    %124 = vector.extract_strided_slice %117 {offsets = [0, 128], sizes = [8, 128], strides = [1, 1]} : vector<8x512xf32> to vector<8x128xf32>
    %125 = arith.negf %124 : vector<8x128xf32>
    %126 = math.exp %125 : vector<8x128xf32>
    %cst_41 = arith.constant 1.000000e+00 : f32
    %127 = vector.broadcast %cst_41 : f32 to vector<8x128xf32>
    %128 = arith.addf %127, %126 : vector<8x128xf32>
    %129 = arith.divf %127, %128 : vector<8x128xf32>
    %130 = vector.extract_strided_slice %117 {offsets = [0, 256], sizes = [8, 128], strides = [1, 1]} : vector<8x512xf32> to vector<8x128xf32>
    %131 = math.tanh %130 : vector<8x128xf32>
    %132 = vector.extract_strided_slice %117 {offsets = [0, 384], sizes = [8, 128], strides = [1, 1]} : vector<8x512xf32> to vector<8x128xf32>
    %133 = arith.negf %132 : vector<8x128xf32>
    %134 = math.exp %133 : vector<8x128xf32>
    %cst_42 = arith.constant 1.000000e+00 : f32
    %135 = vector.broadcast %cst_42 : f32 to vector<8x128xf32>
    %136 = arith.addf %135, %134 : vector<8x128xf32>
    %137 = arith.divf %135, %136 : vector<8x128xf32>
    %138 = arith.mulf %129, %106 : vector<8x128xf32>
    %139 = arith.mulf %123, %131 : vector<8x128xf32>
    %140 = arith.addf %138, %139 : vector<8x128xf32>
    %141 = math.tanh %140 : vector<8x128xf32>
    %142 = arith.mulf %137, %141 : vector<8x128xf32>
    %143 = arith.index_cast %112 : i32 to index
    %c0_43 = arith.constant 0 : index
    %144 = vector.load %arg12[%143, %c0_43] : memref<64x128xf32, #tpu.memory_space<vmem>>, vector<8x128xf32>
    tpu.vector_store %arg12[%143, %c0_43], %142 {strides = array<i32>} : memref<64x128xf32, #tpu.memory_space<vmem>>, vector<8x128xf32>,
    %c4_i32 = arith.constant 4 : i32
    %c8_i32_44 = arith.constant 8 : i32
    %145 = arith.muli %c4_i32, %c8_i32_44 : i32
    %146 = tpu.assume_multiple %145, 8 : i32
    %c0_45 = arith.constant 0 : index
    %c0_46 = arith.constant 0 : index
    %147 = vector.load %arg2[%c0_45, %c0_46] : memref<128x512xf32, #tpu.memory_space<vmem>>, vector<128x512xf32>
    %148 = arith.index_cast %146 : i32 to index
    %c0_47 = arith.constant 0 : index
    %149 = vector.load %arg13[%148, %c0_47] : memref<64x512xf32, #tpu.memory_space<vmem>>, vector<8x512xf32>
    %cst_48 = arith.constant dense<0.000000e+00> : vector<8x512xf32>
    %150 = tpu.matmul %142, %147, %cst_48 {dimension_numbers = #tpu.dot_dimension_numbers<[1], [0], [0], [1], [0, 0, 1, 1], [], []>} : vector<8x128xf32>, vector<128x512xf32>, vector<8x512xf32> -> vector<8x512xf32>
    %151 = arith.addf %149, %150 : vector<8x512xf32>
    %152 = vector.extract_strided_slice %151 {offsets = [0, 0], sizes = [8, 128], strides = [1, 1]} : vector<8x512xf32> to vector<8x128xf32>
    %153 = arith.negf %152 : vector<8x128xf32>
    %154 = math.exp %153 : vector<8x128xf32>
    %cst_49 = arith.constant 1.000000e+00 : f32
    %155 = vector.broadcast %cst_49 : f32 to vector<8x128xf32>
    %156 = arith.addf %155, %154 : vector<8x128xf32>
    %157 = arith.divf %155, %156 : vector<8x128xf32>
    %158 = vector.extract_strided_slice %151 {offsets = [0, 128], sizes = [8, 128], strides = [1, 1]} : vector<8x512xf32> to vector<8x128xf32>
    %159 = arith.negf %158 : vector<8x128xf32>
    %160 = math.exp %159 : vector<8x128xf32>
    %cst_50 = arith.constant 1.000000e+00 : f32
    %161 = vector.broadcast %cst_50 : f32 to vector<8x128xf32>
    %162 = arith.addf %161, %160 : vector<8x128xf32>
    %163 = arith.divf %161, %162 : vector<8x128xf32>
    %164 = vector.extract_strided_slice %151 {offsets = [0, 256], sizes = [8, 128], strides = [1, 1]} : vector<8x512xf32> to vector<8x128xf32>
    %165 = math.tanh %164 : vector<8x128xf32>
    %166 = vector.extract_strided_slice %151 {offsets = [0, 384], sizes = [8, 128], strides = [1, 1]} : vector<8x512xf32> to vector<8x128xf32>
    %167 = arith.negf %166 : vector<8x128xf32>
    %168 = math.exp %167 : vector<8x128xf32>
    %cst_51 = arith.constant 1.000000e+00 : f32
    %169 = vector.broadcast %cst_51 : f32 to vector<8x128xf32>
    %170 = arith.addf %169, %168 : vector<8x128xf32>
    %171 = arith.divf %169, %170 : vector<8x128xf32>
    %172 = arith.mulf %163, %140 : vector<8x128xf32>
    %173 = arith.mulf %157, %165 : vector<8x128xf32>
    %174 = arith.addf %172, %173 : vector<8x128xf32>
    %175 = math.tanh %174 : vector<8x128xf32>
    %176 = arith.mulf %171, %175 : vector<8x128xf32>
    %177 = arith.index_cast %146 : i32 to index
    %c0_52 = arith.constant 0 : index
    %178 = vector.load %arg12[%177, %c0_52] : memref<64x128xf32, #tpu.memory_space<vmem>>, vector<8x128xf32>
    tpu.vector_store %arg12[%177, %c0_52], %176 {strides = array<i32>} : memref<64x128xf32, #tpu.memory_space<vmem>>, vector<8x128xf32>,
    %c5_i32 = arith.constant 5 : i32
    %c8_i32_53 = arith.constant 8 : i32
    %179 = arith.muli %c5_i32, %c8_i32_53 : i32
    %180 = tpu.assume_multiple %179, 8 : i32
    %c0_54 = arith.constant 0 : index
    %c0_55 = arith.constant 0 : index
    %181 = vector.load %arg2[%c0_54, %c0_55] : memref<128x512xf32, #tpu.memory_space<vmem>>, vector<128x512xf32>
    %182 = arith.index_cast %180 : i32 to index
    %c0_56 = arith.constant 0 : index
    %183 = vector.load %arg13[%182, %c0_56] : memref<64x512xf32, #tpu.memory_space<vmem>>, vector<8x512xf32>
    %cst_57 = arith.constant dense<0.000000e+00> : vector<8x512xf32>
    %184 = tpu.matmul %176, %181, %cst_57 {dimension_numbers = #tpu.dot_dimension_numbers<[1], [0], [0], [1], [0, 0, 1, 1], [], []>} : vector<8x128xf32>, vector<128x512xf32>, vector<8x512xf32> -> vector<8x512xf32>
    %185 = arith.addf %183, %184 : vector<8x512xf32>
    %186 = vector.extract_strided_slice %185 {offsets = [0, 0], sizes = [8, 128], strides = [1, 1]} : vector<8x512xf32> to vector<8x128xf32>
    %187 = arith.negf %186 : vector<8x128xf32>
    %188 = math.exp %187 : vector<8x128xf32>
    %cst_58 = arith.constant 1.000000e+00 : f32
    %189 = vector.broadcast %cst_58 : f32 to vector<8x128xf32>
    %190 = arith.addf %189, %188 : vector<8x128xf32>
    %191 = arith.divf %189, %190 : vector<8x128xf32>
    %192 = vector.extract_strided_slice %185 {offsets = [0, 128], sizes = [8, 128], strides = [1, 1]} : vector<8x512xf32> to vector<8x128xf32>
    %193 = arith.negf %192 : vector<8x128xf32>
    %194 = math.exp %193 : vector<8x128xf32>
    %cst_59 = arith.constant 1.000000e+00 : f32
    %195 = vector.broadcast %cst_59 : f32 to vector<8x128xf32>
    %196 = arith.addf %195, %194 : vector<8x128xf32>
    %197 = arith.divf %195, %196 : vector<8x128xf32>
    %198 = vector.extract_strided_slice %185 {offsets = [0, 256], sizes = [8, 128], strides = [1, 1]} : vector<8x512xf32> to vector<8x128xf32>
    %199 = math.tanh %198 : vector<8x128xf32>
    %200 = vector.extract_strided_slice %185 {offsets = [0, 384], sizes = [8, 128], strides = [1, 1]} : vector<8x512xf32> to vector<8x128xf32>
    %201 = arith.negf %200 : vector<8x128xf32>
    %202 = math.exp %201 : vector<8x128xf32>
    %cst_60 = arith.constant 1.000000e+00 : f32
    %203 = vector.broadcast %cst_60 : f32 to vector<8x128xf32>
    %204 = arith.addf %203, %202 : vector<8x128xf32>
    %205 = arith.divf %203, %204 : vector<8x128xf32>
    %206 = arith.mulf %197, %174 : vector<8x128xf32>
    %207 = arith.mulf %191, %199 : vector<8x128xf32>
    %208 = arith.addf %206, %207 : vector<8x128xf32>
    %209 = math.tanh %208 : vector<8x128xf32>
    %210 = arith.mulf %205, %209 : vector<8x128xf32>
    %211 = arith.index_cast %180 : i32 to index
    %c0_61 = arith.constant 0 : index
    %212 = vector.load %arg12[%211, %c0_61] : memref<64x128xf32, #tpu.memory_space<vmem>>, vector<8x128xf32>
    tpu.vector_store %arg12[%211, %c0_61], %210 {strides = array<i32>} : memref<64x128xf32, #tpu.memory_space<vmem>>, vector<8x128xf32>,
    %c6_i32 = arith.constant 6 : i32
    %c8_i32_62 = arith.constant 8 : i32
    %213 = arith.muli %c6_i32, %c8_i32_62 : i32
    %214 = tpu.assume_multiple %213, 8 : i32
    %c0_63 = arith.constant 0 : index
    %c0_64 = arith.constant 0 : index
    %215 = vector.load %arg2[%c0_63, %c0_64] : memref<128x512xf32, #tpu.memory_space<vmem>>, vector<128x512xf32>
    %216 = arith.index_cast %214 : i32 to index
    %c0_65 = arith.constant 0 : index
    %217 = vector.load %arg13[%216, %c0_65] : memref<64x512xf32, #tpu.memory_space<vmem>>, vector<8x512xf32>
    %cst_66 = arith.constant dense<0.000000e+00> : vector<8x512xf32>
    %218 = tpu.matmul %210, %215, %cst_66 {dimension_numbers = #tpu.dot_dimension_numbers<[1], [0], [0], [1], [0, 0, 1, 1], [], []>} : vector<8x128xf32>, vector<128x512xf32>, vector<8x512xf32> -> vector<8x512xf32>
    %219 = arith.addf %217, %218 : vector<8x512xf32>
    %220 = vector.extract_strided_slice %219 {offsets = [0, 0], sizes = [8, 128], strides = [1, 1]} : vector<8x512xf32> to vector<8x128xf32>
    %221 = arith.negf %220 : vector<8x128xf32>
    %222 = math.exp %221 : vector<8x128xf32>
    %cst_67 = arith.constant 1.000000e+00 : f32
    %223 = vector.broadcast %cst_67 : f32 to vector<8x128xf32>
    %224 = arith.addf %223, %222 : vector<8x128xf32>
    %225 = arith.divf %223, %224 : vector<8x128xf32>
    %226 = vector.extract_strided_slice %219 {offsets = [0, 128], sizes = [8, 128], strides = [1, 1]} : vector<8x512xf32> to vector<8x128xf32>
    %227 = arith.negf %226 : vector<8x128xf32>
    %228 = math.exp %227 : vector<8x128xf32>
    %cst_68 = arith.constant 1.000000e+00 : f32
    %229 = vector.broadcast %cst_68 : f32 to vector<8x128xf32>
    %230 = arith.addf %229, %228 : vector<8x128xf32>
    %231 = arith.divf %229, %230 : vector<8x128xf32>
    %232 = vector.extract_strided_slice %219 {offsets = [0, 256], sizes = [8, 128], strides = [1, 1]} : vector<8x512xf32> to vector<8x128xf32>
    %233 = math.tanh %232 : vector<8x128xf32>
    %234 = vector.extract_strided_slice %219 {offsets = [0, 384], sizes = [8, 128], strides = [1, 1]} : vector<8x512xf32> to vector<8x128xf32>
    %235 = arith.negf %234 : vector<8x128xf32>
    %236 = math.exp %235 : vector<8x128xf32>
    %cst_69 = arith.constant 1.000000e+00 : f32
    %237 = vector.broadcast %cst_69 : f32 to vector<8x128xf32>
    %238 = arith.addf %237, %236 : vector<8x128xf32>
    %239 = arith.divf %237, %238 : vector<8x128xf32>
    %240 = arith.mulf %231, %208 : vector<8x128xf32>
    %241 = arith.mulf %225, %233 : vector<8x128xf32>
    %242 = arith.addf %240, %241 : vector<8x128xf32>
    %243 = math.tanh %242 : vector<8x128xf32>
    %244 = arith.mulf %239, %243 : vector<8x128xf32>
    %245 = arith.index_cast %214 : i32 to index
    %c0_70 = arith.constant 0 : index
    %246 = vector.load %arg12[%245, %c0_70] : memref<64x128xf32, #tpu.memory_space<vmem>>, vector<8x128xf32>
    tpu.vector_store %arg12[%245, %c0_70], %244 {strides = array<i32>} : memref<64x128xf32, #tpu.memory_space<vmem>>, vector<8x128xf32>,
    %c7_i32 = arith.constant 7 : i32
    %c8_i32_71 = arith.constant 8 : i32
    %247 = arith.muli %c7_i32, %c8_i32_71 : i32
    %248 = tpu.assume_multiple %247, 8 : i32
    %c0_72 = arith.constant 0 : index
    %c0_73 = arith.constant 0 : index
    %249 = vector.load %arg2[%c0_72, %c0_73] : memref<128x512xf32, #tpu.memory_space<vmem>>, vector<128x512xf32>
    %250 = arith.index_cast %248 : i32 to index
    %c0_74 = arith.constant 0 : index
    %251 = vector.load %arg13[%250, %c0_74] : memref<64x512xf32, #tpu.memory_space<vmem>>, vector<8x512xf32>
    %cst_75 = arith.constant dense<0.000000e+00> : vector<8x512xf32>
    %252 = tpu.matmul %244, %249, %cst_75 {dimension_numbers = #tpu.dot_dimension_numbers<[1], [0], [0], [1], [0, 0, 1, 1], [], []>} : vector<8x128xf32>, vector<128x512xf32>, vector<8x512xf32> -> vector<8x512xf32>
    %253 = arith.addf %251, %252 : vector<8x512xf32>
    %254 = vector.extract_strided_slice %253 {offsets = [0, 0], sizes = [8, 128], strides = [1, 1]} : vector<8x512xf32> to vector<8x128xf32>
    %255 = arith.negf %254 : vector<8x128xf32>
    %256 = math.exp %255 : vector<8x128xf32>
    %cst_76 = arith.constant 1.000000e+00 : f32
    %257 = vector.broadcast %cst_76 : f32 to vector<8x128xf32>
    %258 = arith.addf %257, %256 : vector<8x128xf32>
    %259 = arith.divf %257, %258 : vector<8x128xf32>
    %260 = vector.extract_strided_slice %253 {offsets = [0, 128], sizes = [8, 128], strides = [1, 1]} : vector<8x512xf32> to vector<8x128xf32>
    %261 = arith.negf %260 : vector<8x128xf32>
    %262 = math.exp %261 : vector<8x128xf32>
    %cst_77 = arith.constant 1.000000e+00 : f32
    %263 = vector.broadcast %cst_77 : f32 to vector<8x128xf32>
    %264 = arith.addf %263, %262 : vector<8x128xf32>
    %265 = arith.divf %263, %264 : vector<8x128xf32>
    %266 = vector.extract_strided_slice %253 {offsets = [0, 256], sizes = [8, 128], strides = [1, 1]} : vector<8x512xf32> to vector<8x128xf32>
    %267 = math.tanh %266 : vector<8x128xf32>
    %268 = vector.extract_strided_slice %253 {offsets = [0, 384], sizes = [8, 128], strides = [1, 1]} : vector<8x512xf32> to vector<8x128xf32>
    %269 = arith.negf %268 : vector<8x128xf32>
    %270 = math.exp %269 : vector<8x128xf32>
    %cst_78 = arith.constant 1.000000e+00 : f32
    %271 = vector.broadcast %cst_78 : f32 to vector<8x128xf32>
    %272 = arith.addf %271, %270 : vector<8x128xf32>
    %273 = arith.divf %271, %272 : vector<8x128xf32>
    %274 = arith.mulf %265, %242 : vector<8x128xf32>
    %275 = arith.mulf %259, %267 : vector<8x128xf32>
    %276 = arith.addf %274, %275 : vector<8x128xf32>
    %277 = math.tanh %276 : vector<8x128xf32>
    %278 = arith.mulf %273, %277 : vector<8x128xf32>
    %279 = arith.index_cast %248 : i32 to index
    %c0_79 = arith.constant 0 : index
    %280 = vector.load %arg12[%279, %c0_79] : memref<64x128xf32, #tpu.memory_space<vmem>>, vector<8x128xf32>
    tpu.vector_store %arg12[%279, %c0_79], %278 {strides = array<i32>} : memref<64x128xf32, #tpu.memory_space<vmem>>, vector<8x128xf32>,
    %c8_i32_80 = arith.constant 8 : i32
    %c0_81 = arith.constant 0 : index
    %c0_82 = arith.constant 0 : index
    %281 = vector.load %arg12[%c0_81, %c0_82] : memref<64x128xf32, #tpu.memory_space<vmem>>, vector<64x128xf32>
    %c0_83 = arith.constant 0 : index
    %c0_84 = arith.constant 0 : index
    %c0_85 = arith.constant 0 : index
    %282 = vector.load %arg4[%c0_83, %c0_84, %c0_85] : memref<1x128x512xf32, #tpu.memory_space<vmem>>, vector<1x128x512xf32>
    %283 = vector.shape_cast %282 : vector<1x128x512xf32> to vector<128x512xf32>
    %cst_86 = arith.constant dense<0.000000e+00> : vector<64x512xf32>
    %284 = tpu.matmul %281, %283, %cst_86 {dimension_numbers = #tpu.dot_dimension_numbers<[1], [0], [0], [1], [0, 0, 1, 1], [], []>} : vector<64x128xf32>, vector<128x512xf32>, vector<64x512xf32> -> vector<64x512xf32>
    %c0_87 = arith.constant 0 : index
    %c0_88 = arith.constant 0 : index
    %c0_89 = arith.constant 0 : index
    %285 = vector.load %arg6[%c0_87, %c0_88, %c0_89] : memref<1x1x512xf32, #tpu.memory_space<vmem>>, vector<1x1x512xf32>
    %286 = vector.shape_cast %285 : vector<1x1x512xf32> to vector<1x512xf32>
    %287 = vector.broadcast %286 : vector<1x512xf32> to vector<64x512xf32>
    %288 = arith.addf %284, %287 : vector<64x512xf32>
    %c0_90 = arith.constant 0 : index
    %c0_91 = arith.constant 0 : index
    %289 = vector.load %arg13[%c0_90, %c0_91] : memref<64x512xf32, #tpu.memory_space<vmem>>, vector<64x512xf32>
    tpu.vector_store %arg13[%c0_90, %c0_91], %288 {strides = array<i32>} : memref<64x512xf32, #tpu.memory_space<vmem>>, vector<64x512xf32>,
    %cst_92 = arith.constant 0.000000e+00 : f32
    %290 = vector.broadcast %cst_92 : f32 to vector<8x128xf32>
    %cst_93 = arith.constant 0.000000e+00 : f32
    %291 = vector.broadcast %cst_93 : f32 to vector<8x128xf32>
    %c0_i32_94 = arith.constant 0 : i32
    %c8_i32_95 = arith.constant 8 : i32
    %292 = arith.muli %c0_i32_94, %c8_i32_95 : i32
    %293 = tpu.assume_multiple %292, 8 : i32
    %c0_96 = arith.constant 0 : index
    %c0_97 = arith.constant 0 : index
    %c0_98 = arith.constant 0 : index
    %294 = vector.load %arg5[%c0_96, %c0_97, %c0_98] : memref<1x128x512xf32, #tpu.memory_space<vmem>>, vector<1x128x512xf32>
    %295 = vector.shape_cast %294 : vector<1x128x512xf32> to vector<128x512xf32>
    %296 = arith.index_cast %293 : i32 to index
    %c0_99 = arith.constant 0 : index
    %297 = vector.load %arg13[%296, %c0_99] : memref<64x512xf32, #tpu.memory_space<vmem>>, vector<8x512xf32>
    %cst_100 = arith.constant dense<0.000000e+00> : vector<8x512xf32>
    %298 = tpu.matmul %290, %295, %cst_100 {dimension_numbers = #tpu.dot_dimension_numbers<[1], [0], [0], [1], [0, 0, 1, 1], [], []>} : vector<8x128xf32>, vector<128x512xf32>, vector<8x512xf32> -> vector<8x512xf32>
    %299 = arith.addf %297, %298 : vector<8x512xf32>
    %300 = vector.extract_strided_slice %299 {offsets = [0, 0], sizes = [8, 128], strides = [1, 1]} : vector<8x512xf32> to vector<8x128xf32>
    %301 = arith.negf %300 : vector<8x128xf32>
    %302 = math.exp %301 : vector<8x128xf32>
    %cst_101 = arith.constant 1.000000e+00 : f32
    %303 = vector.broadcast %cst_101 : f32 to vector<8x128xf32>
    %304 = arith.addf %303, %302 : vector<8x128xf32>
    %305 = arith.divf %303, %304 : vector<8x128xf32>
    %306 = vector.extract_strided_slice %299 {offsets = [0, 128], sizes = [8, 128], strides = [1, 1]} : vector<8x512xf32> to vector<8x128xf32>
    %307 = arith.negf %306 : vector<8x128xf32>
    %308 = math.exp %307 : vector<8x128xf32>
    %cst_102 = arith.constant 1.000000e+00 : f32
    %309 = vector.broadcast %cst_102 : f32 to vector<8x128xf32>
    %310 = arith.addf %309, %308 : vector<8x128xf32>
    %311 = arith.divf %309, %310 : vector<8x128xf32>
    %312 = vector.extract_strided_slice %299 {offsets = [0, 256], sizes = [8, 128], strides = [1, 1]} : vector<8x512xf32> to vector<8x128xf32>
    %313 = math.tanh %312 : vector<8x128xf32>
    %314 = vector.extract_strided_slice %299 {offsets = [0, 384], sizes = [8, 128], strides = [1, 1]} : vector<8x512xf32> to vector<8x128xf32>
    %315 = arith.negf %314 : vector<8x128xf32>
    %316 = math.exp %315 : vector<8x128xf32>
    %cst_103 = arith.constant 1.000000e+00 : f32
    %317 = vector.broadcast %cst_103 : f32 to vector<8x128xf32>
    %318 = arith.addf %317, %316 : vector<8x128xf32>
    %319 = arith.divf %317, %318 : vector<8x128xf32>
    %320 = arith.mulf %311, %291 : vector<8x128xf32>
    %321 = arith.mulf %305, %313 : vector<8x128xf32>
    %322 = arith.addf %320, %321 : vector<8x128xf32>
    %323 = math.tanh %322 : vector<8x128xf32>
    %324 = arith.mulf %319, %323 : vector<8x128xf32>
    %325 = arith.index_cast %293 : i32 to index
    %c0_104 = arith.constant 0 : index
    %326 = vector.load %arg12[%325, %c0_104] : memref<64x128xf32, #tpu.memory_space<vmem>>, vector<8x128xf32>
    tpu.vector_store %arg12[%325, %c0_104], %324 {strides = array<i32>} : memref<64x128xf32, #tpu.memory_space<vmem>>, vector<8x128xf32>,
    %c1_i32_105 = arith.constant 1 : i32
    %c8_i32_106 = arith.constant 8 : i32
    %327 = arith.muli %c1_i32_105, %c8_i32_106 : i32
    %328 = tpu.assume_multiple %327, 8 : i32
    %c0_107 = arith.constant 0 : index
    %c0_108 = arith.constant 0 : index
    %c0_109 = arith.constant 0 : index
    %329 = vector.load %arg5[%c0_107, %c0_108, %c0_109] : memref<1x128x512xf32, #tpu.memory_space<vmem>>, vector<1x128x512xf32>
    %330 = vector.shape_cast %329 : vector<1x128x512xf32> to vector<128x512xf32>
    %331 = arith.index_cast %328 : i32 to index
    %c0_110 = arith.constant 0 : index
    %332 = vector.load %arg13[%331, %c0_110] : memref<64x512xf32, #tpu.memory_space<vmem>>, vector<8x512xf32>
    %cst_111 = arith.constant dense<0.000000e+00> : vector<8x512xf32>
    %333 = tpu.matmul %324, %330, %cst_111 {dimension_numbers = #tpu.dot_dimension_numbers<[1], [0], [0], [1], [0, 0, 1, 1], [], []>} : vector<8x128xf32>, vector<128x512xf32>, vector<8x512xf32> -> vector<8x512xf32>
    %334 = arith.addf %332, %333 : vector<8x512xf32>
    %335 = vector.extract_strided_slice %334 {offsets = [0, 0], sizes = [8, 128], strides = [1, 1]} : vector<8x512xf32> to vector<8x128xf32>
    %336 = arith.negf %335 : vector<8x128xf32>
    %337 = math.exp %336 : vector<8x128xf32>
    %cst_112 = arith.constant 1.000000e+00 : f32
    %338 = vector.broadcast %cst_112 : f32 to vector<8x128xf32>
    %339 = arith.addf %338, %337 : vector<8x128xf32>
    %340 = arith.divf %338, %339 : vector<8x128xf32>
    %341 = vector.extract_strided_slice %334 {offsets = [0, 128], sizes = [8, 128], strides = [1, 1]} : vector<8x512xf32> to vector<8x128xf32>
    %342 = arith.negf %341 : vector<8x128xf32>
    %343 = math.exp %342 : vector<8x128xf32>
    %cst_113 = arith.constant 1.000000e+00 : f32
    %344 = vector.broadcast %cst_113 : f32 to vector<8x128xf32>
    %345 = arith.addf %344, %343 : vector<8x128xf32>
    %346 = arith.divf %344, %345 : vector<8x128xf32>
    %347 = vector.extract_strided_slice %334 {offsets = [0, 256], sizes = [8, 128], strides = [1, 1]} : vector<8x512xf32> to vector<8x128xf32>
    %348 = math.tanh %347 : vector<8x128xf32>
    %349 = vector.extract_strided_slice %334 {offsets = [0, 384], sizes = [8, 128], strides = [1, 1]} : vector<8x512xf32> to vector<8x128xf32>
    %350 = arith.negf %349 : vector<8x128xf32>
    %351 = math.exp %350 : vector<8x128xf32>
    %cst_114 = arith.constant 1.000000e+00 : f32
    %352 = vector.broadcast %cst_114 : f32 to vector<8x128xf32>
    %353 = arith.addf %352, %351 : vector<8x128xf32>
    %354 = arith.divf %352, %353 : vector<8x128xf32>
    %355 = arith.mulf %346, %322 : vector<8x128xf32>
    %356 = arith.mulf %340, %348 : vector<8x128xf32>
    %357 = arith.addf %355, %356 : vector<8x128xf32>
    %358 = math.tanh %357 : vector<8x128xf32>
    %359 = arith.mulf %354, %358 : vector<8x128xf32>
    %360 = arith.index_cast %328 : i32 to index
    %c0_115 = arith.constant 0 : index
    %361 = vector.load %arg12[%360, %c0_115] : memref<64x128xf32, #tpu.memory_space<vmem>>, vector<8x128xf32>
    tpu.vector_store %arg12[%360, %c0_115], %359 {strides = array<i32>} : memref<64x128xf32, #tpu.memory_space<vmem>>, vector<8x128xf32>,
    %c2_i32_116 = arith.constant 2 : i32
    %c8_i32_117 = arith.constant 8 : i32
    %362 = arith.muli %c2_i32_116, %c8_i32_117 : i32
    %363 = tpu.assume_multiple %362, 8 : i32
    %c0_118 = arith.constant 0 : index
    %c0_119 = arith.constant 0 : index
    %c0_120 = arith.constant 0 : index
    %364 = vector.load %arg5[%c0_118, %c0_119, %c0_120] : memref<1x128x512xf32, #tpu.memory_space<vmem>>, vector<1x128x512xf32>
    %365 = vector.shape_cast %364 : vector<1x128x512xf32> to vector<128x512xf32>
    %366 = arith.index_cast %363 : i32 to index
    %c0_121 = arith.constant 0 : index
    %367 = vector.load %arg13[%366, %c0_121] : memref<64x512xf32, #tpu.memory_space<vmem>>, vector<8x512xf32>
    %cst_122 = arith.constant dense<0.000000e+00> : vector<8x512xf32>
    %368 = tpu.matmul %359, %365, %cst_122 {dimension_numbers = #tpu.dot_dimension_numbers<[1], [0], [0], [1], [0, 0, 1, 1], [], []>} : vector<8x128xf32>, vector<128x512xf32>, vector<8x512xf32> -> vector<8x512xf32>
    %369 = arith.addf %367, %368 : vector<8x512xf32>
    %370 = vector.extract_strided_slice %369 {offsets = [0, 0], sizes = [8, 128], strides = [1, 1]} : vector<8x512xf32> to vector<8x128xf32>
    %371 = arith.negf %370 : vector<8x128xf32>
    %372 = math.exp %371 : vector<8x128xf32>
    %cst_123 = arith.constant 1.000000e+00 : f32
    %373 = vector.broadcast %cst_123 : f32 to vector<8x128xf32>
    %374 = arith.addf %373, %372 : vector<8x128xf32>
    %375 = arith.divf %373, %374 : vector<8x128xf32>
    %376 = vector.extract_strided_slice %369 {offsets = [0, 128], sizes = [8, 128], strides = [1, 1]} : vector<8x512xf32> to vector<8x128xf32>
    %377 = arith.negf %376 : vector<8x128xf32>
    %378 = math.exp %377 : vector<8x128xf32>
    %cst_124 = arith.constant 1.000000e+00 : f32
    %379 = vector.broadcast %cst_124 : f32 to vector<8x128xf32>
    %380 = arith.addf %379, %378 : vector<8x128xf32>
    %381 = arith.divf %379, %380 : vector<8x128xf32>
    %382 = vector.extract_strided_slice %369 {offsets = [0, 256], sizes = [8, 128], strides = [1, 1]} : vector<8x512xf32> to vector<8x128xf32>
    %383 = math.tanh %382 : vector<8x128xf32>
    %384 = vector.extract_strided_slice %369 {offsets = [0, 384], sizes = [8, 128], strides = [1, 1]} : vector<8x512xf32> to vector<8x128xf32>
    %385 = arith.negf %384 : vector<8x128xf32>
    %386 = math.exp %385 : vector<8x128xf32>
    %cst_125 = arith.constant 1.000000e+00 : f32
    %387 = vector.broadcast %cst_125 : f32 to vector<8x128xf32>
    %388 = arith.addf %387, %386 : vector<8x128xf32>
    %389 = arith.divf %387, %388 : vector<8x128xf32>
    %390 = arith.mulf %381, %357 : vector<8x128xf32>
    %391 = arith.mulf %375, %383 : vector<8x128xf32>
    %392 = arith.addf %390, %391 : vector<8x128xf32>
    %393 = math.tanh %392 : vector<8x128xf32>
    %394 = arith.mulf %389, %393 : vector<8x128xf32>
    %395 = arith.index_cast %363 : i32 to index
    %c0_126 = arith.constant 0 : index
    %396 = vector.load %arg12[%395, %c0_126] : memref<64x128xf32, #tpu.memory_space<vmem>>, vector<8x128xf32>
    tpu.vector_store %arg12[%395, %c0_126], %394 {strides = array<i32>} : memref<64x128xf32, #tpu.memory_space<vmem>>, vector<8x128xf32>,
    %c3_i32_127 = arith.constant 3 : i32
    %c8_i32_128 = arith.constant 8 : i32
    %397 = arith.muli %c3_i32_127, %c8_i32_128 : i32
    %398 = tpu.assume_multiple %397, 8 : i32
    %c0_129 = arith.constant 0 : index
    %c0_130 = arith.constant 0 : index
    %c0_131 = arith.constant 0 : index
    %399 = vector.load %arg5[%c0_129, %c0_130, %c0_131] : memref<1x128x512xf32, #tpu.memory_space<vmem>>, vector<1x128x512xf32>
    %400 = vector.shape_cast %399 : vector<1x128x512xf32> to vector<128x512xf32>
    %401 = arith.index_cast %398 : i32 to index
    %c0_132 = arith.constant 0 : index
    %402 = vector.load %arg13[%401, %c0_132] : memref<64x512xf32, #tpu.memory_space<vmem>>, vector<8x512xf32>
    %cst_133 = arith.constant dense<0.000000e+00> : vector<8x512xf32>
    %403 = tpu.matmul %394, %400, %cst_133 {dimension_numbers = #tpu.dot_dimension_numbers<[1], [0], [0], [1], [0, 0, 1, 1], [], []>} : vector<8x128xf32>, vector<128x512xf32>, vector<8x512xf32> -> vector<8x512xf32>
    %404 = arith.addf %402, %403 : vector<8x512xf32>
    %405 = vector.extract_strided_slice %404 {offsets = [0, 0], sizes = [8, 128], strides = [1, 1]} : vector<8x512xf32> to vector<8x128xf32>
    %406 = arith.negf %405 : vector<8x128xf32>
    %407 = math.exp %406 : vector<8x128xf32>
    %cst_134 = arith.constant 1.000000e+00 : f32
    %408 = vector.broadcast %cst_134 : f32 to vector<8x128xf32>
    %409 = arith.addf %408, %407 : vector<8x128xf32>
    %410 = arith.divf %408, %409 : vector<8x128xf32>
    %411 = vector.extract_strided_slice %404 {offsets = [0, 128], sizes = [8, 128], strides = [1, 1]} : vector<8x512xf32> to vector<8x128xf32>
    %412 = arith.negf %411 : vector<8x128xf32>
    %413 = math.exp %412 : vector<8x128xf32>
    %cst_135 = arith.constant 1.000000e+00 : f32
    %414 = vector.broadcast %cst_135 : f32 to vector<8x128xf32>
    %415 = arith.addf %414, %413 : vector<8x128xf32>
    %416 = arith.divf %414, %415 : vector<8x128xf32>
    %417 = vector.extract_strided_slice %404 {offsets = [0, 256], sizes = [8, 128], strides = [1, 1]} : vector<8x512xf32> to vector<8x128xf32>
    %418 = math.tanh %417 : vector<8x128xf32>
    %419 = vector.extract_strided_slice %404 {offsets = [0, 384], sizes = [8, 128], strides = [1, 1]} : vector<8x512xf32> to vector<8x128xf32>
    %420 = arith.negf %419 : vector<8x128xf32>
    %421 = math.exp %420 : vector<8x128xf32>
    %cst_136 = arith.constant 1.000000e+00 : f32
    %422 = vector.broadcast %cst_136 : f32 to vector<8x128xf32>
    %423 = arith.addf %422, %421 : vector<8x128xf32>
    %424 = arith.divf %422, %423 : vector<8x128xf32>
    %425 = arith.mulf %416, %392 : vector<8x128xf32>
    %426 = arith.mulf %410, %418 : vector<8x128xf32>
    %427 = arith.addf %425, %426 : vector<8x128xf32>
    %428 = math.tanh %427 : vector<8x128xf32>
    %429 = arith.mulf %424, %428 : vector<8x128xf32>
    %430 = arith.index_cast %398 : i32 to index
    %c0_137 = arith.constant 0 : index
    %431 = vector.load %arg12[%430, %c0_137] : memref<64x128xf32, #tpu.memory_space<vmem>>, vector<8x128xf32>
    tpu.vector_store %arg12[%430, %c0_137], %429 {strides = array<i32>} : memref<64x128xf32, #tpu.memory_space<vmem>>, vector<8x128xf32>,
    %c4_i32_138 = arith.constant 4 : i32
    %c8_i32_139 = arith.constant 8 : i32
    %432 = arith.muli %c4_i32_138, %c8_i32_139 : i32
    %433 = tpu.assume_multiple %432, 8 : i32
    %c0_140 = arith.constant 0 : index
    %c0_141 = arith.constant 0 : index
    %c0_142 = arith.constant 0 : index
    %434 = vector.load %arg5[%c0_140, %c0_141, %c0_142] : memref<1x128x512xf32, #tpu.memory_space<vmem>>, vector<1x128x512xf32>
    %435 = vector.shape_cast %434 : vector<1x128x512xf32> to vector<128x512xf32>
    %436 = arith.index_cast %433 : i32 to index
    %c0_143 = arith.constant 0 : index
    %437 = vector.load %arg13[%436, %c0_143] : memref<64x512xf32, #tpu.memory_space<vmem>>, vector<8x512xf32>
    %cst_144 = arith.constant dense<0.000000e+00> : vector<8x512xf32>
    %438 = tpu.matmul %429, %435, %cst_144 {dimension_numbers = #tpu.dot_dimension_numbers<[1], [0], [0], [1], [0, 0, 1, 1], [], []>} : vector<8x128xf32>, vector<128x512xf32>, vector<8x512xf32> -> vector<8x512xf32>
    %439 = arith.addf %437, %438 : vector<8x512xf32>
    %440 = vector.extract_strided_slice %439 {offsets = [0, 0], sizes = [8, 128], strides = [1, 1]} : vector<8x512xf32> to vector<8x128xf32>
    %441 = arith.negf %440 : vector<8x128xf32>
    %442 = math.exp %441 : vector<8x128xf32>
    %cst_145 = arith.constant 1.000000e+00 : f32
    %443 = vector.broadcast %cst_145 : f32 to vector<8x128xf32>
    %444 = arith.addf %443, %442 : vector<8x128xf32>
    %445 = arith.divf %443, %444 : vector<8x128xf32>
    %446 = vector.extract_strided_slice %439 {offsets = [0, 128], sizes = [8, 128], strides = [1, 1]} : vector<8x512xf32> to vector<8x128xf32>
    %447 = arith.negf %446 : vector<8x128xf32>
    %448 = math.exp %447 : vector<8x128xf32>
    %cst_146 = arith.constant 1.000000e+00 : f32
    %449 = vector.broadcast %cst_146 : f32 to vector<8x128xf32>
    %450 = arith.addf %449, %448 : vector<8x128xf32>
    %451 = arith.divf %449, %450 : vector<8x128xf32>
    %452 = vector.extract_strided_slice %439 {offsets = [0, 256], sizes = [8, 128], strides = [1, 1]} : vector<8x512xf32> to vector<8x128xf32>
    %453 = math.tanh %452 : vector<8x128xf32>
    %454 = vector.extract_strided_slice %439 {offsets = [0, 384], sizes = [8, 128], strides = [1, 1]} : vector<8x512xf32> to vector<8x128xf32>
    %455 = arith.negf %454 : vector<8x128xf32>
    %456 = math.exp %455 : vector<8x128xf32>
    %cst_147 = arith.constant 1.000000e+00 : f32
    %457 = vector.broadcast %cst_147 : f32 to vector<8x128xf32>
    %458 = arith.addf %457, %456 : vector<8x128xf32>
    %459 = arith.divf %457, %458 : vector<8x128xf32>
    %460 = arith.mulf %451, %427 : vector<8x128xf32>
    %461 = arith.mulf %445, %453 : vector<8x128xf32>
    %462 = arith.addf %460, %461 : vector<8x128xf32>
    %463 = math.tanh %462 : vector<8x128xf32>
    %464 = arith.mulf %459, %463 : vector<8x128xf32>
    %465 = arith.index_cast %433 : i32 to index
    %c0_148 = arith.constant 0 : index
    %466 = vector.load %arg12[%465, %c0_148] : memref<64x128xf32, #tpu.memory_space<vmem>>, vector<8x128xf32>
    tpu.vector_store %arg12[%465, %c0_148], %464 {strides = array<i32>} : memref<64x128xf32, #tpu.memory_space<vmem>>, vector<8x128xf32>,
    %c5_i32_149 = arith.constant 5 : i32
    %c8_i32_150 = arith.constant 8 : i32
    %467 = arith.muli %c5_i32_149, %c8_i32_150 : i32
    %468 = tpu.assume_multiple %467, 8 : i32
    %c0_151 = arith.constant 0 : index
    %c0_152 = arith.constant 0 : index
    %c0_153 = arith.constant 0 : index
    %469 = vector.load %arg5[%c0_151, %c0_152, %c0_153] : memref<1x128x512xf32, #tpu.memory_space<vmem>>, vector<1x128x512xf32>
    %470 = vector.shape_cast %469 : vector<1x128x512xf32> to vector<128x512xf32>
    %471 = arith.index_cast %468 : i32 to index
    %c0_154 = arith.constant 0 : index
    %472 = vector.load %arg13[%471, %c0_154] : memref<64x512xf32, #tpu.memory_space<vmem>>, vector<8x512xf32>
    %cst_155 = arith.constant dense<0.000000e+00> : vector<8x512xf32>
    %473 = tpu.matmul %464, %470, %cst_155 {dimension_numbers = #tpu.dot_dimension_numbers<[1], [0], [0], [1], [0, 0, 1, 1], [], []>} : vector<8x128xf32>, vector<128x512xf32>, vector<8x512xf32> -> vector<8x512xf32>
    %474 = arith.addf %472, %473 : vector<8x512xf32>
    %475 = vector.extract_strided_slice %474 {offsets = [0, 0], sizes = [8, 128], strides = [1, 1]} : vector<8x512xf32> to vector<8x128xf32>
    %476 = arith.negf %475 : vector<8x128xf32>
    %477 = math.exp %476 : vector<8x128xf32>
    %cst_156 = arith.constant 1.000000e+00 : f32
    %478 = vector.broadcast %cst_156 : f32 to vector<8x128xf32>
    %479 = arith.addf %478, %477 : vector<8x128xf32>
    %480 = arith.divf %478, %479 : vector<8x128xf32>
    %481 = vector.extract_strided_slice %474 {offsets = [0, 128], sizes = [8, 128], strides = [1, 1]} : vector<8x512xf32> to vector<8x128xf32>
    %482 = arith.negf %481 : vector<8x128xf32>
    %483 = math.exp %482 : vector<8x128xf32>
    %cst_157 = arith.constant 1.000000e+00 : f32
    %484 = vector.broadcast %cst_157 : f32 to vector<8x128xf32>
    %485 = arith.addf %484, %483 : vector<8x128xf32>
    %486 = arith.divf %484, %485 : vector<8x128xf32>
    %487 = vector.extract_strided_slice %474 {offsets = [0, 256], sizes = [8, 128], strides = [1, 1]} : vector<8x512xf32> to vector<8x128xf32>
    %488 = math.tanh %487 : vector<8x128xf32>
    %489 = vector.extract_strided_slice %474 {offsets = [0, 384], sizes = [8, 128], strides = [1, 1]} : vector<8x512xf32> to vector<8x128xf32>
    %490 = arith.negf %489 : vector<8x128xf32>
    %491 = math.exp %490 : vector<8x128xf32>
    %cst_158 = arith.constant 1.000000e+00 : f32
    %492 = vector.broadcast %cst_158 : f32 to vector<8x128xf32>
    %493 = arith.addf %492, %491 : vector<8x128xf32>
    %494 = arith.divf %492, %493 : vector<8x128xf32>
    %495 = arith.mulf %486, %462 : vector<8x128xf32>
    %496 = arith.mulf %480, %488 : vector<8x128xf32>
    %497 = arith.addf %495, %496 : vector<8x128xf32>
    %498 = math.tanh %497 : vector<8x128xf32>
    %499 = arith.mulf %494, %498 : vector<8x128xf32>
    %500 = arith.index_cast %468 : i32 to index
    %c0_159 = arith.constant 0 : index
    %501 = vector.load %arg12[%500, %c0_159] : memref<64x128xf32, #tpu.memory_space<vmem>>, vector<8x128xf32>
    tpu.vector_store %arg12[%500, %c0_159], %499 {strides = array<i32>} : memref<64x128xf32, #tpu.memory_space<vmem>>, vector<8x128xf32>,
    %c6_i32_160 = arith.constant 6 : i32
    %c8_i32_161 = arith.constant 8 : i32
    %502 = arith.muli %c6_i32_160, %c8_i32_161 : i32
    %503 = tpu.assume_multiple %502, 8 : i32
    %c0_162 = arith.constant 0 : index
    %c0_163 = arith.constant 0 : index
    %c0_164 = arith.constant 0 : index
    %504 = vector.load %arg5[%c0_162, %c0_163, %c0_164] : memref<1x128x512xf32, #tpu.memory_space<vmem>>, vector<1x128x512xf32>
    %505 = vector.shape_cast %504 : vector<1x128x512xf32> to vector<128x512xf32>
    %506 = arith.index_cast %503 : i32 to index
    %c0_165 = arith.constant 0 : index
    %507 = vector.load %arg13[%506, %c0_165] : memref<64x512xf32, #tpu.memory_space<vmem>>, vector<8x512xf32>
    %cst_166 = arith.constant dense<0.000000e+00> : vector<8x512xf32>
    %508 = tpu.matmul %499, %505, %cst_166 {dimension_numbers = #tpu.dot_dimension_numbers<[1], [0], [0], [1], [0, 0, 1, 1], [], []>} : vector<8x128xf32>, vector<128x512xf32>, vector<8x512xf32> -> vector<8x512xf32>
    %509 = arith.addf %507, %508 : vector<8x512xf32>
    %510 = vector.extract_strided_slice %509 {offsets = [0, 0], sizes = [8, 128], strides = [1, 1]} : vector<8x512xf32> to vector<8x128xf32>
    %511 = arith.negf %510 : vector<8x128xf32>
    %512 = math.exp %511 : vector<8x128xf32>
    %cst_167 = arith.constant 1.000000e+00 : f32
    %513 = vector.broadcast %cst_167 : f32 to vector<8x128xf32>
    %514 = arith.addf %513, %512 : vector<8x128xf32>
    %515 = arith.divf %513, %514 : vector<8x128xf32>
    %516 = vector.extract_strided_slice %509 {offsets = [0, 128], sizes = [8, 128], strides = [1, 1]} : vector<8x512xf32> to vector<8x128xf32>
    %517 = arith.negf %516 : vector<8x128xf32>
    %518 = math.exp %517 : vector<8x128xf32>
    %cst_168 = arith.constant 1.000000e+00 : f32
    %519 = vector.broadcast %cst_168 : f32 to vector<8x128xf32>
    %520 = arith.addf %519, %518 : vector<8x128xf32>
    %521 = arith.divf %519, %520 : vector<8x128xf32>
    %522 = vector.extract_strided_slice %509 {offsets = [0, 256], sizes = [8, 128], strides = [1, 1]} : vector<8x512xf32> to vector<8x128xf32>
    %523 = math.tanh %522 : vector<8x128xf32>
    %524 = vector.extract_strided_slice %509 {offsets = [0, 384], sizes = [8, 128], strides = [1, 1]} : vector<8x512xf32> to vector<8x128xf32>
    %525 = arith.negf %524 : vector<8x128xf32>
    %526 = math.exp %525 : vector<8x128xf32>
    %cst_169 = arith.constant 1.000000e+00 : f32
    %527 = vector.broadcast %cst_169 : f32 to vector<8x128xf32>
    %528 = arith.addf %527, %526 : vector<8x128xf32>
    %529 = arith.divf %527, %528 : vector<8x128xf32>
    %530 = arith.mulf %521, %497 : vector<8x128xf32>
    %531 = arith.mulf %515, %523 : vector<8x128xf32>
    %532 = arith.addf %530, %531 : vector<8x128xf32>
    %533 = math.tanh %532 : vector<8x128xf32>
    %534 = arith.mulf %529, %533 : vector<8x128xf32>
    %535 = arith.index_cast %503 : i32 to index
    %c0_170 = arith.constant 0 : index
    %536 = vector.load %arg12[%535, %c0_170] : memref<64x128xf32, #tpu.memory_space<vmem>>, vector<8x128xf32>
    tpu.vector_store %arg12[%535, %c0_170], %534 {strides = array<i32>} : memref<64x128xf32, #tpu.memory_space<vmem>>, vector<8x128xf32>,
    %c7_i32_171 = arith.constant 7 : i32
    %c8_i32_172 = arith.constant 8 : i32
    %537 = arith.muli %c7_i32_171, %c8_i32_172 : i32
    %538 = tpu.assume_multiple %537, 8 : i32
    %c0_173 = arith.constant 0 : index
    %c0_174 = arith.constant 0 : index
    %c0_175 = arith.constant 0 : index
    %539 = vector.load %arg5[%c0_173, %c0_174, %c0_175] : memref<1x128x512xf32, #tpu.memory_space<vmem>>, vector<1x128x512xf32>
    %540 = vector.shape_cast %539 : vector<1x128x512xf32> to vector<128x512xf32>
    %541 = arith.index_cast %538 : i32 to index
    %c0_176 = arith.constant 0 : index
    %542 = vector.load %arg13[%541, %c0_176] : memref<64x512xf32, #tpu.memory_space<vmem>>, vector<8x512xf32>
    %cst_177 = arith.constant dense<0.000000e+00> : vector<8x512xf32>
    %543 = tpu.matmul %534, %540, %cst_177 {dimension_numbers = #tpu.dot_dimension_numbers<[1], [0], [0], [1], [0, 0, 1, 1], [], []>} : vector<8x128xf32>, vector<128x512xf32>, vector<8x512xf32> -> vector<8x512xf32>
    %544 = arith.addf %542, %543 : vector<8x512xf32>
    %545 = vector.extract_strided_slice %544 {offsets = [0, 0], sizes = [8, 128], strides = [1, 1]} : vector<8x512xf32> to vector<8x128xf32>
    %546 = arith.negf %545 : vector<8x128xf32>
    %547 = math.exp %546 : vector<8x128xf32>
    %cst_178 = arith.constant 1.000000e+00 : f32
    %548 = vector.broadcast %cst_178 : f32 to vector<8x128xf32>
    %549 = arith.addf %548, %547 : vector<8x128xf32>
    %550 = arith.divf %548, %549 : vector<8x128xf32>
    %551 = vector.extract_strided_slice %544 {offsets = [0, 128], sizes = [8, 128], strides = [1, 1]} : vector<8x512xf32> to vector<8x128xf32>
    %552 = arith.negf %551 : vector<8x128xf32>
    %553 = math.exp %552 : vector<8x128xf32>
    %cst_179 = arith.constant 1.000000e+00 : f32
    %554 = vector.broadcast %cst_179 : f32 to vector<8x128xf32>
    %555 = arith.addf %554, %553 : vector<8x128xf32>
    %556 = arith.divf %554, %555 : vector<8x128xf32>
    %557 = vector.extract_strided_slice %544 {offsets = [0, 256], sizes = [8, 128], strides = [1, 1]} : vector<8x512xf32> to vector<8x128xf32>
    %558 = math.tanh %557 : vector<8x128xf32>
    %559 = vector.extract_strided_slice %544 {offsets = [0, 384], sizes = [8, 128], strides = [1, 1]} : vector<8x512xf32> to vector<8x128xf32>
    %560 = arith.negf %559 : vector<8x128xf32>
    %561 = math.exp %560 : vector<8x128xf32>
    %cst_180 = arith.constant 1.000000e+00 : f32
    %562 = vector.broadcast %cst_180 : f32 to vector<8x128xf32>
    %563 = arith.addf %562, %561 : vector<8x128xf32>
    %564 = arith.divf %562, %563 : vector<8x128xf32>
    %565 = arith.mulf %556, %532 : vector<8x128xf32>
    %566 = arith.mulf %550, %558 : vector<8x128xf32>
    %567 = arith.addf %565, %566 : vector<8x128xf32>
    %568 = math.tanh %567 : vector<8x128xf32>
    %569 = arith.mulf %564, %568 : vector<8x128xf32>
    %570 = arith.index_cast %538 : i32 to index
    %c0_181 = arith.constant 0 : index
    %571 = vector.load %arg12[%570, %c0_181] : memref<64x128xf32, #tpu.memory_space<vmem>>, vector<8x128xf32>
    tpu.vector_store %arg12[%570, %c0_181], %569 {strides = array<i32>} : memref<64x128xf32, #tpu.memory_space<vmem>>, vector<8x128xf32>,
    %c8_i32_182 = arith.constant 8 : i32
    %c0_183 = arith.constant 0 : index
    %c0_184 = arith.constant 0 : index
    %572 = vector.load %arg12[%c0_183, %c0_184] : memref<64x128xf32, #tpu.memory_space<vmem>>, vector<64x128xf32>
    %c0_185 = arith.constant 0 : index
    %c0_186 = arith.constant 0 : index
    %573 = vector.load %arg7[%c0_185, %c0_186] : memref<128x128xf32, #tpu.memory_space<vmem>>, vector<128x128xf32>
    %cst_187 = arith.constant dense<0.000000e+00> : vector<64x128xf32>
    %574 = tpu.matmul %572, %573, %cst_187 {dimension_numbers = #tpu.dot_dimension_numbers<[1], [0], [0], [1], [0, 0, 1, 1], [], []>} : vector<64x128xf32>, vector<128x128xf32>, vector<64x128xf32> -> vector<64x128xf32>
    %c0_188 = arith.constant 0 : index
    %c0_189 = arith.constant 0 : index
    %575 = vector.load %arg8[%c0_188, %c0_189] : memref<1x128xf32, #tpu.memory_space<vmem>>, vector<1x128xf32>
    %576 = vector.broadcast %575 : vector<1x128xf32> to vector<64x128xf32>
    %577 = arith.addf %574, %576 : vector<64x128xf32>
    %578 = math.tanh %577 : vector<64x128xf32>
    %c0_190 = arith.constant 0 : index
    %c0_191 = arith.constant 0 : index
    %579 = vector.load %arg9[%c0_190, %c0_191] : memref<128x128xf32, #tpu.memory_space<vmem>>, vector<128x128xf32>
    %cst_192 = arith.constant dense<0.000000e+00> : vector<64x128xf32>
    %580 = tpu.matmul %578, %579, %cst_192 {dimension_numbers = #tpu.dot_dimension_numbers<[1], [0], [0], [1], [0, 0, 1, 1], [], []>} : vector<64x128xf32>, vector<128x128xf32>, vector<64x128xf32> -> vector<64x128xf32>
    %c0_193 = arith.constant 0 : index
    %c0_194 = arith.constant 0 : index
    %581 = vector.load %arg10[%c0_193, %c0_194] : memref<1x128xf32, #tpu.memory_space<vmem>>, vector<1x128xf32>
    %582 = vector.broadcast %581 : vector<1x128xf32> to vector<64x128xf32>
    %583 = arith.addf %580, %582 : vector<64x128xf32>
    %c0_195 = arith.constant 0 : index
    %c0_196 = arith.constant 0 : index
    %584 = vector.load %arg11[%c0_195, %c0_196] : memref<64x128xf32, #tpu.memory_space<vmem>>, vector<64x128xf32>
    tpu.vector_store %arg11[%c0_195, %c0_196], %583 {strides = array<i32>} : memref<64x128xf32, #tpu.memory_space<vmem>>, vector<64x128xf32>,
    return
  }
}

</mosaic_0001>

<bundles_post_ra>
// kernel: tpu_custom_call.1
= control target key start
LH: loop header
LB: loop body
LE: loop exit
PB: predicated region body
PF: predicated region fallthrough
CT: control target
= control target key end

     0   :  { %16 = vsyncpa [#allocation5], 0  ;;  %s7437_s0 = inlined_call_operand.vmem [shape: f32[64,8], index: 0, kind: input, shape index: {}]   ;;  %s7438_s1 = inlined_call_operand.vmem [shape: f32[8,512], index: 1, kind: input, shape index: {}]   ;;  %s7439_s2 = inlined_call_operand.hbm [shape: f32[128,512], index: 2, kind: input, shape index: {}]   ;;  %s7440_s3 = inlined_call_operand.vmem [shape: f32[1,512], index: 3, kind: input, shape index: {}]   ;;  %s7441_s4 = inlined_call_operand.hbm [shape: f32[1,128,512], index: 4, kind: input, shape index: {}]   ;;  %s7442_s5 = inlined_call_operand.hbm [shape: f32[1,128,512], index: 5, kind: input, shape index: {}]   ;;  %s7443_s6 = inlined_call_operand.vmem [shape: f32[1,1,512], index: 6, kind: input, shape index: {}]   ;;  %s7444_s7 = inlined_call_operand.hbm [shape: f32[128,128], index: 7, kind: input, shape index: {}]   ;;  %s7445_s8 = inlined_call_operand.vmem [shape: f32[1,128], index: 8, kind: input, shape index: {}]   ;;  %s7446_s9 = inlined_call_operand.hbm [shape: f32[128,128], index: 9, kind: input, shape index: {}]   ;;  %s7447_s10 = inlined_call_operand.vmem [shape: f32[1,128], index: 10, kind: input, shape index: {}]   ;;  %s7448_s11 = inlined_call_operand.hbm [shape: f32[64,128], index: 11, kind: output, shape index: {}]  }
   0x1   :  { %17 = vsyncpa [#allocation8], 0 }
   0x2   :  { %18 = vsyncpa [#allocation11], 0 }
   0x3   :  { %19 = vsyncpa [#allocation6], 0  ;;  %s43_s19 = sshll.u32 %s7441_s4, 4  ;;  %s4818_s20 = smov [#allocation7]   ;;  %s44_s19 = int_to_ptr.hbm [resolvable:$true] %s43_s19 }
   0x4   :  { %s45_s21 = sshll.u32 %s4818_s20, 4  ;;  %s71_s24 = sshll.u32 %s7444_s7, 4  ;;  %s46_s21 = int_to_ptr.vmem [resolvable:$true] %s45_s21  ;;  %s72_s24 = int_to_ptr.hbm [resolvable:$true] %s71_s24 }
   0x5   :  { %s4819_s25 = smov 512   ;;  %s4820_s26 = smov 32  }
   0x6   :  { %51 = dma.hbm_to_vmem [thread:$0]  %s44_s19, 8192, %s46_s21, [#allocation8], %s4819_s25, %s4819_s25, %s4820_s26  }
   0x7   :  { %s4821_s27 = smov [#allocation10]   ;;  %s4822_s29 = smov 128  }
   0x8   :  { %s73_s28 = sshll.u32 %s4821_s27, 4  ;;  %s4823_s30 = smov 8   ;;  %s74_s28 = int_to_ptr.vmem [resolvable:$true] %s73_s28 }
   0x9   :  { %79 = dma.hbm_to_vmem [thread:$0]  %s72_s24, 2048, %s74_s28, [#allocation11], %s4822_s29, %s4822_s29, %s4823_s30  }
   0xa   :  { %s28_s13 = sshll.u32 %s7439_s2, 4  ;;  %s4824_s14 = smov [#allocation4]   ;;  %s29_s13 = int_to_ptr.hbm [resolvable:$true] %s28_s13 }
   0xb   :  { %s30_s7 = sshll.u32 %s4824_s14, 4  ;;  %s56_s17 = sshll.u32 %s7442_s5, 4  ;;  %s31_s7 = int_to_ptr.vmem [resolvable:$true] %s30_s7  ;;  %s57_s17 = int_to_ptr.hbm [resolvable:$true] %s56_s17 }
   0xc   :  { %36 = dma.hbm_to_vmem [thread:$0]  %s29_s13, 8192, %s31_s7, [#allocation5], %s4819_s25, %s4819_s25, %s4820_s26  }
   0xd   :  { %s4825_s18 = smov [#allocation9]   ;;  %s86_s22 = sshll.u32 %s7446_s9, 4  ;;  %s87_s22 = int_to_ptr.hbm [resolvable:$true] %s86_s22 }
   0xe   :  { %s58_s19 = sshll.u32 %s4825_s18, 4  ;;  %s4826_s2 = smov [#allocation12]   ;;  %s59_s19 = int_to_ptr.vmem [resolvable:$true] %s58_s19 }
   0xf   :  { %64 = dma.hbm_to_vmem [thread:$0]  %s57_s17, 8192, %s59_s19, [#allocation8], %s4819_s25, %s4819_s25, %s4820_s26  }
  0x10   :  { %s88_s23 = sshll.u32 %s4826_s2, 4  ;;  %s89_s23 = int_to_ptr.vmem [resolvable:$true] %s88_s23 }
  0x11   :  { %94 = dma.hbm_to_vmem [thread:$0]  %s87_s22, 2048, %s89_s23, [#allocation11], %s4822_s29, %s4822_s29, %s4823_s30  }
  0x12   :  { %4810 = dma.done.wait [#allocation5], 8192  }
  0x13   :  { %4811 = vsyncadd [#allocation5], 4294959104 }
  0x14   :  { %4812 = dma.done.wait [#allocation8], 16384  }
  0x15   :  { %4813 = vsyncadd [#allocation8], 4294950912 }
  0x16   :  { %4814 = dma.done.wait [#allocation11], 4096  }
  0x17   :  { %4815 = vsyncadd [#allocation11], 4294963200  ;;  %vm139_vm0 = vcmask 64512   ;;  %v125_v0 = vld [vmem:[%s7438_s1] sm:$0xff]  ;;  %v126_v1 = vld [vmem:[%s7438_s1 + $0x8] sm:$0xff]  ;;  %v7449_v59 = vmov 0.0  }
  0x18   :  { %v4919_v2 = vld [vmem:[%s7437_s0 + $0x20] sm:$0xff]  ;;  %4379 = vmatpush.msra.mxu2 %v125_v0  ;;  %4380 = vmatpush.msra.mxu3 %v126_v1  ;;  %v128_v3 = vld [vmem:[%s7438_s1 + $0x18] sm:$0xff]  ;;  %v127_v4 = vld [vmem:[%s7438_s1 + $0x10] sm:$0xff]  ;;  %s4277_s12 = sshll.u32 %s7448_s11, 4  ;;  %s4278_s12 = int_to_ptr.hbm [resolvable:$true] %s4277_s12 }
  0x19   :  { %4303 = vmatmul.msk.f32.vlgmr.msra.gmra.mxu2 %vm139_vm0, %v4919_v2  ;;  %4311 = vmatmul.msk.f32.vlgmr.msra.gmra.mxu3 %vm139_vm0, %v4919_v2  ;;  %v4934_v5 = vld [vmem:[%s7437_s0] sm:$0xff]  ;;  %v4938_v7 = vld [vmem:[#allocation4 + $0x1e8] sm:$0xff]  ;;  %v4961_v13 = vld [vmem:[#allocation4 + $0x1f8] sm:$0xff] }
  0x1a   :  { %302 = vmatpush.msrb.mxu3 %v128_v3  ;;  %261 = vmatpush.msrb.mxu2 %v127_v4  ;;  %v4936_v6 = vld [vmem:[#allocation4 + $0x1e0] sm:$0xff]  ;;  %v4946_v9 = vld [vmem:[#allocation4 + $0x1c8] sm:$0xff]  ;;  %v4985_v19 = vld [vmem:[#allocation4 + $0x1d8] sm:$0xff] }
  0x1b   :  { %179 = vmatpush.msra.mxu0 %v125_v0  ;;  %220 = vmatpush.msra.mxu1 %v126_v1  ;;  %v4944_v8 = vld [vmem:[#allocation4 + $0x1c0] sm:$0xff]  ;;  %v4953_v10 = vld [vmem:[%s7437_s0 + $0x28] sm:$0xff]  ;;  %v4987_v20 = vld [vmem:[#allocation4 + $0x1f0] sm:$0xff] }
  0x1c   :  { %4299 = vmatmul.msk.f32.vlgmr.msra.gmra.mxu0 %vm139_vm0, %v4934_v5  ;;  %4307 = vmatmul.msk.f32.vlgmr.msra.gmra.mxu1 %vm139_vm0, %v4934_v5  ;;  %v4957_v11 = vld [vmem:[#allocation4 + $0x1a0] sm:$0xff]  ;;  %v4959_v12 = vld [vmem:[#allocation4 + $0x1a8] sm:$0xff]  ;;  %v5000_v23 = vld [vmem:[%s7437_s0 + $0x30] sm:$0xff] }
  0x1d   :  { %431 = vmatpush.msrb.mxu0 %v4936_v6  ;;  %451 = vmatpush.msrb.mxu1 %v4938_v7  ;;  %v4967_v14 = vld [vmem:[#allocation4 + $0x180] sm:$0xff]  ;;  %v4969_v15 = vld [vmem:[#allocation4 + $0x188] sm:$0xff]  ;;  %v5012_v26 = vld [vmem:[#allocation4 + $0x1b8] sm:$0xff] }
  0x1e   :  { %v4976_v16 = vld [vmem:[%s7437_s0 + $0x8] sm:$0xff]  ;;  %v4978_v17 = vld [vmem:[#allocation4 + $0x160] sm:$0xff]  ;;  %491 = vmatpush.msra.mxu3 %v4961_v13  ;;  %471 = vmatpush.msra.mxu2 %v4987_v20  ;;  %v5014_v27 = vld [vmem:[#allocation4 + $0x1d0] sm:$0xff] }
  0x1f   :  { %432 = vmatpush.msrb.mxu0 %v4944_v8  ;;  %452 = vmatpush.msrb.mxu1 %v4946_v9  ;;  %7579 = vst [vmem:[#allocation18_spill] sm:$0xff] %v4978_v17  ;;  %v4980_v18 = vld [vmem:[#allocation4 + $0x168] sm:$0xff]  ;;  %v4993_v21 = vld [vmem:[#allocation4 + $0x140] sm:$0xff]  ;;  %v5029_v30 = vld [vmem:[%s7437_s0 + $0x10] sm:$0xff] }
  0x20   :  { %7580 = vst [vmem:[#allocation19_spill] sm:$0xff] %v4980_v18  ;;  %v4995_v22 = vld [vmem:[#allocation4 + $0x148] sm:$0xff]  ;;  %v5004_v24 = vld [vmem:[#allocation4 + $0x120] sm:$0xff]  ;;  %492 = vmatpush.msra.mxu3 %v4985_v19  ;;  %472 = vmatpush.msra.mxu2 %v5014_v27  ;;  %v5039_v33 = vld [vmem:[#allocation4 + $0x198] sm:$0xff] }
  0x21   :  { %4304 = vmatmul.msk.f32.gmra.mxu2 %vm139_vm0, %v4953_v10  ;;  %4312 = vmatmul.msk.f32.gmra.mxu3 %vm139_vm0, %v4953_v10  ;;  %7581 = vst [vmem:[#allocation20_spill] sm:$0xff] %v4995_v22  ;;  %v5006_v25 = vld [vmem:[#allocation4 + $0x128] sm:$0xff]  ;;  %v5020_v28 = vld [vmem:[#allocation4 + $0x100] sm:$0xff]  ;;  %v5041_v34 = vld [vmem:[#allocation4 + $0x1b0] sm:$0xff] }
  0x22   :  { %433 = vmatpush.msrb.mxu0 %v4957_v11  ;;  %453 = vmatpush.msrb.mxu1 %v4959_v12  ;;  %7582 = vst [vmem:[#allocation21_spill] sm:$0xff] %v5004_v24  ;;  %v5022_v29 = vld [vmem:[#allocation4 + $0x108] sm:$0xff]  ;;  %v5031_v31 = vld [vmem:[#allocation4 + $0xe0] sm:$0xff]  ;;  %v5054_v37 = vld [vmem:[%s7437_s0 + $0x38] sm:$0xff] }
  0x23   :  { %v5033_v32 = vld [vmem:[#allocation4 + $0xe8] sm:$0xff]  ;;  %493 = vmatpush.msra.mxu3 %v5012_v26  ;;  %v5047_v35 = vld [vmem:[#allocation4 + $0xc0] sm:$0xff]  ;;  %473 = vmatpush.msra.mxu2 %v5041_v34  ;;  %v5066_v40 = vld [vmem:[#allocation4 + $0x178] sm:$0xff] }
  0x24   :  { %434 = vmatpush.msrb.mxu0 %v4967_v14  ;;  %454 = vmatpush.msrb.mxu1 %v4969_v15  ;;  %v5049_v36 = vld [vmem:[#allocation4 + $0xc8] sm:$0xff]  ;;  %v5058_v38 = vld [vmem:[#allocation4 + $0xa0] sm:$0xff]  ;;  %v5068_v41 = vld [vmem:[#allocation4 + $0x190] sm:$0xff] }
  0x25   :  { %4300 = vmatmul.msk.f32.gmra.mxu0 %vm139_vm0, %v4976_v16  ;;  %4308 = vmatmul.msk.f32.gmra.mxu1 %vm139_vm0, %v4976_v16  ;;  %v5060_v39 = vld [vmem:[#allocation4 + $0xa8] sm:$0xff]  ;;  %v5074_v42 = vld [vmem:[#allocation4 + $0x80] sm:$0xff]  ;;  %v5083_v44 = vld [vmem:[%s7437_s0 + $0x18] sm:$0xff] }
  0x26   :  { %435 = vmatpush.msrb.mxu0 %v4978_v17  ;;  %455 = vmatpush.msrb.mxu1 %v4980_v18  ;;  %v5076_v43 = vld [vmem:[#allocation4 + $0x88] sm:$0xff]  ;;  %v5085_v45 = vld [vmem:[#allocation4 + $0x60] sm:$0xff]  ;;  %v5093_v47 = vld [vmem:[#allocation4 + $0x158] sm:$0xff] }
  0x27   :  { %494 = vmatpush.msra.mxu3 %v5039_v33  ;;  %v5087_v46 = vld [vmem:[#allocation4 + $0x68] sm:$0xff]  ;;  %474 = vmatpush.msra.mxu2 %v5068_v41  ;;  %v5095_v48 = vld [vmem:[#allocation4 + $0x170] sm:$0xff]  ;;  %v5101_v49 = vld [vmem:[#allocation4 + $0x40] sm:$0xff] }
  0x28   :  { %436 = vmatpush.msrb.mxu0 %v4993_v21  ;;  %456 = vmatpush.msrb.mxu1 %v4995_v22  ;;  %v5103_v50 = vld [vmem:[#allocation4 + $0x48] sm:$0xff]  ;;  %v5107_v51 = vld [vmem:[#allocation4 + $0x20] sm:$0xff]  ;;  %v5115_v53 = vld [vmem:[#allocation4 + $0x138] sm:$0xff] }
  0x29   :  { %4305 = vmatmul.msk.f32.gmra.mxu2 %vm139_vm0, %v5000_v23  ;;  %4313 = vmatmul.msk.f32.gmra.mxu3 %vm139_vm0, %v5000_v23  ;;  %v5109_v52 = vld [vmem:[#allocation4 + $0x28] sm:$0xff]  ;;  %v5117_v54 = vld [vmem:[#allocation4 + $0x150] sm:$0xff]  ;;  %v5123_v55 = vld [vmem:[#allocation4] sm:$0xff] }
  0x2a   :  { %437 = vmatpush.msrb.mxu0 %v5004_v24  ;;  %457 = vmatpush.msrb.mxu1 %v5006_v25  ;;  %v5125_v56 = vld [vmem:[#allocation4 + $0x8] sm:$0xff]  ;;  %v5130_v57 = vld [vmem:[#allocation4 + $0x118] sm:$0xff]  ;;  %v5133_v58 = vld [vmem:[#allocation4 + $0x130] sm:$0xff] }
  0x2b   :  { %495 = vmatpush.msra.mxu3 %v5066_v40  ;;  %475 = vmatpush.msra.mxu2 %v5095_v48  ;;  %v5139_v60 = vld [vmem:[#allocation4 + $0xf8] sm:$0xff]  ;;  %v5141_v61 = vld [vmem:[#allocation4 + $0x110] sm:$0xff] }
  0x2c   :  { %438 = vmatpush.msrb.mxu0 %v5020_v28  ;;  %458 = vmatpush.msrb.mxu1 %v5022_v29  ;;  %v5145_v62 = vld [vmem:[#allocation4 + $0xd8] sm:$0xff]  ;;  %v5157_v0 = vld [vmem:[#allocation4 + $0xf0] sm:$0xff] }
  0x2d   :  { %4301 = vmatmul.msk.f32.gmra.mxu0 %vm139_vm0, %v5029_v30  ;;  %4309 = vmatmul.msk.f32.gmra.mxu1 %vm139_vm0, %v5029_v30  ;;  %v5155_v63 = vld [vmem:[#allocation4 + $0xb8] sm:$0xff]  ;;  %v5161_v1 = vld [vmem:[#allocation4 + $0xd0] sm:$0xff] }
  0x2e   :  { %439 = vmatpush.msrb.mxu0 %v5031_v31  ;;  %459 = vmatpush.msrb.mxu1 %v5033_v32  ;;  %v5163_v3 = vld [vmem:[#allocation4 + $0x98] sm:$0xff] }
  0x2f   :  { %496 = vmatpush.msra.mxu3 %v5093_v47  ;;  %476 = vmatpush.msra.mxu2 %v5117_v54  ;;  %v5178_v4 = vld [vmem:[#allocation4 + $0x78] sm:$0xff] }
  0x30   :  { %440 = vmatpush.msrb.mxu0 %v5047_v35  ;;  %460 = vmatpush.msrb.mxu1 %v5049_v36 }
  0x31   :  { %4306 = vmatmul.msk.f32.gmra.mxu2 %vm139_vm0, %v5054_v37  ;;  %4314 = vmatmul.msk.f32.gmra.mxu3 %vm139_vm0, %v5054_v37 }
  0x32   :  { %441 = vmatpush.msrb.mxu0 %v5058_v38  ;;  %461 = vmatpush.msrb.mxu1 %v5060_v39 }
  0x33   :  { %497 = vmatpush.msra.mxu3 %v5115_v53  ;;  %477 = vmatpush.msra.mxu2 %v5133_v58 }
  0x34   :  { %442 = vmatpush.msrb.mxu0 %v5074_v42  ;;  %462 = vmatpush.msrb.mxu1 %v5076_v43 }
  0x35   :  { %4302 = vmatmul.msk.f32.gmra.mxu0 %vm139_vm0, %v5083_v44  ;;  %4310 = vmatmul.msk.f32.gmra.mxu1 %vm139_vm0, %v5083_v44 }
  0x36   :  { %443 = vmatpush.msrb.mxu0 %v5085_v45  ;;  %463 = vmatpush.msrb.mxu1 %v5087_v46 }
  0x37   :  { %498 = vmatpush.msra.mxu3 %v5130_v57  ;;  %478 = vmatpush.msra.mxu2 %v5141_v61 }
  0x38   :  { %444 = vmatpush.msrb.mxu0 %v5101_v49  ;;  %464 = vmatpush.msrb.mxu1 %v5103_v50 }
  0x39   :  { %4315 = vmatmul.msk.f32.vlgmr.msrb.gmra.mxu2 %vm139_vm0, %v4934_v5  ;;  %4323 = vmatmul.msk.f32.vlgmr.msrb.gmra.mxu3 %vm139_vm0, %v4934_v5  ;;  %v5180_v5 = vld [vmem:[#allocation4 + $0xb0] sm:$0xff] }
  0x3a   :  { %445 = vmatpush.msrb.mxu0 %v5107_v51  ;;  %465 = vmatpush.msrb.mxu1 %v5109_v52 }
  0x3b   :  { %499 = vmatpush.msra.mxu3 %v5139_v60  ;;  %479 = vmatpush.msra.mxu2 %v5157_v0 }
  0x3c   :  { %446 = vmatpush.msrb.mxu0 %v5123_v55  ;;  %466 = vmatpush.msrb.mxu1 %v5125_v56 }
  0x3d   :  { %447 = vmatmul.f32.vlgmr.msrb.gmra.mxu0 %v7449_v59  ;;  %467 = vmatmul.f32.vlgmr.msrb.gmra.mxu1 %v7449_v59  ;;  %v5186_v59 = vld [vmem:[#allocation4 + $0x90] sm:$0xff] }
  0x3e   :  { %650 = vmatpush.msra.mxu0 %v4936_v6  ;;  %670 = vmatpush.msra.mxu1 %v4938_v7 }
  0x3f   :  { %500 = vmatpush.msra.mxu3 %v5145_v62  ;;  %480 = vmatpush.msra.mxu2 %v5161_v1 }
  0x40   :  { %651 = vmatpush.msra.mxu0 %v4944_v8  ;;  %671 = vmatpush.msra.mxu1 %v4946_v9 }
  0x41   :  { %4316 = vmatmul.msk.f32.gmra.mxu2 %vm139_vm0, %v4976_v16  ;;  %4324 = vmatmul.msk.f32.gmra.mxu3 %vm139_vm0, %v4976_v16  ;;  %v5182_v16 = vld [vmem:[#allocation4 + $0x58] sm:$0xff] }
  0x42   :  { %501 = vmatpush.msra.mxu3 %v5155_v63  ;;  %652 = vmatpush.msra.mxu0 %v4957_v11 }
  0x43   :  { %672 = vmatpush.msra.mxu1 %v4959_v12  ;;  %481 = vmatpush.msra.mxu2 %v5180_v5 }
  0x44   :  { %502 = vmatpush.msra.mxu3 %v5163_v3  ;;  %653 = vmatpush.msra.mxu0 %v4967_v14 }
  0x45   :  { %673 = vmatpush.msra.mxu1 %v4969_v15  ;;  %482 = vmatpush.msra.mxu2 %v5186_v59 }
  0x46   :  { %503 = vmatpush.msra.mxu3 %v5178_v4  ;;  %654 = vmatpush.msra.mxu0 %v4978_v17  ;;  %v5204_v17 = vld [vmem:[#allocation4 + $0x50] sm:$0xff] }
  0x47   :  { %674 = vmatpush.msra.mxu1 %v4980_v18  ;;  %v5202_v18 = vld [vmem:[#allocation4 + $0x70] sm:$0xff] }
  0x48   :  { %504 = vmatpush.msra.mxu3 %v5182_v16  ;;  %655 = vmatpush.msra.mxu0 %v4993_v21 }
  0x49   :  { %4317 = vmatmul.msk.f32.gmra.mxu2 %vm139_vm0, %v5029_v30  ;;  %4325 = vmatmul.msk.f32.gmra.mxu3 %vm139_vm0, %v5029_v30  ;;  %v5200_v30 = vld [vmem:[#allocation4 + $0x38] sm:$0xff] }
  0x4a   :  { %675 = vmatpush.msra.mxu1 %v4995_v22  ;;  %656 = vmatpush.msra.mxu0 %v5004_v24  ;;  %v5208_v22 = vld [vmem:[#allocation4 + $0x18] sm:$0xff]  ;;  %v5210_v24 = vld [vmem:[#allocation4 + $0x30] sm:$0xff] }
  0x4b   :  { %505 = vmatpush.msra.mxu3 %v5200_v30  ;;  %483 = vmatpush.msra.mxu2 %v5202_v18 }
  0x4c   :  { %676 = vmatpush.msra.mxu1 %v5006_v25  ;;  %657 = vmatpush.msra.mxu0 %v5020_v28 }
  0x4d   :  { %484 = vmatpush.msra.mxu2 %v5204_v17  ;;  %506 = vmatpush.msra.mxu3 %v5208_v22 }
  0x4e   :  { %677 = vmatpush.msra.mxu1 %v5022_v29  ;;  %658 = vmatpush.msra.mxu0 %v5031_v31 }
  0x4f   :  { %710 = vmatpush.msrb.mxu3 %v4961_v13  ;;  %485 = vmatpush.msra.mxu2 %v5210_v24 }
  0x50   :  { %678 = vmatpush.msra.mxu1 %v5033_v32  ;;  %659 = vmatpush.msra.mxu0 %v5047_v35 }
  0x51   :  { %4318 = vmatmul.msk.f32.gmra.mxu2 %vm139_vm0, %v5083_v44  ;;  %4326 = vmatmul.msk.f32.gmra.mxu3 %vm139_vm0, %v5083_v44  ;;  %v5216_v44 = vld [vmem:[#allocation4 + $0x10] sm:$0xff] }
  0x52   :  { %711 = vmatpush.msrb.mxu3 %v4985_v19  ;;  %486 = vmatpush.msra.mxu2 %v5216_v44 }
  0x53   :  { %679 = vmatpush.msra.mxu1 %v5049_v36  ;;  %660 = vmatpush.msra.mxu0 %v5058_v38  ;;  %v129_v36 = vld [vmem:[%s7440_s3] sm:$0xf] }
  0x54   :  { %690 = vmatpush.msrb.mxu2 %v4987_v20  ;;  %712 = vmatpush.msrb.mxu3 %v5012_v26 }
  0x55   :  { %680 = vmatpush.msra.mxu1 %v5060_v39  ;;  %661 = vmatpush.msra.mxu0 %v5074_v42 }
  0x56   :  { %691 = vmatpush.msrb.mxu2 %v5014_v27  ;;  %713 = vmatpush.msrb.mxu3 %v5039_v33 }
  0x57   :  { %681 = vmatpush.msra.mxu1 %v5076_v43  ;;  %662 = vmatpush.msra.mxu0 %v5085_v45 }
  0x58   :  { %692 = vmatpush.msrb.mxu2 %v5041_v34  ;;  %714 = vmatpush.msrb.mxu3 %v5066_v40 }
  0x59   :  { %4319 = vmatmul.msk.f32.gmra.mxu2 %vm139_vm0, %v4919_v2  ;;  %4327 = vmatmul.msk.f32.gmra.mxu3 %vm139_vm0, %v4919_v2  ;;  %v7583_v2 = vld [vmem:[#allocation18_spill] sm:$0xff] }
  0x5a   :  { %682 = vmatpush.msra.mxu1 %v5087_v46  ;;  %693 = vmatpush.msrb.mxu2 %v5068_v41 }
  0x5b   :  { %715 = vmatpush.msrb.mxu3 %v5093_v47  ;;  %663 = vmatpush.msra.mxu0 %v5101_v49 }
  0x5c   :  { %694 = vmatpush.msrb.mxu2 %v5095_v48  ;;  %683 = vmatpush.msra.mxu1 %v5103_v50 }
  0x5d   :  { %716 = vmatpush.msrb.mxu3 %v5115_v53  ;;  %664 = vmatpush.msra.mxu0 %v5107_v51 }
  0x5e   :  { %695 = vmatpush.msrb.mxu2 %v5117_v54  ;;  %684 = vmatpush.msra.mxu1 %v5109_v52 }
  0x5f   :  { %717 = vmatpush.msrb.mxu3 %v5130_v57  ;;  %665 = vmatpush.msra.mxu0 %v5123_v55 }
  0x60   :  { %696 = vmatpush.msrb.mxu2 %v5133_v58  ;;  %685 = vmatpush.msra.mxu1 %v5125_v56 }
  0x61   :  { %4320 = vmatmul.msk.f32.gmra.mxu2 %vm139_vm0, %v4953_v10  ;;  %4328 = vmatmul.msk.f32.gmra.mxu3 %vm139_vm0, %v4953_v10 }
  0x62   :  { %718 = vmatpush.msrb.mxu3 %v5139_v60  ;;  %697 = vmatpush.msrb.mxu2 %v5141_v61 }
  0x63   :  { %870 = vmatpush.msrb.mxu0 %v4936_v6  ;;  %890 = vmatpush.msrb.mxu1 %v4938_v7  ;;  %v7584_v6 = vld [vmem:[#allocation19_spill] sm:$0xff]  ;;  %v7585_v7 = vld [vmem:[#allocation20_spill] sm:$0xff] }
  0x64   :  { %719 = vmatpush.msrb.mxu3 %v5145_v62  ;;  %698 = vmatpush.msrb.mxu2 %v5157_v0 }
  0x65   :  { %871 = vmatpush.msrb.mxu0 %v4944_v8  ;;  %891 = vmatpush.msrb.mxu1 %v4946_v9  ;;  %v7586_v8 = vmov 0.0   ;;  %v7587_v9 = vld [vmem:[#allocation21_spill] sm:$0xff] }
  0x66   :  { %720 = vmatpush.msrb.mxu3 %v5155_v63  ;;  %699 = vmatpush.msrb.mxu2 %v5161_v1 }
  0x67   :  { %872 = vmatpush.msrb.mxu0 %v4957_v11  ;;  %892 = vmatpush.msrb.mxu1 %v4959_v12 }
  0x68   :  { %721 = vmatpush.msrb.mxu3 %v5163_v3  ;;  %700 = vmatpush.msrb.mxu2 %v5180_v5 }
  0x69   :  { %4321 = vmatmul.msk.f32.gmra.mxu2 %vm139_vm0, %v5000_v23  ;;  %4329 = vmatmul.msk.f32.gmra.mxu3 %vm139_vm0, %v5000_v23 }
  0x6a   :  { %722 = vmatpush.msrb.mxu3 %v5178_v4  ;;  %701 = vmatpush.msrb.mxu2 %v5186_v59 }
  0x6b   :  { %873 = vmatpush.msrb.mxu0 %v4967_v14  ;;  %893 = vmatpush.msrb.mxu1 %v4969_v15 }
  0x6c   :  { %723 = vmatpush.msrb.mxu3 %v5182_v16  ;;  %702 = vmatpush.msrb.mxu2 %v5202_v18 }
  0x6d   :  { %874 = vmatpush.msrb.mxu0 %v7583_v2  ;;  %894 = vmatpush.msrb.mxu1 %v7584_v6 }
  0x6e   :  { %724 = vmatpush.msrb.mxu3 %v5200_v30  ;;  %703 = vmatpush.msrb.mxu2 %v5204_v17 }
  0x6f   :  { %875 = vmatpush.msrb.mxu0 %v4993_v21  ;;  %895 = vmatpush.msrb.mxu1 %v7585_v7 }
  0x70   :  { %725 = vmatpush.msrb.mxu3 %v5208_v22  ;;  %704 = vmatpush.msrb.mxu2 %v5210_v24 }
  0x71   :  { %4322 = vmatmul.msk.f32.gmra.mxu2 %vm139_vm0, %v5054_v37  ;;  %4330 = vmatmul.msk.f32.gmra.mxu3 %vm139_vm0, %v5054_v37  ;;  %v5371_v37 = vperm.slane %v129_v36, 0 }
  0x72   :  { %705 = vmatpush.msrb.mxu2 %v5216_v44  ;;  %876 = vmatpush.msrb.mxu0 %v7587_v9 }
  0x73   :  { %896 = vmatpush.msrb.mxu1 %v5006_v25  ;;  %7598 = vst [vmem:[#allocation28_spill] sm:$0xff] %v5371_v37 }
  0x79   :  { %487 = vmatmul.f32.vlgmr.msra.gmra.mxu2 %v7586_v8  ;;  %507 = vmatmul.f32.vlgmr.msra.gmra.mxu3 %v7586_v8 }
  0x7a   :  { %910 = vmatpush.msra.mxu2 %v4987_v20  ;;  %930 = vmatpush.msra.mxu3 %v4961_v13 }
  0x7c   :  { %911 = vmatpush.msra.mxu2 %v5014_v27  ;;  %931 = vmatpush.msra.mxu3 %v4985_v19 }
  0x7e   :  { %912 = vmatpush.msra.mxu2 %v5041_v34  ;;  %932 = vmatpush.msra.mxu3 %v5012_v26 }
  0x80   :  { %913 = vmatpush.msra.mxu2 %v5068_v41  ;;  %933 = vmatpush.msra.mxu3 %v5039_v33 }
  0x82   :  { %914 = vmatpush.msra.mxu2 %v5095_v48  ;;  %934 = vmatpush.msra.mxu3 %v5066_v40  ;;  %v5377_v40 = vperm.slane %v129_v36, 1 }
  0x84   :  { %915 = vmatpush.msra.mxu2 %v5117_v54  ;;  %935 = vmatpush.msra.mxu3 %v5093_v47  ;;  %7601 = vst [vmem:[#allocation31_spill] sm:$0xff] %v5377_v40 }
  0x86   :  { %916 = vmatpush.msra.mxu2 %v5133_v58  ;;  %936 = vmatpush.msra.mxu3 %v5115_v53 }
  0x88   :  { %917 = vmatpush.msra.mxu2 %v5141_v61  ;;  %937 = vmatpush.msra.mxu3 %v5130_v57 }
  0x8a   :  { %918 = vmatpush.msra.mxu2 %v5157_v0  ;;  %938 = vmatpush.msra.mxu3 %v5139_v60  ;;  %v5397_v0 = vperm.slane %v129_v36, 3 }
  0x8c   :  { %919 = vmatpush.msra.mxu2 %v5161_v1  ;;  %939 = vmatpush.msra.mxu3 %v5145_v62  ;;  %7610 = vst [vmem:[#allocation40_spill] sm:$0xff] %v5397_v0 }
  0x8e   :  { %920 = vmatpush.msra.mxu2 %v5180_v5  ;;  %940 = vmatpush.msra.mxu3 %v5155_v63 }
  0x90   :  { %921 = vmatpush.msra.mxu2 %v5186_v59  ;;  %941 = vmatpush.msra.mxu3 %v5163_v3 }
  0x92   :  { %922 = vmatpush.msra.mxu2 %v5202_v18  ;;  %942 = vmatpush.msra.mxu3 %v5178_v4  ;;  %v5399_v4 = vperm.slane %v129_v36, 2 }
  0x94   :  { %923 = vmatpush.msra.mxu2 %v5204_v17  ;;  %943 = vmatpush.msra.mxu3 %v5182_v16  ;;  %7611 = vst [vmem:[#allocation41_spill] sm:$0xff] %v5399_v4 }
  0x96   :  { %924 = vmatpush.msra.mxu2 %v5210_v24  ;;  %944 = vmatpush.msra.mxu3 %v5200_v30 }
  0x98   :  { %925 = vmatpush.msra.mxu2 %v5216_v44  ;;  %945 = vmatpush.msra.mxu3 %v5208_v22 }
  0x99   :  { %v181_v17 = vpop.f32.mrf.mxu0  ;;  %v222_v18 = vpop.f32.mrf.mxu1 }
  0x9a   :  { %v182_v41 = vadd.f32 %v181_v17, %v5371_v37  ;;  %v223_v42 = vadd.f32 %v222_v18, %v5377_v40 }
  0x9c   :  { %v5332_v10 = vpop.f32.mrf.mxu2  ;;  %v5334_v11 = vpop.f32.mrf.mxu3 }
  0x9d   :  { %7588 = vst [vmem:[#allocation18_spill] sm:$0xff] %v5332_v10 }
  0x9e   :  { %7589 = vst [vmem:[#allocation19_spill] sm:$0xff] %v5334_v11 }
  0xa2   :  { %v5348_v21 = vpop.f32.mrf.mxu0  ;;  %v5350_v22 = vpop.f32.mrf.mxu1 }
  0xa4   :  { %v5336_v12 = vpop.f32.mrf.mxu2  ;;  %v5338_v13 = vpop.f32.mrf.mxu3 }
  0xa5   :  { %7590 = vst [vmem:[#allocation20_spill] sm:$0xff] %v5336_v12  ;;  %v5578_v12 = vld [vmem:[#allocation4 + $0xe0] sm:$0xff] }
  0xa6   :  { %7591 = vst [vmem:[#allocation21_spill] sm:$0xff] %v5338_v13  ;;  %v5572_v13 = vld [vmem:[#allocation4 + $0x118] sm:$0xff] }
  0xaa   :  { %v5352_v25 = vpop.f32.mrf.mxu0  ;;  %v5354_v26 = vpop.f32.mrf.mxu1 }
  0xab   :  { %v188_v11 = vadd.f32 %v5352_v25, %v5371_v37  ;;  %v229_v10 = vadd.f32 %v5354_v26, %v5377_v40  ;;  %v5602_v26 = vld [vmem:[#allocation4 + $0xb0] sm:$0xff] }
  0xac   :  { %v5340_v14 = vpop.f32.mrf.mxu2  ;;  %v5342_v15 = vpop.f32.mrf.mxu3 }
  0xad   :  { %7592 = vst [vmem:[#allocation22_spill] sm:$0xff] %v5340_v14  ;;  %v5562_v14 = vld [vmem:[#allocation4 + $0x130] sm:$0xff] }
  0xae   :  { %7593 = vst [vmem:[#allocation23_spill] sm:$0xff] %v5342_v15  ;;  %v5560_v15 = vld [vmem:[#allocation4 + $0x128] sm:$0xff] }
  0xaf   :  { %7629 = vst [vmem:[#allocation57_spill] sm:$0xff] %v5560_v15 }
  0xb0   :  { %7630 = vst [vmem:[#allocation58_spill] sm:$0xff] %v5562_v14 }
  0xb2   :  { %v5364_v34 = vpop.f32.mrf.mxu0  ;;  %v5366_v35 = vpop.f32.mrf.mxu1 }
  0xb3   :  { %7596 = vst [vmem:[#allocation26_spill] sm:$0xff] %v5364_v34  ;;  %v5594_v34 = vld [vmem:[#allocation4 + $0xd0] sm:$0xff] }
  0xb4   :  { %v5344_v19 = vpop.f32.mrf.mxu2  ;;  %v5346_v20 = vpop.f32.mrf.mxu3  ;;  %7597 = vst [vmem:[#allocation27_spill] sm:$0xff] %v5366_v35 }
  0xb5   :  { %7594 = vst [vmem:[#allocation24_spill] sm:$0xff] %v5344_v19 }
  0xb6   :  { %7595 = vst [vmem:[#allocation25_spill] sm:$0xff] %v5346_v20 }
  0xba   :  { %v448_v43 = vpop.f32.mrf.mxu0  ;;  %v468_v45 = vpop.f32.mrf.mxu1 }
  0xbb   :  { %v511_v46 = vadd.f32 %v448_v43, %v182_v41  ;;  %v512_v47 = vadd.f32 %v468_v45, %v223_v42  ;;  %v5420_v43 = vld [vmem:[#allocation4 + $0x108] sm:$0xff] }
  0xbc   :  { %v263_v23 = vpop.f32.mrf.mxu2  ;;  %v304_v24 = vpop.f32.mrf.mxu3  ;;  %897 = vmatpush.msrb.mxu1 %v5420_v43 }
  0xbd   :  { %v4331_v50 = vmul.f32 -1.442695, %v511_v46  ;;  %v4332_v51 = vmul.f32 -1.442695, %v512_v47  ;;  %v305_v5 = vadd.f32 %v304_v24, %v5397_v0  ;;  %v264_v7 = vadd.f32 %v263_v23, %v5399_v4 }
  0xbe   :  { %898 = vmatpush.msrb.mxu1 %v5033_v32  ;;  %v5442_v32 = vld [vmem:[#allocation4 + $0x80] sm:$0xff] }
  0xbf   :  { %4394 = vpow2.f32 %v4331_v50 }
  0xc0   :  { %4396 = vpow2.f32 %v4332_v51 }
  0xc4   :  { %v5356_v27 = vpop.f32.mrf.mxu2  ;;  %v5358_v28 = vpop.f32.mrf.mxu3 }
  0xc5   :  { %v4395_v54 = vpop.eup %4394 }
  0xc6   :  { %v4397_v55 = vpop.eup %4396  ;;  %v518_v56 = vadd.f32 1.0, %v4395_v54 }
  0xc7   :  { %v537_v57 = vadd.f32 1.0, %v4397_v55 }
  0xc8   :  { %4398 = vrcp.f32 %v518_v56  ;;  %vm524_vm1 = vweird.f32 %v518_v56  ;;  %v530_v42 = vand.u32 2147483648, %v518_v56  ;;  %v528_v45 = vand.u32 2147483647, %v518_v56 }
  0xc9   :  { %4400 = vrcp.f32 %v537_v57  ;;  %vm543_vm3 = vweird.f32 %v537_v57  ;;  %v549_v36 = vand.u32 2147483648, %v537_v57  ;;  %v547_v23 = vand.u32 2147483647, %v537_v57 }
  0xca   :  { %v531_v50 = vor.u32 1.1754944e-38, %v530_v42  ;;  %vm529_vm7 = vcmp.eq.f32.partialorder %v528_v45, 8.507059e+37  ;;  %v185_v45 = vadd.f32 %v5348_v21, %v5371_v37  ;;  %v5436_v21 = vld [vmem:[#allocation4 + $0xa0] sm:$0xff] }
  0xcb   :  { %v550_v51 = vor.u32 1.1754944e-38, %v549_v36  ;;  %vm548_vm8 = vcmp.eq.f32.partialorder %v547_v23, 8.507059e+37 }
  0xcc   :  { %v5360_v29 = vpop.f32.mrf.mxu2  ;;  %v5362_v33 = vpop.f32.mrf.mxu3 }
  0xce   :  { %v4399_v62 = vpop.eup %4398 }
  0xcf   :  { %v4401_v63 = vpop.eup %4400  ;;  %v520_v1 = vmul.f32 %v4399_v62, %v518_v56  ;;  %vm525_vm2 = vweird.f32 %v4399_v62 }
  0xd0   :  { %v539_v3 = vmul.f32 %v4401_v63, %v537_v57  ;;  %vm544_vm4 = vweird.f32 %v4401_v63  ;;  %vm5403_vm5 = vmor %vm524_vm1, %vm525_vm2 }
  0xd1   :  { %v521_v30 = vsub.f32 1.0, %v520_v1  ;;  %vm545_vm6 = vmor %vm543_vm3, %vm544_vm4 }
  0xd2   :  { %v540_v44 = vsub.f32 1.0, %v539_v3 }
  0xd3   :  { %v522_v41 = vmul.f32 %v4399_v62, %v521_v30 }
  0xd4   :  { %v5373_v38 = vpop.f32.mrf.mxu2  ;;  %v5375_v39 = vpop.f32.mrf.mxu3  ;;  %v541_v18 = vmul.f32 %v4401_v63, %v540_v44 }
  0xd5   :  { %7599 = vst [vmem:[#allocation29_spill] sm:$0xff] %v5373_v38  ;;  %v523_v24 = vadd.f32 %v4399_v62, %v522_v41  ;;  %v5590_v38 = vld [vmem:[#allocation4 + $0xf8] sm:$0xff] }
  0xd6   :  { %7600 = vst [vmem:[#allocation30_spill] sm:$0xff] %v5375_v39  ;;  %v542_v46 = vadd.f32 %v4401_v63, %v541_v18 }
  0xd7   :  { %v527_v55 = vsel %vm5403_vm5, %v4399_v62, %v523_v24  ;;  %v5418_v24 = vld [vmem:[#allocation4 + $0x100] sm:$0xff]  ;;  %7633 = vst [vmem:[#allocation61_spill] sm:$0xff] %v5590_v38 }
  0xd8   :  { %v546_v1 = vsel %vm545_vm6, %v4401_v63, %v542_v46  ;;  %877 = vmatpush.msrb.mxu0 %v5418_v24  ;;  %v226_v46 = vadd.f32 %v5350_v22, %v5377_v40  ;;  %v5604_v40 = vld [vmem:[#allocation4 + $0xb8] sm:$0xff] }
  0xda   :  { %878 = vmatpush.msrb.mxu0 %v5031_v31 }
  0xdc   :  { %v5381_v48 = vpop.f32.mrf.mxu2  ;;  %v5383_v49 = vpop.f32.mrf.mxu3 }
  0xdd   :  { %7602 = vst [vmem:[#allocation32_spill] sm:$0xff] %v5381_v48  ;;  %v5580_v48 = vld [vmem:[#allocation4 + $0xe8] sm:$0xff] }
  0xde   :  { %7603 = vst [vmem:[#allocation33_spill] sm:$0xff] %v5383_v49  ;;  %v5582_v49 = vld [vmem:[#allocation4 + $0xf0] sm:$0xff] }
  0xdf   :  { %7632 = vst [vmem:[#allocation60_spill] sm:$0xff] %v5582_v49 }
  0xe4   :  { %v5385_v52 = vpop.f32.mrf.mxu2  ;;  %v5387_v53 = vpop.f32.mrf.mxu3 }
  0xe5   :  { %7604 = vst [vmem:[#allocation34_spill] sm:$0xff] %v5385_v52  ;;  %v5566_v52 = vld [vmem:[#allocation4 + $0x138] sm:$0xff] }
  0xe6   :  { %7605 = vst [vmem:[#allocation35_spill] sm:$0xff] %v5387_v53  ;;  %v5570_v53 = vld [vmem:[#allocation4 + $0x110] sm:$0xff] }
  0xe7   :  { %7631 = vst [vmem:[#allocation59_spill] sm:$0xff] %v5566_v52 }
  0xec   :  { %v5389_v58 = vpop.f32.mrf.mxu2  ;;  %v5391_v59 = vpop.f32.mrf.mxu3 }
  0xed   :  { %7606 = vst [vmem:[#allocation36_spill] sm:$0xff] %v5389_v58 }
  0xee   :  { %7607 = vst [vmem:[#allocation37_spill] sm:$0xff] %v5391_v59 }
  0xf4   :  { %v5393_v60 = vpop.f32.mrf.mxu2  ;;  %v5395_v61 = vpop.f32.mrf.mxu3 }
  0xf5   :  { %7608 = vst [vmem:[#allocation38_spill] sm:$0xff] %v5393_v60 }
  0xf6   :  { %7609 = vst [vmem:[#allocation39_spill] sm:$0xff] %v5395_v61 }
  0xfc   :  { %v508_v16 = vpop.f32.mrf.mxu3  ;;  %v488_v2 = vpop.f32.mrf.mxu2 }
  0xfd   :  { %v514_v6 = vadd.f32 %v508_v16, %v305_v5  ;;  %v513_v17 = vadd.f32 %v488_v2, %v264_v7  ;;  %v532_v5 = vsel %vm529_vm7, %v531_v50, %v527_v55  ;;  %v551_v16 = vsel %vm548_vm8, %v550_v51, %v546_v1  ;;  %v5430_v50 = vld [vmem:[#allocation4 + $0xc0] sm:$0xff]  ;;  %v5432_v51 = vld [vmem:[#allocation4 + $0xc8] sm:$0xff] }
  0xfe   :  { %v573_v44 = vmul.f32 0.0, %v551_v16  ;;  %879 = vmatpush.msrb.mxu0 %v5430_v50  ;;  %899 = vmatpush.msrb.mxu1 %v5432_v51  ;;  %v5438_v1 = vld [vmem:[#allocation4 + $0xa8] sm:$0xff]  ;;  %v5450_v16 = vld [vmem:[#allocation4 + $0x60] sm:$0xff] }
  0xff   :  { %v4333_v9 = vmul.f32 -1.442695, %v514_v6  ;;  %7615 = vst [vmem:[#allocation43_spill] sm:$0xff] %v5450_v16 }
 0x100   :  { %880 = vmatpush.msrb.mxu0 %v5436_v21  ;;  %900 = vmatpush.msrb.mxu1 %v5438_v1 }
 0x101   :  { %4402 = vpow2.f32 %v4333_v9 }
 0x102   :  { %4404 = vtanh.f32 %v513_v17  ;;  %881 = vmatpush.msrb.mxu0 %v5442_v32 }
 0x104   :  { %882 = vmatpush.msrb.mxu0 %v5450_v16 }
 0x107   :  { %v4403_v47 = vpop.eup %4402 }
 0x108   :  { %v557_v54 = vadd.f32 1.0, %v4403_v47  ;;  %v4405_v3 = vpop.eup %4404 }
 0x109   :  { %v574_v30 = vmul.f32 %v4405_v3, %v532_v5  ;;  %v5444_v3 = vld [vmem:[#allocation4 + $0x88] sm:$0xff]  ;;  %v308_v5 = vadd.f32 %v5358_v28, %v5397_v0 }
 0x10a   :  { %4406 = vrcp.f32 %v557_v54  ;;  %v569_v7 = vand.u32 2147483648, %v557_v54  ;;  %v567_v62 = vand.u32 2147483647, %v557_v54  ;;  %vm563_vm10 = vweird.f32 %v557_v54  ;;  %901 = vmatpush.msrb.mxu1 %v5444_v3 }
 0x10b   :  { %v5409_v2 = vadd.f32 %v574_v30, %v573_v44  ;;  %v5452_v30 = vld [vmem:[#allocation4 + $0x68] sm:$0xff] }
 0x10c   :  { %v570_v63 = vor.u32 1.1754944e-38, %v569_v7  ;;  %vm568_vm12 = vcmp.eq.f32.partialorder %v567_v62, 8.507059e+37  ;;  %902 = vmatpush.msrb.mxu1 %v5452_v30  ;;  %v5462_v7 = vld [vmem:[#allocation4 + $0x20] sm:$0xff] }
 0x10d   :  { %4408 = vtanh.f32 %v5409_v2 }
 0x110   :  { %v4407_v56 = vpop.eup %4406 }
 0x111   :  { %v559_v57 = vmul.f32 %v4407_v56, %v557_v54  ;;  %vm564_vm9 = vweird.f32 %v4407_v56 }
 0x112   :  { %vm565_vm11 = vmor %vm563_vm10, %vm564_vm9 }
 0x113   :  { %v560_v6 = vsub.f32 1.0, %v559_v57  ;;  %v4409_v41 = vpop.eup %4408  ;;  %v5456_v57 = vld [vmem:[#allocation4 + $0x40] sm:$0xff] }
 0x114   :  { %7616 = vst [vmem:[#allocation44_spill] sm:$0xff] %v5456_v57  ;;  %883 = vmatpush.msrb.mxu0 %v5456_v57 }
 0x115   :  { %v561_v9 = vmul.f32 %v4407_v56, %v560_v6  ;;  %v5458_v6 = vld [vmem:[#allocation4 + $0x48] sm:$0xff] }
 0x116   :  { %7617 = vst [vmem:[#allocation45_spill] sm:$0xff] %v5458_v6  ;;  %903 = vmatpush.msrb.mxu1 %v5458_v6  ;;  %884 = vmatpush.msrb.mxu0 %v5462_v7 }
 0x117   :  { %v562_v17 = vadd.f32 %v4407_v56, %v561_v9  ;;  %v5464_v9 = vld [vmem:[#allocation4 + $0x28] sm:$0xff] }
 0x118   :  { %904 = vmatpush.msrb.mxu1 %v5464_v9 }
 0x119   :  { %v566_v18 = vsel %vm565_vm11, %v4407_v56, %v562_v17  ;;  %v5468_v17 = vld [vmem:[#allocation4] sm:$0xff] }
 0x11a   :  { %v571_v36 = vsel %vm568_vm12, %v570_v63, %v566_v18  ;;  %v5470_v63 = vld [vmem:[#allocation4 + $0x8] sm:$0xff]  ;;  %885 = vmatpush.msrb.mxu0 %v5468_v17 }
 0x11b   :  { %v5412_v42 = vmul.f32 %v4409_v41, %v571_v36  ;;  %905 = vmatpush.msrb.mxu1 %v5470_v63 }
 0x11d   :  { %7614 = vst [vmem:[#allocation42_spill] sm:$0xff] %v5412_v42  ;;  %666 = vmatmul.f32.vlgmr.msra.gmra.mxu0 %v5412_v42  ;;  %686 = vmatmul.f32.vlgmr.msra.gmra.mxu1 %v5412_v42 }
 0x11e   :  { %706 = vmatmul.f32.vlgmr.msrb.gmra.mxu2 %v5412_v42  ;;  %726 = vmatmul.f32.vlgmr.msrb.gmra.mxu3 %v5412_v42 }
 0x19a   :  { %v667_v23 = vpop.f32.mrf.mxu0  ;;  %v687_v47 = vpop.f32.mrf.mxu1 }
 0x19b   :  { %v730_v54 = vadd.f32 %v667_v23, %v185_v45  ;;  %v731_v55 = vadd.f32 %v687_v47, %v226_v46  ;;  %v267_v23 = vadd.f32 %v5356_v27, %v5399_v4 }
 0x19d   :  { %v4334_v22 = vmul.f32 -1.442695, %v730_v54  ;;  %v4335_v31 = vmul.f32 -1.442695, %v731_v55 }
 0x19f   :  { %4410 = vpow2.f32 %v4334_v22 }
 0x1a0   :  { %4412 = vpow2.f32 %v4335_v31 }
 0x1a1   :  { %v727_v44 = vpop.f32.mrf.mxu3  ;;  %v707_v45 = vpop.f32.mrf.mxu2 }
 0x1a2   :  { %v733_v56 = vadd.f32 %v727_v44, %v308_v5  ;;  %v732_v55 = vadd.f32 %v707_v45, %v267_v23 }
 0x1a4   :  { %v4336_v28 = vmul.f32 -1.442695, %v733_v56 }
 0x1a5   :  { %v4411_v62 = vpop.eup %4410 }
 0x1a6   :  { %v4413_v18 = vpop.eup %4412  ;;  %v737_v41 = vadd.f32 1.0, %v4411_v62  ;;  %4414 = vpow2.f32 %v4336_v28 }
 0x1a7   :  { %v756_v36 = vadd.f32 1.0, %v4413_v18 }
 0x1a8   :  { %4416 = vrcp.f32 %v737_v41  ;;  %v749_v28 = vand.u32 2147483648, %v737_v41  ;;  %v747_v8 = vand.u32 2147483647, %v737_v41  ;;  %vm743_vm15 = vweird.f32 %v737_v41 }
 0x1a9   :  { %4418 = vrcp.f32 %v756_v36  ;;  %v768_v62 = vand.u32 2147483648, %v756_v36  ;;  %v766_v61 = vand.u32 2147483647, %v756_v36  ;;  %vm762_vm0 = vweird.f32 %v756_v36 }
 0x1aa   :  { %v750_v45 = vor.u32 1.1754944e-38, %v749_v28  ;;  %vm748_vm2 = vcmp.eq.f32.partialorder %v747_v8, 8.507059e+37 }
 0x1ab   :  { %vm767_vm4 = vcmp.eq.f32.partialorder %v766_v61, 8.507059e+37 }
 0x1ac   :  { %v4415_v46 = vpop.eup %4414 }
 0x1ad   :  { %v776_v47 = vadd.f32 1.0, %v4415_v46 }
 0x1ae   :  { %v4417_v54 = vpop.eup %4416 }
 0x1af   :  { %v4419_v22 = vpop.eup %4418  ;;  %v739_v31 = vmul.f32 %v4417_v54, %v737_v41  ;;  %4420 = vrcp.f32 %v776_v47  ;;  %vm744_vm13 = vweird.f32 %v4417_v54  ;;  %vm782_vm6 = vweird.f32 %v776_v47 }
 0x1b0   :  { %v758_v5 = vmul.f32 %v4419_v22, %v756_v36  ;;  %4422 = vtanh.f32 %v732_v55  ;;  %vm763_vm14 = vweird.f32 %v4419_v22  ;;  %vm745_vm1 = vmor %vm743_vm15, %vm744_vm13  ;;  %v786_v8 = vand.u32 2147483647, %v776_v47 }
 0x1b1   :  { %v740_v44 = vsub.f32 1.0, %v739_v31  ;;  %vm764_vm3 = vmor %vm762_vm0, %vm763_vm14  ;;  %v769_v31 = vor.u32 1.1754944e-38, %v768_v62  ;;  %v5502_v62 = vld [vmem:[#allocation4 + $0x1d0] sm:$0xff] }
 0x1b2   :  { %v759_v56 = vsub.f32 1.0, %v758_v5  ;;  %vm787_vm8 = vcmp.eq.f32.partialorder %v786_v8, 8.507059e+37  ;;  %v5542_v8 = vld [vmem:[#allocation4 + $0x178] sm:$0xff] }
 0x1b3   :  { %v741_v18 = vmul.f32 %v4417_v54, %v740_v44  ;;  %7627 = vst [vmem:[#allocation55_spill] sm:$0xff] %v5542_v8 }
 0x1b4   :  { %v760_v60 = vmul.f32 %v4419_v22, %v759_v56 }
 0x1b5   :  { %v4421_v20 = vpop.eup %4420  ;;  %v742_v27 = vadd.f32 %v4417_v54, %v741_v18 }
 0x1b6   :  { %v761_v46 = vadd.f32 %v4419_v22, %v760_v60  ;;  %v778_v23 = vmul.f32 %v4421_v20, %v776_v47  ;;  %v4423_v55 = vpop.eup %4422  ;;  %vm783_vm5 = vweird.f32 %v4421_v20  ;;  %v788_v60 = vand.u32 2147483648, %v776_v47  ;;  %v5500_v47 = vld [vmem:[#allocation4 + $0x1c8] sm:$0xff] }
 0x1b7   :  { %v746_v19 = vsel %vm745_vm1, %v4417_v54, %v742_v27  ;;  %vm784_vm7 = vmor %vm782_vm6, %vm783_vm5  ;;  %7624 = vst [vmem:[#allocation52_spill] sm:$0xff] %v5500_v47  ;;  %v5506_v27 = vld [vmem:[#allocation4 + $0x1d8] sm:$0xff] }
 0x1b8   :  { %v751_v5 = vsel %vm748_vm2, %v750_v45, %v746_v19  ;;  %v765_v44 = vsel %vm764_vm3, %v4419_v22, %v761_v46  ;;  %v779_v42 = vsub.f32 1.0, %v778_v23  ;;  %v789_v19 = vor.u32 1.1754944e-38, %v788_v60  ;;  %v5510_v45 = vld [vmem:[#allocation4 + $0x1a0] sm:$0xff]  ;;  %v5512_v46 = vld [vmem:[#allocation4 + $0x1a8] sm:$0xff]  ;;  %v5514_v23 = vld [vmem:[#allocation4 + $0x1b0] sm:$0xff] }
 0x1b9   :  { %v770_v56 = vsel %vm767_vm4, %v769_v31, %v765_v44  ;;  %v793_v58 = vmul.f32 %v4423_v55, %v751_v5  ;;  %v5518_v31 = vld [vmem:[#allocation4 + $0x1b8] sm:$0xff]  ;;  %v5522_v55 = vld [vmem:[#allocation4 + $0x180] sm:$0xff]  ;;  %v5524_v5 = vld [vmem:[#allocation4 + $0x188] sm:$0xff] }
 0x1ba   :  { %v792_v59 = vmul.f32 %v770_v56, %v5409_v2  ;;  %v780_v18 = vmul.f32 %v4421_v20, %v779_v42  ;;  %v5490_v2 = vld [vmem:[#allocation4 + $0x1f0] sm:$0xff]  ;;  %v5498_v42 = vld [vmem:[#allocation4 + $0x1c0] sm:$0xff]  ;;  %7625 = vst [vmem:[#allocation53_spill] sm:$0xff] %v5524_v5  ;;  %v5530_v56 = vld [vmem:[#allocation4 + $0x198] sm:$0xff] }
 0x1bb   :  { %7621 = vst [vmem:[#allocation49_spill] sm:$0xff] %v5490_v2  ;;  %1130 = vmatpush.msrb.mxu2 %v5490_v2  ;;  %v5526_v44 = vld [vmem:[#allocation4 + $0x190] sm:$0xff] }
 0x1bc   :  { %v5477_v41 = vadd.f32 %v793_v58, %v792_v59  ;;  %v781_v36 = vadd.f32 %v4421_v20, %v780_v18  ;;  %v5486_v58 = vld [vmem:[#allocation4 + $0x1e0] sm:$0xff]  ;;  %v5488_v59 = vld [vmem:[#allocation4 + $0x1e8] sm:$0xff]  ;;  %7623 = vst [vmem:[#allocation51_spill] sm:$0xff] %v5498_v42  ;;  %v5538_v60 = vld [vmem:[#allocation4 + $0x170] sm:$0xff] }
 0x1bd   :  { %7620 = vst [vmem:[#allocation48_spill] sm:$0xff] %v5486_v58  ;;  %1090 = vmatpush.msra.mxu0 %v5486_v58  ;;  %1110 = vmatpush.msra.mxu1 %v5488_v59  ;;  %v5534_v18 = vld [vmem:[#allocation4 + $0x160] sm:$0xff] }
 0x1be   :  { %7618 = vst [vmem:[#allocation46_spill] sm:$0xff] %v5477_v41  ;;  %4424 = vtanh.f32 %v5477_v41  ;;  %v785_v54 = vsel %vm784_vm7, %v4421_v20, %v781_v36  ;;  %v5494_v20 = vld [vmem:[#allocation4 + $0x1f8] sm:$0xff]  ;;  %1131 = vmatpush.msrb.mxu2 %v5502_v62  ;;  %v5536_v36 = vld [vmem:[#allocation4 + $0x168] sm:$0xff] }
 0x1bf   :  { %v790_v22 = vsel %vm787_vm8, %v789_v19, %v785_v54  ;;  %7622 = vst [vmem:[#allocation50_spill] sm:$0xff] %v5494_v20  ;;  %1150 = vmatpush.msrb.mxu3 %v5494_v20  ;;  %1091 = vmatpush.msra.mxu0 %v5498_v42  ;;  %v5546_v54 = vld [vmem:[#allocation4 + $0x140] sm:$0xff]  ;;  %v5548_v19 = vld [vmem:[#allocation4 + $0x148] sm:$0xff]  ;;  %v5596_v41 = vld [vmem:[#allocation4 + $0xd8] sm:$0xff] }
 0x1c0   :  { %1111 = vmatpush.msra.mxu1 %v5500_v47  ;;  %1132 = vmatpush.msrb.mxu2 %v5514_v23  ;;  %7626 = vst [vmem:[#allocation54_spill] sm:$0xff] %v5526_v44 }
 0x1c1   :  { %1151 = vmatpush.msrb.mxu3 %v5506_v27  ;;  %1092 = vmatpush.msra.mxu0 %v5510_v45 }
 0x1c2   :  { %1112 = vmatpush.msra.mxu1 %v5512_v46  ;;  %1133 = vmatpush.msrb.mxu2 %v5526_v44 }
 0x1c3   :  { %1152 = vmatpush.msrb.mxu3 %v5518_v31  ;;  %1093 = vmatpush.msra.mxu0 %v5522_v55 }
 0x1c4   :  { %v4425_v61 = vpop.eup %4424  ;;  %1113 = vmatpush.msra.mxu1 %v5524_v5  ;;  %1134 = vmatpush.msrb.mxu2 %v5538_v60 }
 0x1c5   :  { %v5480_v28 = vmul.f32 %v4425_v61, %v790_v22  ;;  %1153 = vmatpush.msrb.mxu3 %v5530_v56  ;;  %1094 = vmatpush.msra.mxu0 %v5534_v18  ;;  %v5550_v61 = vld [vmem:[#allocation4 + $0x150] sm:$0xff]  ;;  %v5554_v22 = vld [vmem:[#allocation4 + $0x158] sm:$0xff] }
 0x1c6   :  { %1114 = vmatpush.msra.mxu1 %v5536_v36  ;;  %7628 = vst [vmem:[#allocation56_spill] sm:$0xff] %v5550_v61  ;;  %1135 = vmatpush.msrb.mxu2 %v5550_v61 }
 0x1c7   :  { %7619 = vst [vmem:[#allocation47_spill] sm:$0xff] %v5480_v28  ;;  %886 = vmatmul.f32.vlgmr.msrb.gmra.mxu0 %v5480_v28  ;;  %906 = vmatmul.f32.vlgmr.msrb.gmra.mxu1 %v5480_v28 }
 0x1c8   :  { %926 = vmatmul.f32.vlgmr.msra.gmra.mxu2 %v5480_v28  ;;  %946 = vmatmul.f32.vlgmr.msra.gmra.mxu3 %v5480_v28  ;;  %v5558_v28 = vld [vmem:[#allocation4 + $0x120] sm:$0xff] }
 0x1c9   :  { %1154 = vmatpush.msrb.mxu3 %v5542_v8  ;;  %1095 = vmatpush.msra.mxu0 %v5546_v54 }
 0x1ca   :  { %1115 = vmatpush.msra.mxu1 %v5548_v19  ;;  %1136 = vmatpush.msrb.mxu2 %v5562_v14 }
 0x1cb   :  { %1155 = vmatpush.msrb.mxu3 %v5554_v22  ;;  %1096 = vmatpush.msra.mxu0 %v5558_v28 }
 0x1cc   :  { %1116 = vmatpush.msra.mxu1 %v5560_v15  ;;  %1137 = vmatpush.msrb.mxu2 %v5570_v53 }
 0x1cd   :  { %1156 = vmatpush.msrb.mxu3 %v5566_v52  ;;  %1097 = vmatpush.msra.mxu0 %v5418_v24 }
 0x1ce   :  { %1117 = vmatpush.msra.mxu1 %v5420_v43  ;;  %1138 = vmatpush.msrb.mxu2 %v5582_v49 }
 0x1cf   :  { %1157 = vmatpush.msrb.mxu3 %v5572_v13  ;;  %1098 = vmatpush.msra.mxu0 %v5578_v12 }
 0x1d0   :  { %1118 = vmatpush.msra.mxu1 %v5580_v48  ;;  %1139 = vmatpush.msrb.mxu2 %v5594_v34 }
 0x1d1   :  { %1158 = vmatpush.msrb.mxu3 %v5590_v38  ;;  %1099 = vmatpush.msra.mxu0 %v5430_v50 }
 0x1d2   :  { %1119 = vmatpush.msra.mxu1 %v5432_v51  ;;  %1140 = vmatpush.msrb.mxu2 %v5602_v26 }
 0x1d3   :  { %1159 = vmatpush.msrb.mxu3 %v5596_v41  ;;  %1100 = vmatpush.msra.mxu0 %v5436_v21 }
 0x1d4   :  { %1120 = vmatpush.msra.mxu1 %v5438_v1 }
 0x1d5   :  { %1160 = vmatpush.msrb.mxu3 %v5604_v40  ;;  %1101 = vmatpush.msra.mxu0 %v5442_v32 }
 0x1d6   :  { %1121 = vmatpush.msra.mxu1 %v5444_v3 }
 0x1d7   :  { %1102 = vmatpush.msra.mxu0 %v5450_v16  ;;  %v5636_v16 = vld [vmem:[#allocation4 + $0x30] sm:$0xff] }
 0x1d8   :  { %1122 = vmatpush.msra.mxu1 %v5452_v30 }
 0x1d9   :  { %1103 = vmatpush.msra.mxu0 %v5456_v57 }
 0x1da   :  { %1123 = vmatpush.msra.mxu1 %v5458_v6 }
 0x1db   :  { %1104 = vmatpush.msra.mxu0 %v5462_v7 }
 0x1dc   :  { %1124 = vmatpush.msra.mxu1 %v5464_v9 }
 0x1dd   :  { %1105 = vmatpush.msra.mxu0 %v5468_v17 }
 0x1de   :  { %1125 = vmatpush.msra.mxu1 %v5470_v63 }
 0x1df   :  { %1310 = vmatpush.msrb.mxu0 %v5486_v58 }
 0x1e0   :  { %1330 = vmatpush.msrb.mxu1 %v5488_v59 }
 0x1e1   :  { %1311 = vmatpush.msrb.mxu0 %v5498_v42 }
 0x1e2   :  { %1331 = vmatpush.msrb.mxu1 %v5500_v47 }
 0x1e3   :  { %1312 = vmatpush.msrb.mxu0 %v5510_v45 }
 0x1e4   :  { %1332 = vmatpush.msrb.mxu1 %v5512_v46 }
 0x1e5   :  { %1313 = vmatpush.msrb.mxu0 %v5522_v55 }
 0x1e6   :  { %1333 = vmatpush.msrb.mxu1 %v5524_v5 }
 0x1e7   :  { %1314 = vmatpush.msrb.mxu0 %v5534_v18 }
 0x1e8   :  { %1334 = vmatpush.msrb.mxu1 %v5536_v36 }
 0x1e9   :  { %1315 = vmatpush.msrb.mxu0 %v5546_v54 }
 0x1ea   :  { %1335 = vmatpush.msrb.mxu1 %v5548_v19 }
 0x1eb   :  { %1316 = vmatpush.msrb.mxu0 %v5558_v28 }
 0x1ec   :  { %1336 = vmatpush.msrb.mxu1 %v5560_v15 }
 0x1ed   :  { %1317 = vmatpush.msrb.mxu0 %v5418_v24 }
 0x1ee   :  { %1337 = vmatpush.msrb.mxu1 %v5420_v43  ;;  %v7637_v43 = vld [vmem:[#allocation60_spill] sm:$0xff] }
 0x1ef   :  { %1318 = vmatpush.msrb.mxu0 %v5578_v12 }
 0x1f0   :  { %1338 = vmatpush.msrb.mxu1 %v5580_v48 }
 0x1f1   :  { %1319 = vmatpush.msrb.mxu0 %v5430_v50 }
 0x1f2   :  { %1339 = vmatpush.msrb.mxu1 %v5432_v51  ;;  %v7639_v51 = vld [vmem:[#allocation43_spill] sm:$0xff] }
 0x1f3   :  { %1320 = vmatpush.msrb.mxu0 %v5436_v21 }
 0x1f4   :  { %1340 = vmatpush.msrb.mxu1 %v5438_v1 }
 0x1f5   :  { %1321 = vmatpush.msrb.mxu0 %v5442_v32  ;;  %v7642_v32 = vld [vmem:[#allocation44_spill] sm:$0xff] }
 0x1f6   :  { %1341 = vmatpush.msrb.mxu1 %v5444_v3  ;;  %v7643_v3 = vld [vmem:[#allocation45_spill] sm:$0xff] }
 0x1f7   :  { %1322 = vmatpush.msrb.mxu0 %v7639_v51 }
 0x1f8   :  { %1342 = vmatpush.msrb.mxu1 %v5452_v30  ;;  %v7645_v30 = vld [vmem:[#allocation48_spill] sm:$0xff] }
 0x1f9   :  { %1323 = vmatpush.msrb.mxu0 %v7642_v32 }
 0x1fa   :  { %1343 = vmatpush.msrb.mxu1 %v7643_v3 }
 0x1fb   :  { %1324 = vmatpush.msrb.mxu0 %v5462_v7  ;;  %v7646_v7 = vld [vmem:[#allocation49_spill] sm:$0xff] }
 0x1fc   :  { %1344 = vmatpush.msrb.mxu1 %v5464_v9  ;;  %v7647_v9 = vld [vmem:[#allocation50_spill] sm:$0xff] }
 0x1fd   :  { %1325 = vmatpush.msrb.mxu0 %v5468_v17  ;;  %v7650_v17 = vld [vmem:[#allocation53_spill] sm:$0xff] }
 0x1fe   :  { %1345 = vmatpush.msrb.mxu1 %v5470_v63  ;;  %v7651_v63 = vld [vmem:[#allocation54_spill] sm:$0xff] }
 0x244   :  { %v887_v39 = vpop.f32.mrf.mxu0  ;;  %v907_v35 = vpop.f32.mrf.mxu1 }
 0x245   :  { %v950_v25 = vadd.f32 %v887_v39, %v188_v11  ;;  %v951_v37 = vadd.f32 %v907_v35, %v229_v10  ;;  %v5610_v10 = vld [vmem:[#allocation4 + $0x90] sm:$0xff]  ;;  %v5612_v11 = vld [vmem:[#allocation4 + $0x98] sm:$0xff]  ;;  %v311_v35 = vadd.f32 %v5362_v33, %v5397_v0 }
 0x246   :  { %1141 = vmatpush.msrb.mxu2 %v5610_v10  ;;  %1161 = vmatpush.msrb.mxu3 %v5612_v11  ;;  %v5622_v39 = vld [vmem:[#allocation4 + $0x78] sm:$0xff]  ;;  %v5628_v33 = vld [vmem:[#allocation4 + $0x50] sm:$0xff] }
 0x247   :  { %v4337_v49 = vmul.f32 -1.442695, %v950_v25  ;;  %v4338_v38 = vmul.f32 -1.442695, %v951_v37  ;;  %v5620_v37 = vld [vmem:[#allocation4 + $0x70] sm:$0xff]  ;;  %7635 = vst [vmem:[#allocation63_spill] sm:$0xff] %v5622_v39 }
 0x248   :  { %7634 = vst [vmem:[#allocation62_spill] sm:$0xff] %v5620_v37  ;;  %1142 = vmatpush.msrb.mxu2 %v5620_v37  ;;  %1162 = vmatpush.msrb.mxu3 %v5622_v39  ;;  %v5642_v39 = vld [vmem:[#allocation4 + $0x10] sm:$0xff]  ;;  %v5644_v37 = vld [vmem:[#allocation4 + $0x18] sm:$0xff] }
 0x249   :  { %4426 = vpow2.f32 %v4337_v49 }
 0x24a   :  { %4428 = vpow2.f32 %v4338_v38  ;;  %v5630_v38 = vld [vmem:[#allocation4 + $0x58] sm:$0xff]  ;;  %1143 = vmatpush.msrb.mxu2 %v5628_v33 }
 0x24b   :  { %v947_v25 = vpop.f32.mrf.mxu3  ;;  %1163 = vmatpush.msrb.mxu3 %v5630_v38 }
 0x24c   :  { %v953_v49 = vadd.f32 %v947_v25, %v311_v35  ;;  %v5638_v35 = vld [vmem:[#allocation4 + $0x38] sm:$0xff]  ;;  %1144 = vmatpush.msrb.mxu2 %v5636_v16 }
 0x24d   :  { %1164 = vmatpush.msrb.mxu3 %v5638_v35 }
 0x24e   :  { %v4339_v0 = vmul.f32 -1.442695, %v953_v49  ;;  %1145 = vmatpush.msrb.mxu2 %v5642_v39 }
 0x24f   :  { %v4427_v25 = vpop.eup %4426  ;;  %1165 = vmatpush.msrb.mxu3 %v5644_v37  ;;  %v7640_v1 = vld [vmem:[#allocation62_spill] sm:$0xff] }
 0x250   :  { %v4429_v57 = vpop.eup %4428  ;;  %v5646_v6 = vadd.f32 1.0, %v4427_v25  ;;  %4430 = vpow2.f32 %v4339_v0  ;;  %1350 = vmatpush.msra.mxu2 %v5490_v2  ;;  %v927_v0 = vpop.f32.mrf.mxu2  ;;  %v270_v25 = vadd.f32 %v5360_v29, %v5399_v4 }
 0x251   :  { %v5650_v49 = vadd.f32 1.0, %v4429_v57  ;;  %1370 = vmatpush.msra.mxu3 %v5494_v20 }
 0x252   :  { %4432 = vrcp.f32 %v5646_v6  ;;  %1351 = vmatpush.msra.mxu2 %v5502_v62  ;;  %v952_v2 = vadd.f32 %v927_v0, %v270_v25  ;;  %v969_v25 = vand.u32 2147483648, %v5646_v6  ;;  %vm963_vm11 = vweird.f32 %v5646_v6 }
 0x253   :  { %4434 = vrcp.f32 %v5650_v49  ;;  %1371 = vmatpush.msra.mxu3 %v5506_v27  ;;  %v988_v4 = vand.u32 2147483648, %v5650_v49  ;;  %vm982_vm12 = vweird.f32 %v5650_v49 }
 0x254   :  { %1352 = vmatpush.msra.mxu2 %v5514_v23 }
 0x255   :  { %1372 = vmatpush.msra.mxu3 %v5518_v31 }
 0x256   :  { %v4431_v57 = vpop.eup %4430  ;;  %1353 = vmatpush.msra.mxu2 %v5526_v44  ;;  %v967_v44 = vand.u32 2147483647, %v5646_v6 }
 0x257   :  { %v5668_v58 = vadd.f32 1.0, %v4431_v57  ;;  %1373 = vmatpush.msra.mxu3 %v5530_v56 }
 0x258   :  { %v4433_v20 = vpop.eup %4432  ;;  %1354 = vmatpush.msra.mxu2 %v5538_v60  ;;  %vm968_vm14 = vcmp.eq.f32.partialorder %v967_v44, 8.507059e+37  ;;  %v7638_v44 = vld [vmem:[#allocation61_spill] sm:$0xff] }
 0x259   :  { %v4435_v47 = vpop.eup %4434  ;;  %v959_v42 = vmul.f32 %v4433_v20, %v5646_v6  ;;  %4436 = vrcp.f32 %v5668_v58  ;;  %1374 = vmatpush.msra.mxu3 %v5542_v8  ;;  %vm964_vm9 = vweird.f32 %v4433_v20  ;;  %v989_v6 = vor.u32 1.1754944e-38, %v988_v4  ;;  %v7636_v4 = vld [vmem:[#allocation46_spill] sm:$0xff] }
 0x25a   :  { %v978_v29 = vmul.f32 %v4435_v47, %v5650_v49  ;;  %4438 = vtanh.f32 %v952_v2  ;;  %vm983_vm10 = vweird.f32 %v4435_v47  ;;  %1355 = vmatpush.msra.mxu2 %v5550_v61  ;;  %vm965_vm13 = vmor %vm963_vm11, %vm964_vm9  ;;  %vm1002_vm2 = vweird.f32 %v5668_v58 }
 0x25b   :  { %v960_v0 = vsub.f32 1.0, %v959_v42  ;;  %1375 = vmatpush.msra.mxu3 %v5554_v22  ;;  %vm984_vm15 = vmor %vm982_vm12, %vm983_vm10 }
 0x25c   :  { %v979_v57 = vsub.f32 1.0, %v978_v29  ;;  %v986_v29 = vand.u32 2147483647, %v5650_v49  ;;  %1356 = vmatpush.msra.mxu2 %v5562_v14 }
 0x25d   :  { %v961_v5 = vmul.f32 %v4433_v20, %v960_v0  ;;  %v970_v0 = vor.u32 1.1754944e-38, %v969_v25  ;;  %1376 = vmatpush.msra.mxu3 %v5566_v52 }
 0x25e   :  { %v980_v42 = vmul.f32 %v4435_v47, %v979_v57  ;;  %vm987_vm0 = vcmp.eq.f32.partialorder %v986_v29, 8.507059e+37  ;;  %1357 = vmatpush.msra.mxu2 %v5570_v53 }
 0x25f   :  { %v5693_v2 = vpop.eup %4436  ;;  %v962_v8 = vadd.f32 %v4433_v20, %v961_v5  ;;  %1377 = vmatpush.msra.mxu3 %v5572_v13 }
 0x260   :  { %v981_v57 = vadd.f32 %v4435_v47, %v980_v42  ;;  %v998_v61 = vmul.f32 %v5693_v2, %v5668_v58  ;;  %v4439_v49 = vpop.eup %4438  ;;  %1358 = vmatpush.msra.mxu2 %v7637_v43  ;;  %vm1003_vm1 = vweird.f32 %v5693_v2 }
 0x261   :  { %v966_v5 = vsel %vm965_vm13, %v4433_v20, %v962_v8  ;;  %1378 = vmatpush.msra.mxu3 %v7638_v44  ;;  %vm1004_vm3 = vmor %vm1002_vm2, %vm1003_vm1  ;;  %v7641_v8 = vld [vmem:[#allocation63_spill] sm:$0xff] }
 0x262   :  { %v971_v15 = vsel %vm968_vm14, %v970_v0, %v966_v5  ;;  %v985_v25 = vsel %vm984_vm15, %v4435_v47, %v981_v57  ;;  %v999_v42 = vsub.f32 1.0, %v998_v61  ;;  %1359 = vmatpush.msra.mxu2 %v5594_v34  ;;  %v7649_v0 = vld [vmem:[#allocation52_spill] sm:$0xff]  ;;  %v7664_v57 = vld [vmem:[#allocation29_spill] sm:$0xff] }
 0x263   :  { %v990_v14 = vsel %vm987_vm0, %v989_v6, %v985_v25  ;;  %v1013_v52 = vmul.f32 %v4439_v49, %v971_v15  ;;  %1379 = vmatpush.msra.mxu3 %v5596_v41 }
 0x264   :  { %v1012_v20 = vmul.f32 %v990_v14, %v7636_v4  ;;  %v1000_v24 = vmul.f32 %v5693_v2, %v999_v42  ;;  %v1008_v14 = vand.u32 2147483648, %v5668_v58  ;;  %1360 = vmatpush.msra.mxu2 %v5602_v26 }
 0x265   :  { %1380 = vmatpush.msra.mxu3 %v5604_v40 }
 0x266   :  { %v5717_v47 = vadd.f32 %v1013_v52, %v1012_v20  ;;  %v1001_v15 = vadd.f32 %v5693_v2, %v1000_v24  ;;  %v1006_v52 = vand.u32 2147483647, %v5668_v58  ;;  %1361 = vmatpush.msra.mxu2 %v5610_v10  ;;  %v1009_v21 = vor.u32 1.1754944e-38, %v1008_v14 }
 0x267   :  { %1381 = vmatpush.msra.mxu3 %v5612_v11 }
 0x268   :  { %4440 = vtanh.f32 %v5717_v47  ;;  %v1005_v50 = vsel %vm1004_vm3, %v5693_v2, %v1001_v15  ;;  %1362 = vmatpush.msra.mxu2 %v7640_v1  ;;  %vm1007_vm4 = vcmp.eq.f32.partialorder %v1006_v52, 8.507059e+37  ;;  %v7648_v2 = vld [vmem:[#allocation51_spill] sm:$0xff] }
 0x269   :  { %1382 = vmatpush.msra.mxu3 %v7641_v8  ;;  %v1010_v61 = vsel %vm1007_vm4, %v1009_v21, %v1005_v50 }
 0x26a   :  { %1363 = vmatpush.msra.mxu2 %v5628_v33 }
 0x26b   :  { %1383 = vmatpush.msra.mxu3 %v5630_v38 }
 0x26c   :  { %1364 = vmatpush.msra.mxu2 %v5636_v16 }
 0x26d   :  { %1384 = vmatpush.msra.mxu3 %v5638_v35 }
 0x26e   :  { %v4441_v58 = vpop.eup %4440  ;;  %1365 = vmatpush.msra.mxu2 %v5642_v39 }
 0x26f   :  { %v5744_v29 = vmul.f32 %v4441_v58, %v1010_v61  ;;  %1385 = vmatpush.msra.mxu3 %v5644_v37 }
 0x271   :  { %7644 = vst [vmem:[#allocation46_spill] sm:$0xff] %v5744_v29  ;;  %1106 = vmatmul.f32.vlgmr.msra.gmra.mxu0 %v5744_v29  ;;  %1126 = vmatmul.f32.vlgmr.msra.gmra.mxu1 %v5744_v29 }
 0x272   :  { %1146 = vmatmul.f32.vlgmr.msrb.gmra.mxu2 %v5744_v29  ;;  %1166 = vmatmul.f32.vlgmr.msrb.gmra.mxu3 %v5744_v29 }
 0x273   :  { %1530 = vmatpush.msra.mxu0 %v7645_v30  ;;  %1550 = vmatpush.msra.mxu1 %v5488_v59  ;;  %v7652_v59 = vld [vmem:[#allocation55_spill] sm:$0xff] }
 0x274   :  { %1570 = vmatpush.msrb.mxu2 %v7646_v7  ;;  %1590 = vmatpush.msrb.mxu3 %v7647_v9 }
 0x275   :  { %1531 = vmatpush.msra.mxu0 %v7648_v2  ;;  %1551 = vmatpush.msra.mxu1 %v7649_v0 }
 0x276   :  { %1571 = vmatpush.msrb.mxu2 %v5502_v62  ;;  %1591 = vmatpush.msrb.mxu3 %v5506_v27  ;;  %v7653_v62 = vld [vmem:[#allocation56_spill] sm:$0xff]  ;;  %v7654_v27 = vld [vmem:[#allocation57_spill] sm:$0xff] }
 0x277   :  { %1532 = vmatpush.msra.mxu0 %v5510_v45  ;;  %1552 = vmatpush.msra.mxu1 %v5512_v46  ;;  %v7655_v45 = vld [vmem:[#allocation58_spill] sm:$0xff]  ;;  %v7656_v46 = vld [vmem:[#allocation59_spill] sm:$0xff] }
 0x278   :  { %1572 = vmatpush.msrb.mxu2 %v5514_v23  ;;  %1592 = vmatpush.msrb.mxu3 %v5518_v31 }
 0x279   :  { %1533 = vmatpush.msra.mxu0 %v5522_v55  ;;  %1553 = vmatpush.msra.mxu1 %v7650_v17 }
 0x27a   :  { %1573 = vmatpush.msrb.mxu2 %v7651_v63  ;;  %1593 = vmatpush.msrb.mxu3 %v5530_v56 }
 0x27b   :  { %1534 = vmatpush.msra.mxu0 %v5534_v18  ;;  %1554 = vmatpush.msra.mxu1 %v5536_v36 }
 0x27c   :  { %1574 = vmatpush.msrb.mxu2 %v5538_v60  ;;  %1594 = vmatpush.msrb.mxu3 %v7652_v59  ;;  %v7662_v60 = vld [vmem:[#allocation30_spill] sm:$0xff] }
 0x27d   :  { %1535 = vmatpush.msra.mxu0 %v5546_v54  ;;  %1555 = vmatpush.msra.mxu1 %v5548_v19 }
 0x27e   :  { %1575 = vmatpush.msrb.mxu2 %v7653_v62  ;;  %1595 = vmatpush.msrb.mxu3 %v5554_v22 }
 0x27f   :  { %1536 = vmatpush.msra.mxu0 %v5558_v28  ;;  %1556 = vmatpush.msra.mxu1 %v7654_v27 }
 0x280   :  { %1576 = vmatpush.msrb.mxu2 %v7655_v45  ;;  %1596 = vmatpush.msrb.mxu3 %v7656_v46 }
 0x282   :  { %1577 = vmatpush.msrb.mxu2 %v5570_v53  ;;  %1597 = vmatpush.msrb.mxu3 %v5572_v13  ;;  %v7657_v13 = vld [vmem:[#allocation28_spill] sm:$0xff]  ;;  %v7659_v53 = vld [vmem:[#allocation31_spill] sm:$0xff] }
 0x284   :  { %1578 = vmatpush.msrb.mxu2 %v7637_v43  ;;  %1598 = vmatpush.msrb.mxu3 %v7638_v44 }
 0x286   :  { %1579 = vmatpush.msrb.mxu2 %v5594_v34  ;;  %1599 = vmatpush.msrb.mxu3 %v5596_v41  ;;  %v7658_v34 = vld [vmem:[#allocation26_spill] sm:$0xff]  ;;  %v7660_v41 = vld [vmem:[#allocation27_spill] sm:$0xff] }
 0x287   :  { %v232_v28 = vadd.f32 %v7660_v41, %v7659_v53 }
 0x288   :  { %1580 = vmatpush.msrb.mxu2 %v5602_v26  ;;  %1600 = vmatpush.msrb.mxu3 %v5604_v40  ;;  %v191_v40 = vadd.f32 %v7658_v34, %v7657_v13 }
 0x28a   :  { %1581 = vmatpush.msrb.mxu2 %v5610_v10  ;;  %1601 = vmatpush.msrb.mxu3 %v5612_v11 }
 0x28c   :  { %1582 = vmatpush.msrb.mxu2 %v7640_v1  ;;  %1602 = vmatpush.msrb.mxu3 %v7641_v8 }
 0x28e   :  { %1583 = vmatpush.msrb.mxu2 %v5628_v33  ;;  %1603 = vmatpush.msrb.mxu3 %v5630_v38 }
 0x290   :  { %1584 = vmatpush.msrb.mxu2 %v5636_v16  ;;  %1604 = vmatpush.msrb.mxu3 %v5638_v35  ;;  %v7661_v16 = vld [vmem:[#allocation40_spill] sm:$0xff]  ;;  %v7663_v35 = vld [vmem:[#allocation41_spill] sm:$0xff] }
 0x291   :  { %v314_v54 = vadd.f32 %v7662_v60, %v7661_v16  ;;  %v273_v5 = vadd.f32 %v7664_v57, %v7663_v35 }
 0x292   :  { %1585 = vmatpush.msrb.mxu2 %v5642_v39  ;;  %1605 = vmatpush.msrb.mxu3 %v5644_v37 }
 0x2ee   :  { %v1107_v23 = vpop.f32.mrf.mxu0  ;;  %v1127_v31 = vpop.f32.mrf.mxu1 }
 0x2ef   :  { %v1170_v55 = vadd.f32 %v1107_v23, %v191_v40  ;;  %v1171_v56 = vadd.f32 %v1127_v31, %v232_v28  ;;  %v5824_v31 = vld [vmem:[#allocation4 + $0x108] sm:$0xff] }
 0x2f0   :  { %1557 = vmatpush.msra.mxu1 %v5824_v31 }
 0x2f1   :  { %v4340_v18 = vmul.f32 -1.442695, %v1170_v55  ;;  %v4341_v36 = vmul.f32 -1.442695, %v1171_v56  ;;  %v7666_v55 = vld [vmem:[#allocation18_spill] sm:$0xff] }
 0x2f2   :  { %v194_v56 = vadd.f32 %v7666_v55, %v7657_v13  ;;  %1558 = vmatpush.msra.mxu1 %v5580_v48  ;;  %v5846_v48 = vld [vmem:[#allocation4 + $0x80] sm:$0xff] }
 0x2f3   :  { %4442 = vpow2.f32 %v4340_v18  ;;  %v7667_v18 = vld [vmem:[#allocation19_spill] sm:$0xff] }
 0x2f4   :  { %4444 = vpow2.f32 %v4341_v36  ;;  %v235_v36 = vadd.f32 %v7667_v18, %v7659_v53 }
 0x2f5   :  { %v1167_v19 = vpop.f32.mrf.mxu3  ;;  %v1147_v33 = vpop.f32.mrf.mxu2 }
 0x2f6   :  { %v1173_v22 = vadd.f32 %v1167_v19, %v314_v54  ;;  %v1172_v25 = vadd.f32 %v1147_v33, %v273_v5  ;;  %v5834_v19 = vld [vmem:[#allocation4 + $0xc0] sm:$0xff]  ;;  %v5848_v33 = vld [vmem:[#allocation4 + $0x88] sm:$0xff] }
 0x2f7   :  { %v5854_v5 = vld [vmem:[#allocation4 + $0x60] sm:$0xff] }
 0x2f8   :  { %v4342_v26 = vmul.f32 -1.442695, %v1173_v22  ;;  %v5836_v22 = vld [vmem:[#allocation4 + $0xc8] sm:$0xff]  ;;  %7669 = vst [vmem:[#allocation61_spill] sm:$0xff] %v5854_v5 }
 0x2f9   :  { %v4443_v10 = vpop.eup %4442  ;;  %1559 = vmatpush.msra.mxu1 %v5836_v22 }
 0x2fa   :  { %v4445_v11 = vpop.eup %4444  ;;  %v1177_v37 = vadd.f32 1.0, %v4443_v10  ;;  %4446 = vpow2.f32 %v4342_v26 }
 0x2fb   :  { %v1196_v39 = vadd.f32 1.0, %v4445_v11  ;;  %v5840_v11 = vld [vmem:[#allocation4 + $0xa0] sm:$0xff] }
 0x2fc   :  { %4448 = vrcp.f32 %v1177_v37  ;;  %v1189_v44 = vand.u32 2147483648, %v1177_v37  ;;  %v1187_v52 = vand.u32 2147483647, %v1177_v37  ;;  %vm1183_vm7 = vweird.f32 %v1177_v37 }
 0x2fd   :  { %4450 = vrcp.f32 %v1196_v39  ;;  %v1208_v15 = vand.u32 2147483648, %v1196_v39  ;;  %v1206_v51 = vand.u32 2147483647, %v1196_v39  ;;  %vm1202_vm8 = vweird.f32 %v1196_v39 }
 0x2fe   :  { %v1190_v8 = vor.u32 1.1754944e-38, %v1189_v44  ;;  %vm1188_vm10 = vcmp.eq.f32.partialorder %v1187_v52, 8.507059e+37 }
 0x2ff   :  { %v1209_v61 = vor.u32 1.1754944e-38, %v1208_v15  ;;  %vm1207_vm12 = vcmp.eq.f32.partialorder %v1206_v51, 8.507059e+37  ;;  %v5872_v15 = vld [vmem:[#allocation4] sm:$0xff] }
 0x300   :  { %v4447_v38 = vpop.eup %4446 }
 0x301   :  { %v1216_v6 = vadd.f32 1.0, %v4447_v38  ;;  %v7668_v38 = vld [vmem:[#allocation33_spill] sm:$0xff] }
 0x302   :  { %v4449_v49 = vpop.eup %4448  ;;  %v317_v57 = vadd.f32 %v7668_v38, %v7661_v16 }
 0x303   :  { %v4451_v42 = vpop.eup %4450  ;;  %v1179_v4 = vmul.f32 %v4449_v49, %v1177_v37  ;;  %4452 = vrcp.f32 %v1216_v6  ;;  %vm1184_vm5 = vweird.f32 %v4449_v49  ;;  %v1228_v45 = vand.u32 2147483648, %v1216_v6  ;;  %v5842_v37 = vld [vmem:[#allocation4 + $0xa8] sm:$0xff] }
 0x304   :  { %v1198_v20 = vmul.f32 %v4451_v42, %v1196_v39  ;;  %4454 = vtanh.f32 %v1172_v25  ;;  %vm1203_vm6 = vweird.f32 %v4451_v42  ;;  %vm1185_vm9 = vmor %vm1183_vm7, %vm1184_vm5  ;;  %vm1222_vm14 = vweird.f32 %v1216_v6  ;;  %1560 = vmatpush.msra.mxu1 %v5842_v37 }
 0x305   :  { %v1180_v24 = vsub.f32 1.0, %v1179_v4  ;;  %vm1204_vm11 = vmor %vm1202_vm8, %vm1203_vm6  ;;  %v1226_v46 = vand.u32 2147483647, %v1216_v6  ;;  %v1229_v40 = vor.u32 1.1754944e-38, %v1228_v45  ;;  %v5862_v4 = vld [vmem:[#allocation4 + $0x48] sm:$0xff] }
 0x306   :  { %v1199_v43 = vsub.f32 1.0, %v1198_v20  ;;  %1561 = vmatpush.msra.mxu1 %v5848_v33  ;;  %7671 = vst [vmem:[#allocation62_spill] sm:$0xff] %v5862_v4 }
 0x307   :  { %v1181_v14 = vmul.f32 %v4449_v49, %v1180_v24  ;;  %vm1227_vm0 = vcmp.eq.f32.partialorder %v1226_v46, 8.507059e+37  ;;  %v5866_v24 = vld [vmem:[#allocation4 + $0x20] sm:$0xff] }
 0x308   :  { %v1200_v50 = vmul.f32 %v4451_v42, %v1199_v43  ;;  %v5868_v43 = vld [vmem:[#allocation4 + $0x28] sm:$0xff] }
 0x309   :  { %v4453_v21 = vpop.eup %4452  ;;  %v1182_v1 = vadd.f32 %v4449_v49, %v1181_v14  ;;  %v5874_v14 = vld [vmem:[#allocation4 + $0x8] sm:$0xff] }
 0x30a   :  { %v1201_v32 = vadd.f32 %v4451_v42, %v1200_v50  ;;  %v1218_v3 = vmul.f32 %v4453_v21, %v1216_v6  ;;  %v4455_v30 = vpop.eup %4454  ;;  %vm1223_vm13 = vweird.f32 %v4453_v21  ;;  %v5856_v6 = vld [vmem:[#allocation4 + $0x68] sm:$0xff] }
 0x30b   :  { %v1186_v58 = vsel %vm1185_vm9, %v4449_v49, %v1182_v1  ;;  %vm1224_vm15 = vmor %vm1222_vm14, %vm1223_vm13  ;;  %1562 = vmatpush.msra.mxu1 %v5856_v6 }
 0x30c   :  { %v1191_v7 = vsel %vm1188_vm10, %v1190_v8, %v1186_v58  ;;  %v1205_v9 = vsel %vm1204_vm11, %v4451_v42, %v1201_v32  ;;  %v1219_v2 = vsub.f32 1.0, %v1218_v3  ;;  %v5860_v42 = vld [vmem:[#allocation4 + $0x40] sm:$0xff]  ;;  %v7672_v8 = vld [vmem:[#allocation32_spill] sm:$0xff] }
 0x30d   :  { %v1210_v0 = vsel %vm1207_vm12, %v1209_v61, %v1205_v9  ;;  %v1233_v17 = vmul.f32 %v4455_v30, %v1191_v7  ;;  %7670 = vst [vmem:[#allocation43_spill] sm:$0xff] %v5860_v42  ;;  %1563 = vmatpush.msra.mxu1 %v5862_v4  ;;  %v276_v32 = vadd.f32 %v7672_v8, %v7663_v35  ;;  %v5894_v8 = vld [vmem:[#allocation4 + $0x1f0] sm:$0xff] }
 0x30e   :  { %v1232_v63 = vmul.f32 %v1210_v0, %v5717_v47  ;;  %v1220_v59 = vmul.f32 %v4453_v21, %v1219_v2  ;;  %v5822_v47 = vld [vmem:[#allocation4 + $0x100] sm:$0xff] }
 0x30f   :  { %1537 = vmatpush.msra.mxu0 %v5822_v47  ;;  %1564 = vmatpush.msra.mxu1 %v5868_v43 }
 0x310   :  { %v5813_v62 = vadd.f32 %v1233_v17, %v1232_v63  ;;  %v1221_v27 = vadd.f32 %v4453_v21, %v1220_v59 }
 0x311   :  { %1538 = vmatpush.msra.mxu0 %v5578_v12  ;;  %1565 = vmatpush.msra.mxu1 %v5874_v14 }
 0x312   :  { %4456 = vtanh.f32 %v5813_v62  ;;  %v1225_v34 = vsel %vm1224_vm15, %v4453_v21, %v1221_v27 }
 0x313   :  { %v1230_v28 = vsel %vm1227_vm0, %v1229_v40, %v1225_v34  ;;  %1539 = vmatpush.msra.mxu0 %v5834_v19 }
 0x315   :  { %1540 = vmatpush.msra.mxu0 %v5840_v11 }
 0x317   :  { %1541 = vmatpush.msra.mxu0 %v5846_v48 }
 0x318   :  { %v4457_v41 = vpop.eup %4456 }
 0x319   :  { %v5816_v23 = vmul.f32 %v4457_v41, %v1230_v28  ;;  %1542 = vmatpush.msra.mxu0 %v5854_v5 }
 0x31b   :  { %7665 = vst [vmem:[#allocation60_spill] sm:$0xff] %v5816_v23  ;;  %1326 = vmatmul.f32.vlgmr.msrb.gmra.mxu0 %v5816_v23  ;;  %1346 = vmatmul.f32.vlgmr.msrb.gmra.mxu1 %v5816_v23 }
 0x31c   :  { %1366 = vmatmul.f32.vlgmr.msra.gmra.mxu2 %v5816_v23  ;;  %1386 = vmatmul.f32.vlgmr.msra.gmra.mxu3 %v5816_v23  ;;  %v6000_v23 = vld [vmem:[#allocation4 + $0xd8] sm:$0xff] }
 0x31d   :  { %1543 = vmatpush.msra.mxu0 %v5860_v42  ;;  %1790 = vmatpush.msra.mxu2 %v5894_v8 }
 0x31f   :  { %1544 = vmatpush.msra.mxu0 %v5866_v24 }
 0x321   :  { %1545 = vmatpush.msra.mxu0 %v5872_v15 }
 0x398   :  { %v1327_v60 = vpop.f32.mrf.mxu0  ;;  %v1347_v54 = vpop.f32.mrf.mxu1 }
 0x399   :  { %v1390_v26 = vadd.f32 %v1327_v60, %v194_v56  ;;  %v1391_v10 = vadd.f32 %v1347_v54, %v235_v36 }
 0x39b   :  { %v4343_v39 = vmul.f32 -1.442695, %v1390_v26  ;;  %v4344_v12 = vmul.f32 -1.442695, %v1391_v10 }
 0x39d   :  { %4458 = vpow2.f32 %v4343_v39 }
 0x39e   :  { %4460 = vpow2.f32 %v4344_v12 }
 0x39f   :  { %v1387_v49 = vpop.f32.mrf.mxu3  ;;  %v1367_v21 = vpop.f32.mrf.mxu2 }
 0x3a0   :  { %v1393_v25 = vadd.f32 %v1387_v49, %v317_v57  ;;  %v1392_v61 = vadd.f32 %v1367_v21, %v276_v32  ;;  %v5898_v32 = vld [vmem:[#allocation4 + $0x1f8] sm:$0xff] }
 0x3a1   :  { %1810 = vmatpush.msra.mxu3 %v5898_v32 }
 0x3a2   :  { %v4345_v20 = vmul.f32 -1.442695, %v1393_v25 }
 0x3a3   :  { %v4459_v44 = vpop.eup %4458 }
 0x3a4   :  { %v4461_v52 = vpop.eup %4460  ;;  %v1397_v50 = vadd.f32 1.0, %v4459_v44  ;;  %4462 = vpow2.f32 %v4345_v20 }
 0x3a5   :  { %v1416_v51 = vadd.f32 1.0, %v4461_v52 }
 0x3a6   :  { %4464 = vrcp.f32 %v1397_v50  ;;  %v1409_v17 = vand.u32 2147483648, %v1397_v50  ;;  %v1407_v27 = vand.u32 2147483647, %v1397_v50  ;;  %vm1403_vm3 = vweird.f32 %v1397_v50 }
 0x3a7   :  { %4466 = vrcp.f32 %v1416_v51  ;;  %v1428_v63 = vand.u32 2147483648, %v1416_v51  ;;  %v1426_v46 = vand.u32 2147483647, %v1416_v51  ;;  %vm1422_vm4 = vweird.f32 %v1416_v51 }
 0x3a8   :  { %v1410_v41 = vor.u32 1.1754944e-38, %v1409_v17  ;;  %vm1408_vm6 = vcmp.eq.f32.partialorder %v1407_v27, 8.507059e+37  ;;  %v5926_v17 = vld [vmem:[#allocation4 + $0x180] sm:$0xff]  ;;  %v5934_v27 = vld [vmem:[#allocation4 + $0x198] sm:$0xff] }
 0x3a9   :  { %v1429_v18 = vor.u32 1.1754944e-38, %v1428_v63  ;;  %vm1427_vm8 = vcmp.eq.f32.partialorder %v1426_v46, 8.507059e+37  ;;  %v5928_v63 = vld [vmem:[#allocation4 + $0x188] sm:$0xff] }
 0x3aa   :  { %v4463_v1 = vpop.eup %4462  ;;  %v5940_v46 = vld [vmem:[#allocation4 + $0x168] sm:$0xff] }
 0x3ab   :  { %v1436_v3 = vadd.f32 1.0, %v4463_v1  ;;  %v5892_v1 = vld [vmem:[#allocation4 + $0x1e8] sm:$0xff] }
 0x3ac   :  { %v4465_v58 = vpop.eup %4464  ;;  %1770 = vmatpush.msrb.mxu1 %v5892_v1 }
 0x3ad   :  { %v4467_v30 = vpop.eup %4466  ;;  %v1399_v7 = vmul.f32 %v4465_v58, %v1397_v50  ;;  %4468 = vrcp.f32 %v1436_v3  ;;  %vm1404_vm1 = vweird.f32 %v4465_v58  ;;  %v1448_v25 = vand.u32 2147483648, %v1436_v3 }
 0x3ae   :  { %v1418_v9 = vmul.f32 %v4467_v30, %v1416_v51  ;;  %4470 = vtanh.f32 %v1392_v61  ;;  %vm1423_vm2 = vweird.f32 %v4467_v30  ;;  %vm1405_vm5 = vmor %vm1403_vm3, %vm1404_vm1  ;;  %vm1442_vm10 = vweird.f32 %v1436_v3  ;;  %v5906_v61 = vld [vmem:[#allocation4 + $0x1d0] sm:$0xff] }
 0x3af   :  { %v1400_v2 = vsub.f32 1.0, %v1399_v7  ;;  %vm1424_vm7 = vmor %vm1422_vm4, %vm1423_vm2  ;;  %v1446_v20 = vand.u32 2147483647, %v1436_v3  ;;  %v1449_v52 = vor.u32 1.1754944e-38, %v1448_v25  ;;  %1791 = vmatpush.msra.mxu2 %v5906_v61  ;;  %v5914_v7 = vld [vmem:[#allocation4 + $0x1a0] sm:$0xff] }
 0x3b0   :  { %v1419_v0 = vsub.f32 1.0, %v1418_v9  ;;  %v5916_v9 = vld [vmem:[#allocation4 + $0x1a8] sm:$0xff] }
 0x3b1   :  { %v1401_v59 = vmul.f32 %v4465_v58, %v1400_v2  ;;  %vm1447_vm12 = vcmp.eq.f32.partialorder %v1446_v20, 8.507059e+37  ;;  %v5918_v2 = vld [vmem:[#allocation4 + $0x1b0] sm:$0xff]  ;;  %v7675_v20 = vld [vmem:[#allocation21_spill] sm:$0xff] }
 0x3b2   :  { %v1420_v45 = vmul.f32 %v4467_v30, %v1419_v0  ;;  %v5922_v0 = vld [vmem:[#allocation4 + $0x1b8] sm:$0xff]  ;;  %1792 = vmatpush.msra.mxu2 %v5918_v2 }
 0x3b3   :  { %v4469_v34 = vpop.eup %4468  ;;  %v1402_v40 = vadd.f32 %v4465_v58, %v1401_v59  ;;  %v5930_v59 = vld [vmem:[#allocation4 + $0x190] sm:$0xff] }
 0x3b4   :  { %v1421_v28 = vadd.f32 %v4467_v30, %v1420_v45  ;;  %v1438_v55 = vmul.f32 %v4469_v34, %v1436_v3  ;;  %v4471_v36 = vpop.eup %4470  ;;  %vm1443_vm9 = vweird.f32 %v4469_v34  ;;  %v5902_v3 = vld [vmem:[#allocation4 + $0x1c0] sm:$0xff]  ;;  %1793 = vmatpush.msra.mxu2 %v5930_v59 }
 0x3b5   :  { %v1406_v56 = vsel %vm1405_vm5, %v4465_v58, %v1402_v40  ;;  %vm1444_vm11 = vmor %vm1442_vm10, %vm1443_vm9  ;;  %v5904_v58 = vld [vmem:[#allocation4 + $0x1c8] sm:$0xff]  ;;  %v5938_v45 = vld [vmem:[#allocation4 + $0x160] sm:$0xff] }
 0x3b6   :  { %v1411_v60 = vsel %vm1408_vm6, %v1410_v41, %v1406_v56  ;;  %v1425_v54 = vsel %vm1424_vm7, %v4467_v30, %v1421_v28  ;;  %v1439_v26 = vsub.f32 1.0, %v1438_v55  ;;  %1771 = vmatpush.msrb.mxu1 %v5904_v58  ;;  %v5910_v30 = vld [vmem:[#allocation4 + $0x1d8] sm:$0xff]  ;;  %v5950_v41 = vld [vmem:[#allocation4 + $0x140] sm:$0xff]  ;;  %v5952_v28 = vld [vmem:[#allocation4 + $0x148] sm:$0xff] }
 0x3b7   :  { %v1430_v10 = vsel %vm1427_vm8, %v1429_v18, %v1425_v54  ;;  %v1453_v39 = vmul.f32 %v4471_v36, %v1411_v60  ;;  %1811 = vmatpush.msra.mxu3 %v5910_v30  ;;  %v5946_v40 = vld [vmem:[#allocation4 + $0x178] sm:$0xff]  ;;  %v5954_v55 = vld [vmem:[#allocation4 + $0x150] sm:$0xff]  ;;  %v5962_v18 = vld [vmem:[#allocation4 + $0x120] sm:$0xff] }
 0x3b8   :  { %v1452_v12 = vmul.f32 %v1430_v10, %v5813_v62  ;;  %v1440_v38 = vmul.f32 %v4469_v34, %v1439_v26  ;;  %v5890_v62 = vld [vmem:[#allocation4 + $0x1e0] sm:$0xff]  ;;  %1772 = vmatpush.msrb.mxu1 %v5916_v9  ;;  %v5958_v56 = vld [vmem:[#allocation4 + $0x158] sm:$0xff]  ;;  %v5964_v36 = vld [vmem:[#allocation4 + $0x128] sm:$0xff] }
 0x3b9   :  { %1750 = vmatpush.msrb.mxu0 %v5890_v62  ;;  %1812 = vmatpush.msra.mxu3 %v5922_v0  ;;  %v5966_v60 = vld [vmem:[#allocation4 + $0x130] sm:$0xff]  ;;  %v5970_v54 = vld [vmem:[#allocation4 + $0x138] sm:$0xff] }
 0x3ba   :  { %v5881_v57 = vadd.f32 %v1453_v39, %v1452_v12  ;;  %v1441_v49 = vadd.f32 %v4469_v34, %v1440_v38  ;;  %1773 = vmatpush.msrb.mxu1 %v5928_v63  ;;  %v5974_v26 = vld [vmem:[#allocation4 + $0x110] sm:$0xff]  ;;  %v5976_v10 = vld [vmem:[#allocation4 + $0x118] sm:$0xff]  ;;  %v5982_v39 = vld [vmem:[#allocation4 + $0xe0] sm:$0xff] }
 0x3bb   :  { %1751 = vmatpush.msrb.mxu0 %v5902_v3  ;;  %1813 = vmatpush.msra.mxu3 %v5934_v27  ;;  %v5984_v12 = vld [vmem:[#allocation4 + $0xe8] sm:$0xff]  ;;  %v5986_v38 = vld [vmem:[#allocation4 + $0xf0] sm:$0xff] }
 0x3bc   :  { %4472 = vtanh.f32 %v5881_v57  ;;  %v1445_v44 = vsel %vm1444_vm11, %v4469_v34, %v1441_v49  ;;  %v5942_v34 = vld [vmem:[#allocation4 + $0x170] sm:$0xff]  ;;  %1774 = vmatpush.msrb.mxu1 %v5940_v46 }
 0x3bd   :  { %v1450_v51 = vsel %vm1447_vm12, %v1449_v52, %v1445_v44  ;;  %1752 = vmatpush.msrb.mxu0 %v5914_v7  ;;  %1794 = vmatpush.msra.mxu2 %v5942_v34  ;;  %v7674_v49 = vld [vmem:[#allocation20_spill] sm:$0xff]  ;;  %v238_v44 = vadd.f32 %v7675_v20, %v7659_v53  ;;  %v5994_v52 = vld [vmem:[#allocation4 + $0xf8] sm:$0xff] }
 0x3be   :  { %1814 = vmatpush.msra.mxu3 %v5946_v40  ;;  %1775 = vmatpush.msrb.mxu1 %v5952_v28  ;;  %v197_v25 = vadd.f32 %v7674_v49, %v7657_v13  ;;  %7676 = vst [vmem:[#allocation44_spill] sm:$0xff] %v5994_v52  ;;  %v6006_v20 = vld [vmem:[#allocation4 + $0xb0] sm:$0xff]  ;;  %v6008_v53 = vld [vmem:[#allocation4 + $0xb8] sm:$0xff] }
 0x3bf   :  { %1753 = vmatpush.msrb.mxu0 %v5926_v17  ;;  %1795 = vmatpush.msra.mxu2 %v5954_v55  ;;  %7677 = vst [vmem:[#allocation45_spill] sm:$0xff] %v6008_v53 }
 0x3c0   :  { %1815 = vmatpush.msra.mxu3 %v5958_v56  ;;  %1776 = vmatpush.msrb.mxu1 %v5964_v36 }
 0x3c1   :  { %1754 = vmatpush.msrb.mxu0 %v5938_v45  ;;  %1796 = vmatpush.msra.mxu2 %v5966_v60 }
 0x3c2   :  { %v4473_v50 = vpop.eup %4472  ;;  %1816 = vmatpush.msra.mxu3 %v5970_v54  ;;  %1777 = vmatpush.msrb.mxu1 %v5824_v31 }
 0x3c3   :  { %v5884_v21 = vmul.f32 %v4473_v50, %v1450_v51  ;;  %1755 = vmatpush.msrb.mxu0 %v5950_v41  ;;  %1797 = vmatpush.msra.mxu2 %v5974_v26 }
 0x3c4   :  { %1817 = vmatpush.msra.mxu3 %v5976_v10  ;;  %1778 = vmatpush.msrb.mxu1 %v5984_v12 }
 0x3c5   :  { %7673 = vst [vmem:[#allocation63_spill] sm:$0xff] %v5884_v21  ;;  %1546 = vmatmul.f32.vlgmr.msra.gmra.mxu0 %v5884_v21  ;;  %1566 = vmatmul.f32.vlgmr.msra.gmra.mxu1 %v5884_v21 }
 0x3c6   :  { %1586 = vmatmul.f32.vlgmr.msrb.gmra.mxu2 %v5884_v21  ;;  %1606 = vmatmul.f32.vlgmr.msrb.gmra.mxu3 %v5884_v21  ;;  %v5998_v21 = vld [vmem:[#allocation4 + $0xd0] sm:$0xff] }
 0x3c7   :  { %1756 = vmatpush.msrb.mxu0 %v5962_v18  ;;  %1798 = vmatpush.msra.mxu2 %v5986_v38 }
 0x3c8   :  { %1818 = vmatpush.msra.mxu3 %v5994_v52  ;;  %1779 = vmatpush.msrb.mxu1 %v5836_v22 }
 0x3c9   :  { %1757 = vmatpush.msrb.mxu0 %v5822_v47  ;;  %1799 = vmatpush.msra.mxu2 %v5998_v21 }
 0x3ca   :  { %1819 = vmatpush.msra.mxu3 %v6000_v23  ;;  %1780 = vmatpush.msrb.mxu1 %v5842_v37 }
 0x3cb   :  { %1758 = vmatpush.msrb.mxu0 %v5982_v39  ;;  %1800 = vmatpush.msra.mxu2 %v6006_v20 }
 0x3cc   :  { %1820 = vmatpush.msra.mxu3 %v6008_v53  ;;  %1781 = vmatpush.msrb.mxu1 %v5848_v33 }
 0x3cd   :  { %1759 = vmatpush.msrb.mxu0 %v5834_v19 }
 0x3ce   :  { %1782 = vmatpush.msrb.mxu1 %v5856_v6 }
 0x3cf   :  { %1760 = vmatpush.msrb.mxu0 %v5840_v11 }
 0x3d0   :  { %1783 = vmatpush.msrb.mxu1 %v5862_v4 }
 0x3d1   :  { %1761 = vmatpush.msrb.mxu0 %v5846_v48 }
 0x3d2   :  { %1784 = vmatpush.msrb.mxu1 %v5868_v43 }
 0x3d3   :  { %1762 = vmatpush.msrb.mxu0 %v5854_v5  ;;  %v6040_v5 = vld [vmem:[#allocation4 + $0x30] sm:$0xff] }
 0x3d4   :  { %1785 = vmatpush.msrb.mxu1 %v5874_v14 }
 0x3d5   :  { %1763 = vmatpush.msrb.mxu0 %v5860_v42 }
 0x3d6   :  { %1990 = vmatpush.msra.mxu1 %v5892_v1 }
 0x3d7   :  { %1764 = vmatpush.msrb.mxu0 %v5866_v24 }
 0x3d8   :  { %1991 = vmatpush.msra.mxu1 %v5904_v58 }
 0x3d9   :  { %1765 = vmatpush.msrb.mxu0 %v5872_v15 }
 0x3da   :  { %1992 = vmatpush.msra.mxu1 %v5916_v9 }
 0x3db   :  { %1970 = vmatpush.msra.mxu0 %v5890_v62 }
 0x3dc   :  { %1993 = vmatpush.msra.mxu1 %v5928_v63 }
 0x3dd   :  { %1971 = vmatpush.msra.mxu0 %v5902_v3 }
 0x3de   :  { %1994 = vmatpush.msra.mxu1 %v5940_v46 }
 0x3df   :  { %1972 = vmatpush.msra.mxu0 %v5914_v7 }
 0x3e0   :  { %1995 = vmatpush.msra.mxu1 %v5952_v28 }
 0x3e1   :  { %1973 = vmatpush.msra.mxu0 %v5926_v17 }
 0x3e2   :  { %1996 = vmatpush.msra.mxu1 %v5964_v36 }
 0x3e3   :  { %1974 = vmatpush.msra.mxu0 %v5938_v45 }
 0x3e4   :  { %1997 = vmatpush.msra.mxu1 %v5824_v31  ;;  %v7683_v31 = vld [vmem:[#allocation44_spill] sm:$0xff] }
 0x3e5   :  { %1975 = vmatpush.msra.mxu0 %v5950_v41 }
 0x3e6   :  { %1998 = vmatpush.msra.mxu1 %v5984_v12 }
 0x3e7   :  { %1976 = vmatpush.msra.mxu0 %v5962_v18 }
 0x3e8   :  { %1999 = vmatpush.msra.mxu1 %v5836_v22  ;;  %v7684_v22 = vld [vmem:[#allocation45_spill] sm:$0xff] }
 0x3e9   :  { %1977 = vmatpush.msra.mxu0 %v5822_v47 }
 0x3ea   :  { %2000 = vmatpush.msra.mxu1 %v5842_v37  ;;  %v7685_v37 = vld [vmem:[#allocation61_spill] sm:$0xff] }
 0x3eb   :  { %1978 = vmatpush.msra.mxu0 %v5982_v39 }
 0x3ec   :  { %2001 = vmatpush.msra.mxu1 %v5848_v33  ;;  %v7689_v33 = vld [vmem:[#allocation62_spill] sm:$0xff] }
 0x3ed   :  { %1979 = vmatpush.msra.mxu0 %v5834_v19 }
 0x3ee   :  { %2002 = vmatpush.msra.mxu1 %v5856_v6 }
 0x3ef   :  { %1980 = vmatpush.msra.mxu0 %v5840_v11 }
 0x3f0   :  { %2003 = vmatpush.msra.mxu1 %v7689_v33 }
 0x3f1   :  { %1981 = vmatpush.msra.mxu0 %v5846_v48  ;;  %v7688_v48 = vld [vmem:[#allocation43_spill] sm:$0xff] }
 0x3f2   :  { %2004 = vmatpush.msra.mxu1 %v5868_v43  ;;  %v2189_v43 = vld [vmem:[#allocation7 + $0x1f0] sm:$0xff] }
 0x3f3   :  { %1982 = vmatpush.msra.mxu0 %v7685_v37 }
 0x3f4   :  { %2005 = vmatpush.msra.mxu1 %v5874_v14  ;;  %v2179_v14 = vld [vmem:[#allocation7 + $0x1a0] sm:$0xff] }
 0x3f5   :  { %1983 = vmatpush.msra.mxu0 %v7688_v48  ;;  %v2154_v48 = vld [vmem:[#allocation7 + $0xd8] sm:$0xff] }
 0x3f7   :  { %1984 = vmatpush.msra.mxu0 %v5866_v24  ;;  %v2187_v24 = vld [vmem:[#allocation7 + $0x1e0] sm:$0xff] }
 0x3f9   :  { %1985 = vmatpush.msra.mxu0 %v5872_v15  ;;  %v2186_v15 = vld [vmem:[#allocation7 + $0x1d8] sm:$0xff] }
 0x442   :  { %v1547_v50 = vpop.f32.mrf.mxu0  ;;  %v1567_v51 = vpop.f32.mrf.mxu1 }
 0x443   :  { %v1610_v49 = vadd.f32 %v1547_v50, %v197_v25  ;;  %v1611_v29 = vadd.f32 %v1567_v51, %v238_v44  ;;  %v6014_v25 = vld [vmem:[#allocation4 + $0x90] sm:$0xff]  ;;  %v6016_v44 = vld [vmem:[#allocation4 + $0x98] sm:$0xff]  ;;  %v7678_v50 = vld [vmem:[#allocation35_spill] sm:$0xff] }
 0x444   :  { %1801 = vmatpush.msra.mxu2 %v6014_v25  ;;  %1821 = vmatpush.msra.mxu3 %v6016_v44  ;;  %v6024_v51 = vld [vmem:[#allocation4 + $0x70] sm:$0xff] }
 0x445   :  { %v4346_v13 = vmul.f32 -1.442695, %v1610_v49  ;;  %v4347_v52 = vmul.f32 -1.442695, %v1611_v29  ;;  %v320_v29 = vadd.f32 %v7678_v50, %v7661_v16  ;;  %7679 = vst [vmem:[#allocation48_spill] sm:$0xff] %v6024_v51  ;;  %v6026_v49 = vld [vmem:[#allocation4 + $0x78] sm:$0xff] }
 0x446   :  { %7680 = vst [vmem:[#allocation49_spill] sm:$0xff] %v6026_v49  ;;  %1802 = vmatpush.msra.mxu2 %v6024_v51  ;;  %1822 = vmatpush.msra.mxu3 %v6026_v49  ;;  %v6032_v50 = vld [vmem:[#allocation4 + $0x50] sm:$0xff]  ;;  %v6048_v51 = vld [vmem:[#allocation4 + $0x18] sm:$0xff] }
 0x447   :  { %4474 = vpow2.f32 %v4346_v13  ;;  %v6046_v49 = vld [vmem:[#allocation4 + $0x10] sm:$0xff] }
 0x448   :  { %4476 = vpow2.f32 %v4347_v52  ;;  %v6034_v52 = vld [vmem:[#allocation4 + $0x58] sm:$0xff]  ;;  %1803 = vmatpush.msra.mxu2 %v6032_v50  ;;  %7681 = vst [vmem:[#allocation50_spill] sm:$0xff] %v6046_v49 }
 0x449   :  { %v1607_v53 = vpop.f32.mrf.mxu3  ;;  %1823 = vmatpush.msra.mxu3 %v6034_v52 }
 0x44a   :  { %v1613_v13 = vadd.f32 %v1607_v53, %v320_v29  ;;  %v6042_v53 = vld [vmem:[#allocation4 + $0x38] sm:$0xff]  ;;  %1804 = vmatpush.msra.mxu2 %v6040_v5 }
 0x44b   :  { %1824 = vmatpush.msra.mxu3 %v6042_v53 }
 0x44c   :  { %v4348_v16 = vmul.f32 -1.442695, %v1613_v13  ;;  %1805 = vmatpush.msra.mxu2 %v6046_v49 }
 0x44d   :  { %v4475_v29 = vpop.eup %4474  ;;  %1825 = vmatpush.msra.mxu3 %v6048_v51 }
 0x44e   :  { %v4477_v42 = vpop.eup %4476  ;;  %v6050_v4 = vadd.f32 1.0, %v4475_v29  ;;  %4478 = vpow2.f32 %v4348_v16  ;;  %2010 = vmatpush.msrb.mxu2 %v5894_v8  ;;  %v1587_v16 = vpop.f32.mrf.mxu2  ;;  %v7682_v29 = vld [vmem:[#allocation34_spill] sm:$0xff] }
 0x44f   :  { %v6054_v13 = vadd.f32 1.0, %v4477_v42  ;;  %2030 = vmatpush.msrb.mxu3 %v5898_v32  ;;  %v279_v49 = vadd.f32 %v7682_v29, %v7663_v35  ;;  %v7690_v6 = vld [vmem:[#allocation50_spill] sm:$0xff] }
 0x450   :  { %4480 = vrcp.f32 %v6050_v4  ;;  %2011 = vmatpush.msrb.mxu2 %v5906_v61  ;;  %v1629_v7 = vand.u32 2147483648, %v6050_v4  ;;  %vm1623_vm15 = vweird.f32 %v6050_v4  ;;  %v2171_v29 = vld [vmem:[#allocation7 + $0x160] sm:$0xff] }
 0x451   :  { %4482 = vrcp.f32 %v6054_v13  ;;  %2031 = vmatpush.msrb.mxu3 %v5910_v30  ;;  %v1612_v8 = vadd.f32 %v1587_v16, %v279_v49  ;;  %v1648_v9 = vand.u32 2147483648, %v6054_v13  ;;  %v1646_v63 = vand.u32 2147483647, %v6054_v13  ;;  %v2185_v49 = vld [vmem:[#allocation7 + $0x1d0] sm:$0xff] }
 0x452   :  { %2012 = vmatpush.msrb.mxu2 %v5918_v2  ;;  %vm1642_vm0 = vweird.f32 %v6054_v13  ;;  %v1630_v45 = vor.u32 1.1754944e-38, %v1629_v7  ;;  %v2177_v16 = vld [vmem:[#allocation7 + $0x190] sm:$0xff]  ;;  %v2174_v7 = vld [vmem:[#allocation7 + $0x178] sm:$0xff] }
 0x453   :  { %2032 = vmatpush.msrb.mxu3 %v5922_v0  ;;  %v1627_v0 = vand.u32 2147483647, %v6050_v4  ;;  %vm1647_vm4 = vcmp.eq.f32.partialorder %v1646_v63, 8.507059e+37  ;;  %v2169_v63 = vld [vmem:[#allocation7 + $0x150] sm:$0xff] }
 0x454   :  { %v4479_v42 = vpop.eup %4478  ;;  %2013 = vmatpush.msrb.mxu2 %v5930_v59 }
 0x455   :  { %v6072_v62 = vadd.f32 1.0, %v4479_v42  ;;  %2033 = vmatpush.msrb.mxu3 %v5934_v27  ;;  %vm1628_vm2 = vcmp.eq.f32.partialorder %v1627_v0, 8.507059e+37  ;;  %v2178_v42 = vld [vmem:[#allocation7 + $0x198] sm:$0xff]  ;;  %v2167_v0 = vld [vmem:[#allocation7 + $0x140] sm:$0xff] }
 0x456   :  { %v4481_v1 = vpop.eup %4480  ;;  %2014 = vmatpush.msrb.mxu2 %v5942_v34 }
 0x457   :  { %v4483_v32 = vpop.eup %4482  ;;  %v1619_v3 = vmul.f32 %v4481_v1, %v6050_v4  ;;  %4484 = vrcp.f32 %v6072_v62  ;;  %2034 = vmatpush.msrb.mxu3 %v5946_v40  ;;  %vm1624_vm13 = vweird.f32 %v4481_v1  ;;  %v1649_v4 = vor.u32 1.1754944e-38, %v1648_v9 }
 0x458   :  { %v1638_v58 = vmul.f32 %v4483_v32, %v6054_v13  ;;  %4486 = vtanh.f32 %v1612_v8  ;;  %vm1643_vm14 = vweird.f32 %v4483_v32  ;;  %2015 = vmatpush.msrb.mxu2 %v5954_v55  ;;  %vm1625_vm1 = vmor %vm1623_vm15, %vm1624_vm13  ;;  %v1668_v19 = vand.u32 2147483648, %v6072_v62  ;;  %v2176_v13 = vld [vmem:[#allocation7 + $0x188] sm:$0xff]  ;;  %v7691_v8 = vld [vmem:[#allocation28_spill] sm:$0xff] }
 0x459   :  { %v1620_v61 = vsub.f32 1.0, %v1619_v3  ;;  %2035 = vmatpush.msrb.mxu3 %v5958_v56  ;;  %vm1644_vm3 = vmor %vm1642_vm0, %vm1643_vm14  ;;  %vm1662_vm6 = vweird.f32 %v6072_v62 }
 0x45a   :  { %v1639_v30 = vsub.f32 1.0, %v1638_v58  ;;  %2016 = vmatpush.msrb.mxu2 %v5966_v60  ;;  %v7693_v58 = vld [vmem:[#allocation31_spill] sm:$0xff] }
 0x45b   :  { %v1621_v2 = vmul.f32 %v4481_v1, %v1620_v61  ;;  %2036 = vmatpush.msrb.mxu3 %v5970_v54  ;;  %v7694_v61 = vld [vmem:[#allocation23_spill] sm:$0xff] }
 0x45c   :  { %v1640_v17 = vmul.f32 %v4483_v32, %v1639_v30  ;;  %2017 = vmatpush.msrb.mxu2 %v5974_v26  ;;  %v241_v30 = vadd.f32 %v7694_v61, %v7693_v58  ;;  %v2134_v61 = vld [vmem:[#allocation7 + $0x38] sm:$0xff] }
 0x45d   :  { %v6097_v59 = vpop.eup %4484  ;;  %v1622_v27 = vadd.f32 %v4481_v1, %v1621_v2  ;;  %2037 = vmatpush.msrb.mxu3 %v5976_v10  ;;  %v7687_v10 = vld [vmem:[#allocation49_spill] sm:$0xff] }
 0x45e   :  { %v1641_v46 = vadd.f32 %v4483_v32, %v1640_v17  ;;  %v1658_v34 = vmul.f32 %v6097_v59, %v6072_v62  ;;  %v4487_v41 = vpop.eup %4486  ;;  %2018 = vmatpush.msrb.mxu2 %v5986_v38  ;;  %vm1663_vm5 = vweird.f32 %v6097_v59  ;;  %v2168_v17 = vld [vmem:[#allocation7 + $0x148] sm:$0xff] }
 0x45f   :  { %v1626_v40 = vsel %vm1625_vm1, %v4481_v1, %v1622_v27  ;;  %2038 = vmatpush.msrb.mxu3 %v7683_v31  ;;  %vm1664_vm7 = vmor %vm1662_vm6, %vm1663_vm5  ;;  %v2173_v1 = vld [vmem:[#allocation7 + $0x170] sm:$0xff] }
 0x460   :  { %v1631_v28 = vsel %vm1628_vm2, %v1630_v45, %v1626_v40  ;;  %v1645_v55 = vsel %vm1644_vm3, %v4483_v32, %v1641_v46  ;;  %v1659_v56 = vsub.f32 1.0, %v1658_v34  ;;  %2019 = vmatpush.msrb.mxu2 %v5998_v21  ;;  %v7686_v21 = vld [vmem:[#allocation48_spill] sm:$0xff]  ;;  %v7692_v32 = vld [vmem:[#allocation22_spill] sm:$0xff]  ;;  %v2170_v45 = vld [vmem:[#allocation7 + $0x158] sm:$0xff] }
 0x461   :  { %v1650_v18 = vsel %vm1647_vm4, %v1649_v4, %v1645_v55  ;;  %v1673_v36 = vmul.f32 %v4487_v41, %v1631_v28  ;;  %2039 = vmatpush.msrb.mxu3 %v6000_v23  ;;  %v1666_v23 = vand.u32 2147483647, %v6072_v62  ;;  %v2172_v62 = vld [vmem:[#allocation7 + $0x168] sm:$0xff]  ;;  %v200_v3 = vadd.f32 %v7692_v32, %v7691_v8  ;;  %v2163_v46 = vld [vmem:[#allocation7 + $0x120] sm:$0xff]  ;;  %v2165_v40 = vld [vmem:[#allocation7 + $0x130] sm:$0xff] }
 0x462   :  { %v1672_v60 = vmul.f32 %v1650_v18, %v5881_v57  ;;  %v1660_v47 = vmul.f32 %v6097_v59, %v1659_v56  ;;  %2020 = vmatpush.msrb.mxu2 %v6006_v20  ;;  %v1669_v57 = vor.u32 1.1754944e-38, %v1668_v19  ;;  %v2190_v20 = vld [vmem:[#allocation7 + $0x1f8] sm:$0xff]  ;;  %v2164_v34 = vld [vmem:[#allocation7 + $0x128] sm:$0xff]  ;;  %v2159_v55 = vld [vmem:[#allocation7 + $0x100] sm:$0xff] }
 0x463   :  { %2040 = vmatpush.msrb.mxu3 %v7684_v22  ;;  %vm1667_vm8 = vcmp.eq.f32.partialorder %v1666_v23, 8.507059e+37  ;;  %v2166_v28 = vld [vmem:[#allocation7 + $0x138] sm:$0xff]  ;;  %v2160_v56 = vld [vmem:[#allocation7 + $0x108] sm:$0xff]  ;;  %v2161_v18 = vld [vmem:[#allocation7 + $0x110] sm:$0xff] }
 0x464   :  { %v6121_v54 = vadd.f32 %v1673_v36, %v1672_v60  ;;  %v1661_v26 = vadd.f32 %v6097_v59, %v1660_v47  ;;  %2021 = vmatpush.msrb.mxu2 %v6014_v25  ;;  %v2183_v25 = vld [vmem:[#allocation7 + $0x1c0] sm:$0xff]  ;;  %v2162_v36 = vld [vmem:[#allocation7 + $0x118] sm:$0xff]  ;;  %v7695_v60 = vld [vmem:[#allocation40_spill] sm:$0xff] }
 0x465   :  { %2041 = vmatpush.msrb.mxu3 %v6016_v44  ;;  %v2184_v44 = vld [vmem:[#allocation7 + $0x1c8] sm:$0xff]  ;;  %v7696_v47 = vld [vmem:[#allocation37_spill] sm:$0xff]  ;;  %v2157_v22 = vld [vmem:[#allocation7 + $0xf0] sm:$0xff] }
 0x466   :  { %4488 = vtanh.f32 %v6121_v54  ;;  %v1665_v11 = vsel %vm1664_vm7, %v6097_v59, %v1661_v26  ;;  %2022 = vmatpush.msrb.mxu2 %v7686_v21  ;;  %v323_v31 = vadd.f32 %v7696_v47, %v7695_v60  ;;  %v2155_v26 = vld [vmem:[#allocation7 + $0xe0] sm:$0xff]  ;;  %v2156_v19 = vld [vmem:[#allocation7 + $0xe8] sm:$0xff] }
 0x467   :  { %2042 = vmatpush.msrb.mxu3 %v7687_v10  ;;  %v1670_v12 = vsel %vm1667_vm8, %v1669_v57, %v1665_v11  ;;  %v2158_v11 = vld [vmem:[#allocation7 + $0xf8] sm:$0xff]  ;;  %v2151_v57 = vld [vmem:[#allocation7 + $0xc0] sm:$0xff]  ;;  %v2152_v21 = vld [vmem:[#allocation7 + $0xc8] sm:$0xff] }
 0x468   :  { %2023 = vmatpush.msrb.mxu2 %v6032_v50  ;;  %v2180_v50 = vld [vmem:[#allocation7 + $0x1a8] sm:$0xff]  ;;  %v2153_v10 = vld [vmem:[#allocation7 + $0xd0] sm:$0xff] }
 0x469   :  { %2043 = vmatpush.msrb.mxu3 %v6034_v52  ;;  %v2181_v52 = vld [vmem:[#allocation7 + $0x1b0] sm:$0xff]  ;;  %v2132_v32 = vld [vmem:[#allocation7 + $0x28] sm:$0xff] }
 0x46a   :  { %2024 = vmatpush.msrb.mxu2 %v6040_v5  ;;  %v2188_v5 = vld [vmem:[#allocation7 + $0x1e8] sm:$0xff] }
 0x46b   :  { %2044 = vmatpush.msrb.mxu3 %v6042_v53  ;;  %v2175_v53 = vld [vmem:[#allocation7 + $0x180] sm:$0xff] }
 0x46c   :  { %v4489_v39 = vpop.eup %4488  ;;  %2025 = vmatpush.msrb.mxu2 %v7690_v6  ;;  %v2149_v6 = vld [vmem:[#allocation7 + $0xb0] sm:$0xff] }
 0x46d   :  { %v6148_v38 = vmul.f32 %v4489_v39, %v1670_v12  ;;  %2045 = vmatpush.msrb.mxu3 %v6048_v51  ;;  %v2182_v51 = vld [vmem:[#allocation7 + $0x1b8] sm:$0xff]  ;;  %v2147_v39 = vld [vmem:[#allocation7 + $0xa0] sm:$0xff]  ;;  %v2148_v12 = vld [vmem:[#allocation7 + $0xa8] sm:$0xff] }
 0x46f   :  { %1766 = vmatmul.f32.vlgmr.msrb.gmra.mxu0 %v6148_v38  ;;  %1786 = vmatmul.f32.vlgmr.msrb.gmra.mxu1 %v6148_v38 }
 0x470   :  { %1806 = vmatmul.f32.vlgmr.msra.gmra.mxu2 %v6148_v38  ;;  %1826 = vmatmul.f32.vlgmr.msra.gmra.mxu3 %v6148_v38 }
 0x471   :  { %2201 = vmatpush.msrb.mxu0 %v2187_v24  ;;  %2242 = vmatpush.msrb.mxu1 %v2188_v5  ;;  %v2150_v5 = vld [vmem:[#allocation7 + $0xb8] sm:$0xff] }
 0x472   :  { %2283 = vmatpush.msra.mxu2 %v2189_v43  ;;  %2324 = vmatpush.msra.mxu3 %v2190_v20  ;;  %v2143_v43 = vld [vmem:[#allocation7 + $0x80] sm:$0xff]  ;;  %v2144_v20 = vld [vmem:[#allocation7 + $0x88] sm:$0xff] }
 0x473   :  { %2202 = vmatpush.msrb.mxu0 %v2183_v25  ;;  %2243 = vmatpush.msrb.mxu1 %v2184_v44 }
 0x474   :  { %2284 = vmatpush.msra.mxu2 %v2185_v49  ;;  %2325 = vmatpush.msra.mxu3 %v2186_v15  ;;  %v2145_v49 = vld [vmem:[#allocation7 + $0x90] sm:$0xff]  ;;  %v2146_v15 = vld [vmem:[#allocation7 + $0x98] sm:$0xff] }
 0x475   :  { %2203 = vmatpush.msrb.mxu0 %v2179_v14  ;;  %2244 = vmatpush.msrb.mxu1 %v2180_v50  ;;  %v2139_v50 = vld [vmem:[#allocation7 + $0x60] sm:$0xff] }
 0x476   :  { %2285 = vmatpush.msra.mxu2 %v2181_v52  ;;  %2326 = vmatpush.msra.mxu3 %v2182_v51  ;;  %v2140_v52 = vld [vmem:[#allocation7 + $0x68] sm:$0xff]  ;;  %v2141_v51 = vld [vmem:[#allocation7 + $0x70] sm:$0xff] }
 0x477   :  { %2204 = vmatpush.msrb.mxu0 %v2175_v53  ;;  %2245 = vmatpush.msrb.mxu1 %v2176_v13  ;;  %v2142_v53 = vld [vmem:[#allocation7 + $0x78] sm:$0xff]  ;;  %v2135_v13 = vld [vmem:[#allocation7 + $0x40] sm:$0xff] }
 0x478   :  { %2286 = vmatpush.msra.mxu2 %v2177_v16  ;;  %2327 = vmatpush.msra.mxu3 %v2178_v42  ;;  %v2136_v16 = vld [vmem:[#allocation7 + $0x48] sm:$0xff]  ;;  %v2137_v42 = vld [vmem:[#allocation7 + $0x50] sm:$0xff] }
 0x479   :  { %2205 = vmatpush.msrb.mxu0 %v2171_v29  ;;  %2246 = vmatpush.msrb.mxu1 %v2172_v62  ;;  %v2138_v29 = vld [vmem:[#allocation7 + $0x58] sm:$0xff]  ;;  %v2131_v62 = vld [vmem:[#allocation7 + $0x20] sm:$0xff] }
 0x47a   :  { %2287 = vmatpush.msra.mxu2 %v2173_v1  ;;  %2328 = vmatpush.msra.mxu3 %v2174_v7  ;;  %v7697_v7 = vld [vmem:[#allocation36_spill] sm:$0xff] }
 0x47b   :  { %2206 = vmatpush.msrb.mxu0 %v2167_v0  ;;  %2247 = vmatpush.msrb.mxu1 %v2168_v17  ;;  %v2128_v0 = vld [vmem:[#allocation7 + $0x8] sm:$0xff] }
 0x47c   :  { %2288 = vmatpush.msra.mxu2 %v2169_v63  ;;  %2329 = vmatpush.msra.mxu3 %v2170_v45  ;;  %v2129_v63 = vld [vmem:[#allocation7 + $0x10] sm:$0xff] }
 0x47d   :  { %2207 = vmatpush.msrb.mxu0 %v2163_v46  ;;  %2248 = vmatpush.msrb.mxu1 %v2164_v34 }
 0x47e   :  { %2289 = vmatpush.msra.mxu2 %v2165_v40  ;;  %2330 = vmatpush.msra.mxu3 %v2166_v28 }
 0x47f   :  { %2208 = vmatpush.msrb.mxu0 %v2159_v55  ;;  %2249 = vmatpush.msrb.mxu1 %v2160_v56 }
 0x480   :  { %2290 = vmatpush.msra.mxu2 %v2161_v18  ;;  %2331 = vmatpush.msra.mxu3 %v2162_v36 }
 0x481   :  { %2209 = vmatpush.msrb.mxu0 %v2155_v26  ;;  %2250 = vmatpush.msrb.mxu1 %v2156_v19 }
 0x482   :  { %2291 = vmatpush.msra.mxu2 %v2157_v22  ;;  %2332 = vmatpush.msra.mxu3 %v2158_v11 }
 0x483   :  { %2210 = vmatpush.msrb.mxu0 %v2151_v57  ;;  %2251 = vmatpush.msrb.mxu1 %v2152_v21 }
 0x484   :  { %2292 = vmatpush.msra.mxu2 %v2153_v10  ;;  %2333 = vmatpush.msra.mxu3 %v2154_v48 }
 0x485   :  { %2211 = vmatpush.msrb.mxu0 %v2147_v39  ;;  %2252 = vmatpush.msrb.mxu1 %v2148_v12 }
 0x486   :  { %2293 = vmatpush.msra.mxu2 %v2149_v6  ;;  %2334 = vmatpush.msra.mxu3 %v2150_v5 }
 0x487   :  { %2212 = vmatpush.msrb.mxu0 %v2143_v43  ;;  %2253 = vmatpush.msrb.mxu1 %v2144_v20 }
 0x488   :  { %2294 = vmatpush.msra.mxu2 %v2145_v49  ;;  %2335 = vmatpush.msra.mxu3 %v2146_v15 }
 0x489   :  { %2213 = vmatpush.msrb.mxu0 %v2139_v50  ;;  %2254 = vmatpush.msrb.mxu1 %v2140_v52  ;;  %v7699_v50 = vld [vmem:[#allocation47_spill] sm:$0xff]  ;;  %v7700_v52 = vld [vmem:[#allocation46_spill] sm:$0xff] }
 0x48a   :  { %2295 = vmatpush.msra.mxu2 %v2141_v51  ;;  %2336 = vmatpush.msra.mxu3 %v2142_v53  ;;  %v6200_v51 = vld [vmem:[#allocation9 + $0x1e0] sm:$0xff]  ;;  %v6202_v53 = vld [vmem:[#allocation9 + $0x1e8] sm:$0xff] }
 0x48b   :  { %2214 = vmatpush.msrb.mxu0 %v2135_v13  ;;  %2255 = vmatpush.msrb.mxu1 %v2136_v16  ;;  %v6204_v13 = vld [vmem:[#allocation9 + $0x1c0] sm:$0xff]  ;;  %v6208_v16 = vld [vmem:[#allocation9 + $0x1c8] sm:$0xff] }
 0x48c   :  { %2296 = vmatpush.msra.mxu2 %v2137_v42  ;;  %2337 = vmatpush.msra.mxu3 %v2138_v29  ;;  %v6210_v42 = vld [vmem:[#allocation9 + $0x1f8] sm:$0xff]  ;;  %v6213_v29 = vld [vmem:[#allocation9 + $0x1a0] sm:$0xff] }
 0x48d   :  { %2215 = vmatpush.msrb.mxu0 %v2131_v62  ;;  %2256 = vmatpush.msrb.mxu1 %v2132_v32  ;;  %v6215_v62 = vld [vmem:[#allocation9 + $0x1a8] sm:$0xff]  ;;  %v7701_v32 = vld [vmem:[#allocation60_spill] sm:$0xff] }
 0x48e   :  { %2338 = vmatpush.msra.mxu3 %v2134_v61  ;;  %v6236_v61 = vld [vmem:[#allocation9 + $0x1f0] sm:$0xff] }
 0x48f   :  { %2257 = vmatpush.msrb.mxu1 %v2128_v0  ;;  %v6248_v0 = vld [vmem:[#allocation9 + $0x188] sm:$0xff] }
 0x4ec   :  { %v1767_v9 = vpop.f32.mrf.mxu0  ;;  %v1787_v2 = vpop.f32.mrf.mxu1 }
 0x4ed   :  { %v1830_v59 = vadd.f32 %v1767_v9, %v200_v3  ;;  %v1831_v27 = vadd.f32 %v1787_v2, %v241_v30  ;;  %v2133_v3 = vld [vmem:[#allocation7 + $0x30] sm:$0xff]  ;;  %v282_v9 = vadd.f32 %v7697_v7, %v7663_v35  ;;  %v2127_v2 = vld [vmem:[#allocation7] sm:$0xff]  ;;  %v6242_v7 = vld [vmem:[#allocation9 + $0x1b8] sm:$0xff] }
 0x4ee   :  { %2297 = vmatpush.msra.mxu2 %v2133_v3  ;;  %2216 = vmatpush.msrb.mxu0 %v2127_v2  ;;  %v7702_v3 = vld [vmem:[#allocation63_spill] sm:$0xff]  ;;  %v6246_v2 = vld [vmem:[#allocation9 + $0x180] sm:$0xff] }
 0x4ef   :  { %v4349_v4 = vmul.f32 -1.442695, %v1830_v59  ;;  %v4350_v41 = vmul.f32 -1.442695, %v1831_v27  ;;  %v2130_v59 = vld [vmem:[#allocation7 + $0x18] sm:$0xff] }
 0x4f0   :  { %2298 = vmatpush.msra.mxu2 %v2129_v63  ;;  %2339 = vmatpush.msra.mxu3 %v2130_v59  ;;  %v6258_v63 = vld [vmem:[#allocation9 + $0x198] sm:$0xff]  ;;  %v6260_v59 = vld [vmem:[#allocation9 + $0x190] sm:$0xff] }
 0x4f1   :  { %4490 = vpow2.f32 %v4349_v4 }
 0x4f2   :  { %4492 = vpow2.f32 %v4350_v41 }
 0x4f3   :  { %v1827_v23 = vpop.f32.mrf.mxu3  ;;  %v1807_v1 = vpop.f32.mrf.mxu2 }
 0x4f4   :  { %v1833_v37 = vadd.f32 %v1827_v23, %v323_v31  ;;  %v1832_v45 = vadd.f32 %v1807_v1, %v282_v9  ;;  %v6217_v1 = vld [vmem:[#allocation9 + $0x1d8] sm:$0xff]  ;;  %v6244_v9 = vld [vmem:[#allocation9 + $0x1b0] sm:$0xff] }
 0x4f6   :  { %v4351_v33 = vmul.f32 -1.442695, %v1833_v37 }
 0x4f7   :  { %v4491_v24 = vpop.eup %4490 }
 0x4f8   :  { %v4493_v25 = vpop.eup %4492  ;;  %v6168_v44 = vadd.f32 1.0, %v4491_v24  ;;  %4494 = vpow2.f32 %v4351_v33 }
 0x4f9   :  { %v6170_v14 = vadd.f32 1.0, %v4493_v25 }
 0x4fa   :  { %4496 = vrcp.f32 %v6168_v44  ;;  %v1849_v28 = vand.u32 2147483648, %v6168_v44  ;;  %v1847_v18 = vand.u32 2147483647, %v6168_v44  ;;  %vm1843_vm11 = vweird.f32 %v6168_v44 }
 0x4fb   :  { %4498 = vrcp.f32 %v6170_v14  ;;  %v1868_v55 = vand.u32 2147483648, %v6170_v14  ;;  %v1866_v47 = vand.u32 2147483647, %v6170_v14  ;;  %vm1862_vm12 = vweird.f32 %v6170_v14 }
 0x4fc   :  { %v1850_v19 = vor.u32 1.1754944e-38, %v1849_v28  ;;  %vm1848_vm14 = vcmp.eq.f32.partialorder %v1847_v18, 8.507059e+37  ;;  %v6278_v28 = vld [vmem:[#allocation9 + $0x148] sm:$0xff] }
 0x4fd   :  { %v1869_v37 = vor.u32 1.1754944e-38, %v1868_v55  ;;  %vm1867_vm0 = vcmp.eq.f32.partialorder %v1866_v47, 8.507059e+37  ;;  %v6280_v55 = vld [vmem:[#allocation9 + $0x158] sm:$0xff] }
 0x4fe   :  { %v4495_v30 = vpop.eup %4494 }
 0x4ff   :  { %v1876_v17 = vadd.f32 1.0, %v4495_v30  ;;  %v6239_v30 = vld [vmem:[#allocation9 + $0x1d0] sm:$0xff] }
 0x500   :  { %v4497_v27 = vpop.eup %4496 }
 0x501   :  { %v4499_v46 = vpop.eup %4498  ;;  %v1839_v34 = vmul.f32 %v4497_v27, %v6168_v44  ;;  %4500 = vrcp.f32 %v1876_v17  ;;  %vm1844_vm9 = vweird.f32 %v4497_v27  ;;  %v1888_v43 = vand.u32 2147483648, %v1876_v17 }
 0x502   :  { %v1858_v40 = vmul.f32 %v4499_v46, %v6170_v14  ;;  %4502 = vtanh.f32 %v1832_v45  ;;  %vm1863_vm10 = vweird.f32 %v4499_v46  ;;  %vm1845_vm13 = vmor %vm1843_vm11, %vm1844_vm9  ;;  %vm1882_vm2 = vweird.f32 %v1876_v17  ;;  %v6268_v45 = vld [vmem:[#allocation9 + $0x170] sm:$0xff] }
 0x503   :  { %v1840_v4 = vsub.f32 1.0, %v1839_v34  ;;  %vm1864_vm15 = vmor %vm1862_vm12, %vm1863_vm10  ;;  %v1886_v20 = vand.u32 2147483647, %v1876_v17  ;;  %v1889_v44 = vor.u32 1.1754944e-38, %v1888_v43 }
 0x504   :  { %v1859_v41 = vsub.f32 1.0, %v1858_v40  ;;  %v7704_v40 = vld [vmem:[#allocation25_spill] sm:$0xff] }
 0x505   :  { %v1841_v56 = vmul.f32 %v4497_v27, %v1840_v4  ;;  %vm1887_vm4 = vcmp.eq.f32.partialorder %v1886_v20, 8.507059e+37  ;;  %v244_v4 = vadd.f32 %v7704_v40, %v7693_v58  ;;  %v6291_v58 = vld [vmem:[#allocation9 + $0x138] sm:$0xff]  ;;  %v6326_v20 = vld [vmem:[#allocation9 + $0xa0] sm:$0xff] }
 0x506   :  { %v1860_v36 = vmul.f32 %v4499_v46, %v1859_v41  ;;  %v6276_v41 = vld [vmem:[#allocation9 + $0x140] sm:$0xff] }
 0x507   :  { %v4501_v31 = vpop.eup %4500  ;;  %v1842_v26 = vadd.f32 %v4497_v27, %v1841_v56 }
 0x508   :  { %v1861_v22 = vadd.f32 %v4499_v46, %v1860_v36  ;;  %v1878_v23 = vmul.f32 %v4501_v31, %v1876_v17  ;;  %v4503_v57 = vpop.eup %4502  ;;  %vm1883_vm1 = vweird.f32 %v4501_v31  ;;  %v6256_v17 = vld [vmem:[#allocation9 + $0x168] sm:$0xff]  ;;  %v6284_v36 = vld [vmem:[#allocation9 + $0x150] sm:$0xff] }
 0x509   :  { %v1846_v11 = vsel %vm1845_vm13, %v4497_v27, %v1842_v26  ;;  %vm1884_vm3 = vmor %vm1882_vm2, %vm1883_vm1  ;;  %v6266_v27 = vld [vmem:[#allocation9 + $0x178] sm:$0xff]  ;;  %v6288_v26 = vld [vmem:[#allocation9 + $0x128] sm:$0xff] }
 0x50a   :  { %v1851_v21 = vsel %vm1848_vm14, %v1850_v19, %v1846_v11  ;;  %v1865_v10 = vsel %vm1864_vm15, %v4499_v46, %v1861_v22  ;;  %v1879_v48 = vsub.f32 1.0, %v1878_v23  ;;  %v7703_v46 = vld [vmem:[#allocation24_spill] sm:$0xff]  ;;  %v6298_v11 = vld [vmem:[#allocation9 + $0x100] sm:$0xff] }
 0x50b   :  { %v1870_v33 = vsel %vm1867_vm0, %v1869_v37, %v1865_v10  ;;  %v1893_v39 = vmul.f32 %v4503_v57, %v1851_v21  ;;  %v203_v34 = vadd.f32 %v7703_v46, %v7691_v8  ;;  %v6286_v8 = vld [vmem:[#allocation9 + $0x120] sm:$0xff]  ;;  %v6296_v19 = vld [vmem:[#allocation9 + $0x130] sm:$0xff]  ;;  %v6300_v37 = vld [vmem:[#allocation9 + $0x108] sm:$0xff] }
 0x50c   :  { %v1892_v12 = vmul.f32 %v1870_v33, %v6121_v54  ;;  %v1880_v6 = vmul.f32 %v4501_v31, %v1879_v48  ;;  %v7698_v54 = vld [vmem:[#allocation42_spill] sm:$0xff]  ;;  %v6308_v21 = vld [vmem:[#allocation9 + $0xe8] sm:$0xff]  ;;  %v6310_v10 = vld [vmem:[#allocation9 + $0x118] sm:$0xff] }
 0x50d   :  { %v6306_v57 = vld [vmem:[#allocation9 + $0xe0] sm:$0xff]  ;;  %v6315_v33 = vld [vmem:[#allocation9 + $0xc8] sm:$0xff] }
 0x50e   :  { %v6185_v24 = vadd.f32 %v1893_v39, %v1892_v12  ;;  %v1881_v5 = vadd.f32 %v4501_v31, %v1880_v6  ;;  %v6313_v48 = vld [vmem:[#allocation9 + $0xc0] sm:$0xff]  ;;  %v6317_v39 = vld [vmem:[#allocation9 + $0xf8] sm:$0xff]  ;;  %v7705_v12 = vld [vmem:[#allocation39_spill] sm:$0xff] }
 0x50f   :  { %v326_v6 = vadd.f32 %v7705_v12, %v7695_v60  ;;  %v6334_v60 = vld [vmem:[#allocation9 + $0xb8] sm:$0xff]  ;;  %v6352_v46 = vld [vmem:[#allocation9 + $0x60] sm:$0xff] }
 0x510   :  { %4504 = vtanh.f32 %v6185_v24  ;;  %v1885_v25 = vsel %vm1884_vm3, %v4501_v31, %v1881_v5  ;;  %v6323_v5 = vld [vmem:[#allocation9 + $0xd8] sm:$0xff]  ;;  %7708 = vst [vmem:[#allocation53_spill] sm:$0xff] %v6352_v46  ;;  %v6380_v12 = vld [vmem:[#allocation9 + $0x20] sm:$0xff] }
 0x511   :  { %v1890_v15 = vsel %vm1887_vm4, %v1889_v44, %v1885_v25  ;;  %v6328_v25 = vld [vmem:[#allocation9 + $0xa8] sm:$0xff]  ;;  %v6330_v44 = vld [vmem:[#allocation9 + $0x110] sm:$0xff] }
 0x516   :  { %v4505_v49 = vpop.eup %4504 }
 0x517   :  { %v1896_v14 = vmul.f32 %v4505_v49, %v1890_v15  ;;  %v6336_v15 = vld [vmem:[#allocation9 + $0xf0] sm:$0xff] }
 0x519   :  { %1986 = vmatmul.f32.vlgmr.msra.gmra.mxu0 %v1896_v14  ;;  %2006 = vmatmul.f32.vlgmr.msra.gmra.mxu1 %v1896_v14 }
 0x51a   :  { %2026 = vmatmul.f32.vlgmr.msrb.gmra.mxu2 %v1896_v14  ;;  %2046 = vmatmul.f32.vlgmr.msrb.gmra.mxu3 %v1896_v14 }
 0x51b   :  { %2465 = vmatpush.msra.mxu0 %v6200_v51  ;;  %2485 = vmatpush.msra.mxu1 %v6202_v53 }
 0x51c   :  { %2525 = vmatpush.msrb.mxu3 %v6210_v42  ;;  %2505 = vmatpush.msrb.mxu2 %v6236_v61 }
 0x51d   :  { %2466 = vmatpush.msra.mxu0 %v6204_v13  ;;  %2486 = vmatpush.msra.mxu1 %v6208_v16 }
 0x51e   :  { %2526 = vmatpush.msrb.mxu3 %v6217_v1  ;;  %2506 = vmatpush.msrb.mxu2 %v6239_v30 }
 0x51f   :  { %2467 = vmatpush.msra.mxu0 %v6213_v29  ;;  %2487 = vmatpush.msra.mxu1 %v6215_v62 }
 0x520   :  { %2527 = vmatpush.msrb.mxu3 %v6242_v7  ;;  %2507 = vmatpush.msrb.mxu2 %v6244_v9 }
 0x521   :  { %2217 = vmatmul.f32.vlgmr.msrb.gmra.mxu0 %v7698_v54  ;;  %2258 = vmatmul.f32.vlgmr.msrb.gmra.mxu1 %v7698_v54 }
 0x522   :  { %2299 = vmatmul.f32.vlgmr.msra.gmra.mxu2 %v7698_v54  ;;  %2340 = vmatmul.f32.vlgmr.msra.gmra.mxu3 %v7698_v54  ;;  %v6342_v54 = vld [vmem:[#allocation9 + $0x88] sm:$0xff] }
 0x523   :  { %2468 = vmatpush.msra.mxu0 %v6246_v2  ;;  %2488 = vmatpush.msra.mxu1 %v6248_v0  ;;  %7706 = vst [vmem:[#allocation51_spill] sm:$0xff] %v6342_v54 }
 0x524   :  { %2528 = vmatpush.msrb.mxu3 %v6258_v63  ;;  %2508 = vmatpush.msrb.mxu2 %v6260_v59 }
 0x525   :  { %2489 = vmatpush.msra.mxu1 %v6256_v17 }
 0x526   :  { %2529 = vmatpush.msrb.mxu3 %v6266_v27  ;;  %2509 = vmatpush.msrb.mxu2 %v6268_v45 }
 0x527   :  { %2490 = vmatpush.msra.mxu1 %v6278_v28 }
 0x528   :  { %2530 = vmatpush.msrb.mxu3 %v6280_v55  ;;  %2510 = vmatpush.msrb.mxu2 %v6284_v36 }
 0x529   :  { %2220 = vmatmul.f32.gmra.mxu0 %v7699_v50  ;;  %2261 = vmatmul.f32.gmra.mxu1 %v7699_v50 }
 0x52a   :  { %2302 = vmatmul.f32.gmra.mxu2 %v7699_v50  ;;  %2343 = vmatmul.f32.gmra.mxu3 %v7699_v50 }
 0x52b   :  { %2491 = vmatpush.msra.mxu1 %v6288_v26  ;;  %2531 = vmatpush.msrb.mxu3 %v6291_v58 }
 0x52c   :  { %2511 = vmatpush.msrb.mxu2 %v6296_v19 }
 0x52d   :  { %2492 = vmatpush.msra.mxu1 %v6300_v37  ;;  %2532 = vmatpush.msrb.mxu3 %v6310_v10 }
 0x52e   :  { %2512 = vmatpush.msrb.mxu2 %v6330_v44 }
 0x52f   :  { %2493 = vmatpush.msra.mxu1 %v6308_v21  ;;  %2533 = vmatpush.msrb.mxu3 %v6317_v39 }
 0x530   :  { %2513 = vmatpush.msrb.mxu2 %v6336_v15 }
 0x531   :  { %2223 = vmatmul.f32.gmra.mxu0 %v7700_v52  ;;  %2264 = vmatmul.f32.gmra.mxu1 %v7700_v52 }
 0x532   :  { %2305 = vmatmul.f32.gmra.mxu2 %v7700_v52  ;;  %2346 = vmatmul.f32.gmra.mxu3 %v7700_v52  ;;  %v6346_v52 = vld [vmem:[#allocation9 + $0x98] sm:$0xff] }
 0x533   :  { %2494 = vmatpush.msra.mxu1 %v6315_v33  ;;  %2534 = vmatpush.msrb.mxu3 %v6323_v5  ;;  %7707 = vst [vmem:[#allocation52_spill] sm:$0xff] %v6346_v52 }
 0x535   :  { %2495 = vmatpush.msra.mxu1 %v6328_v25  ;;  %2535 = vmatpush.msrb.mxu3 %v6334_v60 }
 0x537   :  { %2496 = vmatpush.msra.mxu1 %v6342_v54  ;;  %2536 = vmatpush.msrb.mxu3 %v6346_v52  ;;  %v6404_v52 = vld [vmem:[#allocation9 + $0x18] sm:$0xff] }
 0x538   :  { %7720 = vst [vmem:[#allocation29_spill] sm:$0xff] %v6404_v52 }
 0x539   :  { %2226 = vmatmul.f32.gmra.mxu0 %v7701_v32  ;;  %2267 = vmatmul.f32.gmra.mxu1 %v7701_v32 }
 0x53a   :  { %2308 = vmatmul.f32.gmra.mxu2 %v7701_v32  ;;  %2349 = vmatmul.f32.gmra.mxu3 %v7701_v32  ;;  %v6348_v32 = vld [vmem:[#allocation9 + $0xd0] sm:$0xff] }
 0x53b   :  { %2514 = vmatpush.msrb.mxu2 %v6348_v32 }
 0x541   :  { %2229 = vmatmul.f32.gmra.mxu0 %v7702_v3  ;;  %2270 = vmatmul.f32.gmra.mxu1 %v7702_v3 }
 0x542   :  { %2311 = vmatmul.f32.gmra.mxu2 %v7702_v3  ;;  %2352 = vmatmul.f32.gmra.mxu3 %v7702_v3 }
 0x549   :  { %2232 = vmatmul.f32.gmra.mxu0 %v6148_v38  ;;  %2273 = vmatmul.f32.gmra.mxu1 %v6148_v38 }
 0x54a   :  { %2314 = vmatmul.f32.gmra.mxu2 %v6148_v38  ;;  %2355 = vmatmul.f32.gmra.mxu3 %v6148_v38  ;;  %v6251_v38 = vld [vmem:[#allocation9 + $0x160] sm:$0xff] }
 0x54b   :  { %2469 = vmatpush.msra.mxu0 %v6251_v38 }
 0x54d   :  { %2470 = vmatpush.msra.mxu0 %v6276_v41 }
 0x54f   :  { %2471 = vmatpush.msra.mxu0 %v6286_v8 }
 0x551   :  { %2235 = vmatmul.f32.gmra.mxu0 %v1896_v14  ;;  %2276 = vmatmul.f32.gmra.mxu1 %v1896_v14 }
 0x552   :  { %2317 = vmatmul.f32.gmra.mxu2 %v1896_v14  ;;  %2358 = vmatmul.f32.gmra.mxu3 %v1896_v14  ;;  %v6340_v14 = vld [vmem:[#allocation9 + $0x80] sm:$0xff] }
 0x553   :  { %2472 = vmatpush.msra.mxu0 %v6298_v11 }
 0x555   :  { %2473 = vmatpush.msra.mxu0 %v6306_v57 }
 0x557   :  { %2474 = vmatpush.msra.mxu0 %v6313_v48 }
 0x559   :  { %2475 = vmatpush.msra.mxu0 %v6326_v20 }
 0x55b   :  { %2476 = vmatpush.msra.mxu0 %v6340_v14 }
 0x55d   :  { %2477 = vmatpush.msra.mxu0 %v6352_v46 }
 0x596   :  { %v1987_v56 = vpop.f32.mrf.mxu0  ;;  %v2007_v18 = vpop.f32.mrf.mxu1 }
 0x597   :  { %v2050_v47 = vadd.f32 %v1987_v56, %v203_v34  ;;  %v2051_v31 = vadd.f32 %v2007_v18, %v244_v4  ;;  %v6354_v34 = vld [vmem:[#allocation9 + $0x68] sm:$0xff]  ;;  %v6360_v56 = vld [vmem:[#allocation9 + $0xb0] sm:$0xff]  ;;  %v6362_v18 = vld [vmem:[#allocation9 + $0x78] sm:$0xff] }
 0x598   :  { %7709 = vst [vmem:[#allocation54_spill] sm:$0xff] %v6354_v34  ;;  %2497 = vmatpush.msra.mxu1 %v6354_v34  ;;  %2515 = vmatpush.msrb.mxu2 %v6360_v56  ;;  %v7718_v34 = vld [vmem:[#allocation38_spill] sm:$0xff] }
 0x599   :  { %v4352_v22 = vmul.f32 -1.442695, %v2050_v47  ;;  %v4353_v23 = vmul.f32 -1.442695, %v2051_v31  ;;  %7710 = vst [vmem:[#allocation55_spill] sm:$0xff] %v6362_v18  ;;  %v6368_v31 = vld [vmem:[#allocation9 + $0x40] sm:$0xff]  ;;  %2537 = vmatpush.msrb.mxu3 %v6362_v18  ;;  %v285_v46 = vadd.f32 %v7718_v34, %v7663_v35 }
 0x59a   :  { %7711 = vst [vmem:[#allocation56_spill] sm:$0xff] %v6368_v31  ;;  %2478 = vmatpush.msra.mxu0 %v6368_v31  ;;  %v6402_v31 = vld [vmem:[#allocation9 + $0x38] sm:$0xff]  ;;  %v6412_v35 = vld [vmem:[#allocation9 + $0x30] sm:$0xff] }
 0x59b   :  { %4506 = vpow2.f32 %v4352_v22  ;;  %v6370_v22 = vld [vmem:[#allocation9 + $0x48] sm:$0xff]  ;;  %7719 = vst [vmem:[#allocation41_spill] sm:$0xff] %v6402_v31 }
 0x59c   :  { %4508 = vpow2.f32 %v4353_v23  ;;  %7712 = vst [vmem:[#allocation57_spill] sm:$0xff] %v6370_v22  ;;  %v6375_v23 = vld [vmem:[#allocation9 + $0x90] sm:$0xff]  ;;  %2498 = vmatpush.msra.mxu1 %v6370_v22  ;;  %2479 = vmatpush.msra.mxu0 %v6380_v12 }
 0x59d   :  { %v2047_v43 = vpop.f32.mrf.mxu3  ;;  %7713 = vst [vmem:[#allocation58_spill] sm:$0xff] %v6375_v23  ;;  %2516 = vmatpush.msrb.mxu2 %v6375_v23  ;;  %v6400_v22 = vld [vmem:[#allocation9 + $0x50] sm:$0xff] }
 0x59e   :  { %v2053_v49 = vadd.f32 %v2047_v43, %v326_v6  ;;  %v6382_v6 = vld [vmem:[#allocation9 + $0x28] sm:$0xff]  ;;  %v6384_v43 = vld [vmem:[#allocation9 + $0x58] sm:$0xff] }
 0x59f   :  { %7714 = vst [vmem:[#allocation59_spill] sm:$0xff] %v6382_v6  ;;  %2538 = vmatpush.msrb.mxu3 %v6384_v43  ;;  %2499 = vmatpush.msra.mxu1 %v6382_v6 }
 0x5a0   :  { %v4354_v50 = vmul.f32 -1.442695, %v2053_v49  ;;  %7715 = vst [vmem:[#allocation26_spill] sm:$0xff] %v6384_v43  ;;  %v6388_v49 = vld [vmem:[#allocation9 + $0x70] sm:$0xff] }
 0x5a1   :  { %v4507_v3 = vpop.eup %4506  ;;  %2517 = vmatpush.msrb.mxu2 %v6388_v49  ;;  %2539 = vmatpush.msrb.mxu3 %v6402_v31  ;;  %v6419_v31 = vld [vmem:[#allocation9 + $0x10] sm:$0xff] }
 0x5a2   :  { %v4509_v40 = vpop.eup %4508  ;;  %v6356_v4 = vadd.f32 1.0, %v4507_v3  ;;  %4510 = vpow2.f32 %v4354_v50  ;;  %v2027_v50 = vpop.f32.mrf.mxu2  ;;  %v6392_v3 = vld [vmem:[#allocation9] sm:$0xff] }
 0x5a3   :  { %v6364_v47 = vadd.f32 1.0, %v4509_v40  ;;  %7716 = vst [vmem:[#allocation27_spill] sm:$0xff] %v6392_v3  ;;  %v6394_v40 = vld [vmem:[#allocation9 + $0x8] sm:$0xff]  ;;  %v2052_v54 = vadd.f32 %v2027_v50, %v285_v46  ;;  %2480 = vmatpush.msra.mxu0 %v6392_v3  ;;  %2518 = vmatpush.msrb.mxu2 %v6400_v22 }
 0x5a4   :  { %4512 = vrcp.f32 %v6356_v4  ;;  %7717 = vst [vmem:[#allocation30_spill] sm:$0xff] %v6394_v40  ;;  %2500 = vmatpush.msra.mxu1 %v6394_v40  ;;  %2540 = vmatpush.msrb.mxu3 %v6404_v52  ;;  %v2069_v40 = vand.u32 2147483648, %v6356_v4  ;;  %vm2063_vm7 = vweird.f32 %v6356_v4 }
 0x5a5   :  { %4514 = vrcp.f32 %v6364_v47  ;;  %2681 = vmatpush.msrb.mxu0 %v6200_v51  ;;  %2519 = vmatpush.msrb.mxu2 %v6412_v35  ;;  %v2088_v52 = vand.u32 2147483648, %v6364_v47  ;;  %v2067_v51 = vand.u32 2147483647, %v6356_v4  ;;  %vm2082_vm8 = vweird.f32 %v6364_v47 }
 0x5a6   :  { %2701 = vmatpush.msrb.mxu1 %v6202_v53  ;;  %2741 = vmatpush.msra.mxu3 %v6210_v42  ;;  %v2086_v42 = vand.u32 2147483647, %v6364_v47 }
 0x5a7   :  { %2682 = vmatpush.msrb.mxu0 %v6204_v13  ;;  %2520 = vmatpush.msrb.mxu2 %v6419_v31  ;;  %vm2068_vm10 = vcmp.eq.f32.partialorder %v2067_v51, 8.507059e+37 }
 0x5a8   :  { %v4511_v18 = vpop.eup %4510  ;;  %2702 = vmatpush.msrb.mxu1 %v6208_v16  ;;  %2742 = vmatpush.msra.mxu3 %v6217_v1  ;;  %v2070_v1 = vor.u32 1.1754944e-38, %v2069_v40  ;;  %vm2087_vm12 = vcmp.eq.f32.partialorder %v2086_v42, 8.507059e+37  ;;  %v7722_v42 = vld [vmem:[#allocation52_spill] sm:$0xff] }
 0x5a9   :  { %v6406_v23 = vadd.f32 1.0, %v4511_v18  ;;  %2721 = vmatpush.msra.mxu2 %v6236_v61  ;;  %2683 = vmatpush.msrb.mxu0 %v6213_v29 }
 0x5aa   :  { %v4513_v43 = vpop.eup %4512  ;;  %2703 = vmatpush.msrb.mxu1 %v6215_v62  ;;  %2743 = vmatpush.msra.mxu3 %v6242_v7  ;;  %v2089_v62 = vor.u32 1.1754944e-38, %v2088_v52 }
 0x5ab   :  { %v4515_v34 = vpop.eup %4514  ;;  %v2059_v6 = vmul.f32 %v4513_v43, %v6356_v4  ;;  %4516 = vrcp.f32 %v6406_v23  ;;  %vm2064_vm5 = vweird.f32 %v4513_v43  ;;  %2722 = vmatpush.msra.mxu2 %v6239_v30  ;;  %2684 = vmatpush.msrb.mxu0 %v6246_v2  ;;  %vm2102_vm14 = vweird.f32 %v6406_v23 }
 0x5ac   :  { %v2078_v18 = vmul.f32 %v4515_v34, %v6364_v47  ;;  %4518 = vtanh.f32 %v2052_v54  ;;  %vm2083_vm6 = vweird.f32 %v4515_v34  ;;  %vm2065_vm9 = vmor %vm2063_vm7, %vm2064_vm5  ;;  %2704 = vmatpush.msrb.mxu1 %v6248_v0  ;;  %2744 = vmatpush.msra.mxu3 %v6258_v63 }
 0x5ad   :  { %v2060_v46 = vsub.f32 1.0, %v2059_v6  ;;  %vm2084_vm11 = vmor %vm2082_vm8, %vm2083_vm6  ;;  %2723 = vmatpush.msra.mxu2 %v6244_v9  ;;  %2685 = vmatpush.msrb.mxu0 %v6251_v38 }
 0x5ae   :  { %v2079_v50 = vsub.f32 1.0, %v2078_v18  ;;  %2705 = vmatpush.msrb.mxu1 %v6256_v17  ;;  %2745 = vmatpush.msra.mxu3 %v6266_v27  ;;  %v2106_v17 = vand.u32 2147483647, %v6406_v23 }
 0x5af   :  { %v2061_v3 = vmul.f32 %v4513_v43, %v2060_v46  ;;  %2724 = vmatpush.msra.mxu2 %v6260_v59  ;;  %2686 = vmatpush.msrb.mxu0 %v6276_v41 }
 0x5b0   :  { %v2080_v53 = vmul.f32 %v4515_v34, %v2079_v50  ;;  %2706 = vmatpush.msrb.mxu1 %v6278_v28  ;;  %2746 = vmatpush.msra.mxu3 %v6280_v55  ;;  %vm2107_vm0 = vcmp.eq.f32.partialorder %v2106_v17, 8.507059e+37 }
 0x5b1   :  { %v6435_v13 = vpop.eup %4516  ;;  %v2062_v16 = vadd.f32 %v4513_v43, %v2061_v3  ;;  %2725 = vmatpush.msra.mxu2 %v6268_v45  ;;  %2687 = vmatpush.msrb.mxu0 %v6286_v8 }
 0x5b2   :  { %v2081_v54 = vadd.f32 %v4515_v34, %v2080_v53  ;;  %v2098_v6 = vmul.f32 %v6435_v13, %v6406_v23  ;;  %v4519_v4 = vpop.eup %4518  ;;  %vm2103_vm13 = vweird.f32 %v6435_v13  ;;  %2707 = vmatpush.msrb.mxu1 %v6288_v26  ;;  %2747 = vmatpush.msra.mxu3 %v6291_v58  ;;  %v7721_v53 = vld [vmem:[#allocation51_spill] sm:$0xff] }
 0x5b3   :  { %v2066_v29 = vsel %vm2065_vm9, %v4513_v43, %v2062_v16  ;;  %2726 = vmatpush.msra.mxu2 %v6284_v36  ;;  %2688 = vmatpush.msrb.mxu0 %v6298_v11  ;;  %vm2104_vm15 = vmor %vm2102_vm14, %vm2103_vm13  ;;  %v7724_v16 = vld [vmem:[#allocation53_spill] sm:$0xff] }
 0x5b4   :  { %v2071_v47 = vsel %vm2068_vm10, %v2070_v1, %v2066_v29  ;;  %v2085_v3 = vsel %vm2084_vm11, %v4515_v34, %v2081_v54  ;;  %v2099_v40 = vsub.f32 1.0, %v2098_v6  ;;  %2708 = vmatpush.msrb.mxu1 %v6300_v37  ;;  %2748 = vmatpush.msra.mxu3 %v6310_v10  ;;  %v7725_v1 = vld [vmem:[#allocation54_spill] sm:$0xff]  ;;  %v7726_v54 = vld [vmem:[#allocation55_spill] sm:$0xff]  ;;  %v7727_v6 = vld [vmem:[#allocation56_spill] sm:$0xff] }
 0x5b5   :  { %v2090_v18 = vsel %vm2087_vm12, %v2089_v62, %v2085_v3  ;;  %v2113_v2 = vmul.f32 %v4519_v4, %v2071_v47  ;;  %2727 = vmatpush.msra.mxu2 %v6296_v19  ;;  %2689 = vmatpush.msrb.mxu0 %v6306_v57  ;;  %v7728_v29 = vld [vmem:[#allocation57_spill] sm:$0xff]  ;;  %v7729_v62 = vld [vmem:[#allocation26_spill] sm:$0xff]  ;;  %v7730_v4 = vmov 0.0   ;;  %v7731_v47 = vld [vmem:[#allocation59_spill] sm:$0xff] }
 0x5b6   :  { %v2112_v52 = vmul.f32 %v2090_v18, %v6185_v24  ;;  %v2100_v0 = vmul.f32 %v6435_v13, %v2099_v40  ;;  %v2108_v24 = vand.u32 2147483648, %v6406_v23  ;;  %2709 = vmatpush.msrb.mxu1 %v6308_v21  ;;  %2749 = vmatpush.msra.mxu3 %v6317_v39  ;;  %v7732_v3 = vld [vmem:[#allocation41_spill] sm:$0xff]  ;;  %v7733_v40 = vld [vmem:[#allocation27_spill] sm:$0xff]  ;;  %v7734_v18 = vld [vmem:[#allocation30_spill] sm:$0xff] }
 0x5b7   :  { %2728 = vmatpush.msra.mxu2 %v6330_v44  ;;  %2690 = vmatpush.msrb.mxu0 %v6313_v48 }
 0x5b8   :  { %v2114_v43 = vadd.f32 %v2113_v2, %v2112_v52  ;;  %v2101_v38 = vadd.f32 %v6435_v13, %v2100_v0  ;;  %v2109_v46 = vor.u32 1.1754944e-38, %v2108_v24  ;;  %2710 = vmatpush.msrb.mxu1 %v6315_v33  ;;  %2750 = vmatpush.msra.mxu3 %v6323_v5  ;;  %v7735_v2 = vld [vmem:[#allocation29_spill] sm:$0xff] }
 0x5b9   :  { %2729 = vmatpush.msra.mxu2 %v6336_v15  ;;  %2691 = vmatpush.msrb.mxu0 %v6326_v20 }
 0x5ba   :  { %4520 = vtanh.f32 %v2114_v43  ;;  %v2105_v34 = vsel %vm2104_vm15, %v6435_v13, %v2101_v38  ;;  %2711 = vmatpush.msrb.mxu1 %v6328_v25  ;;  %2751 = vmatpush.msra.mxu3 %v6334_v60  ;;  %v7723_v13 = vld [vmem:[#allocation58_spill] sm:$0xff] }
 0x5bb   :  { %v2110_v50 = vsel %vm2107_vm0, %v2109_v46, %v2105_v34  ;;  %2730 = vmatpush.msra.mxu2 %v6348_v32  ;;  %2692 = vmatpush.msrb.mxu0 %v6340_v14 }
 0x5bc   :  { %2712 = vmatpush.msrb.mxu1 %v7721_v53  ;;  %2752 = vmatpush.msra.mxu3 %v7722_v42 }
 0x5bd   :  { %2731 = vmatpush.msra.mxu2 %v6360_v56  ;;  %2693 = vmatpush.msrb.mxu0 %v7724_v16 }
 0x5be   :  { %2713 = vmatpush.msrb.mxu1 %v7725_v1  ;;  %2753 = vmatpush.msra.mxu3 %v7726_v54 }
 0x5bf   :  { %2732 = vmatpush.msra.mxu2 %v7723_v13  ;;  %2694 = vmatpush.msrb.mxu0 %v7727_v6 }
 0x5c0   :  { %v4521_v23 = vpop.eup %4520  ;;  %2714 = vmatpush.msrb.mxu1 %v7728_v29  ;;  %2754 = vmatpush.msra.mxu3 %v7729_v62 }
 0x5c1   :  { %v2116_v51 = vmul.f32 %v4521_v23, %v2110_v50  ;;  %2733 = vmatpush.msra.mxu2 %v6388_v49  ;;  %2695 = vmatpush.msrb.mxu0 %v6380_v12 }
 0x5c2   :  { %2715 = vmatpush.msrb.mxu1 %v7731_v47  ;;  %2755 = vmatpush.msra.mxu3 %v7732_v3 }
 0x5c3   :  { %2238 = vmatmul.f32.gmra.mxu0 %v2116_v51  ;;  %2279 = vmatmul.f32.gmra.mxu1 %v2116_v51 }
 0x5c4   :  { %2320 = vmatmul.f32.gmra.mxu2 %v2116_v51  ;;  %2361 = vmatmul.f32.gmra.mxu3 %v2116_v51 }
 0x5c5   :  { %2734 = vmatpush.msra.mxu2 %v6400_v22  ;;  %2696 = vmatpush.msrb.mxu0 %v7733_v40 }
 0x5c6   :  { %2716 = vmatpush.msrb.mxu1 %v7734_v18  ;;  %2756 = vmatpush.msra.mxu3 %v7735_v2 }
 0x5c7   :  { %2735 = vmatpush.msra.mxu2 %v6412_v35 }
 0x5c9   :  { %2736 = vmatpush.msra.mxu2 %v6419_v31 }
 0x5cb   :  { %2481 = vmatmul.f32.vlgmr.msra.gmra.mxu0 %v7730_v4  ;;  %2501 = vmatmul.f32.vlgmr.msra.gmra.mxu1 %v7730_v4 }
 0x5cc   :  { %2521 = vmatmul.f32.vlgmr.msrb.gmra.mxu2 %v7730_v4  ;;  %2541 = vmatmul.f32.vlgmr.msrb.gmra.mxu3 %v7730_v4  ;;  %v2191_v4 = vld [vmem:[%s7443_s6] sm:$0xf] }
 0x5cd   :  { %2937 = vmatpush.msrb.mxu2 %v6236_v61  ;;  %v2218_v61 = vpop.f32.mrf.mxu0 }
 0x5cf   :  { %2938 = vmatpush.msrb.mxu2 %v6239_v30  ;;  %v2259_v30 = vpop.f32.mrf.mxu1 }
 0x5d1   :  { %2939 = vmatpush.msrb.mxu2 %v6244_v9  ;;  %v2341_v9 = vpop.f32.mrf.mxu3 }
 0x5d3   :  { %2940 = vmatpush.msrb.mxu2 %v6260_v59 }
 0x5d5   :  { %2941 = vmatpush.msrb.mxu2 %v6268_v45  ;;  %v6527_v59 = vpop.f32.mrf.mxu0 }
 0x5d7   :  { %2942 = vmatpush.msrb.mxu2 %v6284_v36  ;;  %v6529_v45 = vpop.f32.mrf.mxu1  ;;  %v2300_v36 = vpop.f32.mrf.mxu2 }
 0x5d9   :  { %2943 = vmatpush.msrb.mxu2 %v6296_v19  ;;  %v6531_v19 = vpop.f32.mrf.mxu3 }
 0x5db   :  { %2944 = vmatpush.msrb.mxu2 %v6330_v44 }
 0x5dd   :  { %2945 = vmatpush.msrb.mxu2 %v6336_v15  ;;  %v6533_v44 = vpop.f32.mrf.mxu0 }
 0x5de   :  { %7736 = vst [vmem:[#allocation18_spill] sm:$0xff] %v6533_v44 }
 0x5df   :  { %2946 = vmatpush.msrb.mxu2 %v6348_v32  ;;  %v6535_v15 = vpop.f32.mrf.mxu1  ;;  %v6537_v32 = vpop.f32.mrf.mxu2 }
 0x5e0   :  { %7737 = vst [vmem:[#allocation19_spill] sm:$0xff] %v6535_v15 }
 0x5e1   :  { %2947 = vmatpush.msrb.mxu2 %v6360_v56  ;;  %7738 = vst [vmem:[#allocation33_spill] sm:$0xff] %v6537_v32  ;;  %v6539_v56 = vpop.f32.mrf.mxu3 }
 0x5e2   :  { %7739 = vst [vmem:[#allocation32_spill] sm:$0xff] %v6539_v56 }
 0x5e3   :  { %2948 = vmatpush.msrb.mxu2 %v7723_v13 }
 0x5e5   :  { %2949 = vmatpush.msrb.mxu2 %v6388_v49 }
 0x5e7   :  { %2950 = vmatpush.msrb.mxu2 %v6400_v22  ;;  %v6541_v22 = vpop.f32.mrf.mxu0  ;;  %v6545_v49 = vpop.f32.mrf.mxu2 }
 0x5e8   :  { %7740 = vst [vmem:[#allocation20_spill] sm:$0xff] %v6541_v22 }
 0x5e9   :  { %2951 = vmatpush.msrb.mxu2 %v6412_v35  ;;  %7742 = vst [vmem:[#allocation35_spill] sm:$0xff] %v6545_v49  ;;  %v6547_v35 = vpop.f32.mrf.mxu3 }
 0x5ea   :  { %7743 = vst [vmem:[#allocation34_spill] sm:$0xff] %v6547_v35  ;;  %v6590_v35 = vperm.slane %v2191_v4, 3 }
 0x5eb   :  { %2952 = vmatpush.msrb.mxu2 %v6419_v31  ;;  %v6543_v31 = vpop.f32.mrf.mxu1 }
 0x5ec   :  { %7741 = vst [vmem:[#allocation21_spill] sm:$0xff] %v6543_v31  ;;  %v2342_v31 = vadd.f32 %v2341_v9, %v6590_v35 }
 0x5ed   :  { %7762 = vst [vmem:[#allocation60_spill] sm:$0xff] %v6590_v35 }
 0x5ef   :  { %v6549_v52 = vpop.f32.mrf.mxu0  ;;  %v6553_v43 = vpop.f32.mrf.mxu2 }
 0x5f0   :  { %7744 = vst [vmem:[#allocation44_spill] sm:$0xff] %v6549_v52 }
 0x5f1   :  { %7746 = vst [vmem:[#allocation61_spill] sm:$0xff] %v6553_v43  ;;  %v6555_v38 = vpop.f32.mrf.mxu3 }
 0x5f2   :  { %7747 = vst [vmem:[#allocation48_spill] sm:$0xff] %v6555_v38 }
 0x5f3   :  { %v6551_v0 = vpop.f32.mrf.mxu1 }
 0x5f4   :  { %7745 = vst [vmem:[#allocation45_spill] sm:$0xff] %v6551_v0 }
 0x5f7   :  { %v6557_v24 = vpop.f32.mrf.mxu0  ;;  %v6561_v34 = vpop.f32.mrf.mxu2 }
 0x5f8   :  { %7748 = vst [vmem:[#allocation49_spill] sm:$0xff] %v6557_v24 }
 0x5f9   :  { %7750 = vst [vmem:[#allocation62_spill] sm:$0xff] %v6561_v34  ;;  %v6563_v46 = vpop.f32.mrf.mxu3  ;;  %v6582_v34 = vperm.slane %v2191_v4, 1 }
 0x5fa   :  { %7751 = vst [vmem:[#allocation50_spill] sm:$0xff] %v6563_v46 }
 0x5fb   :  { %v6559_v17 = vpop.f32.mrf.mxu1  ;;  %7759 = vst [vmem:[#allocation42_spill] sm:$0xff] %v6582_v34 }
 0x5fc   :  { %7749 = vst [vmem:[#allocation43_spill] sm:$0xff] %v6559_v17  ;;  %v6580_v17 = vperm.slane %v2191_v4, 0 }
 0x5fe   :  { %7758 = vst [vmem:[#allocation36_spill] sm:$0xff] %v6580_v17 }
 0x5ff   :  { %v6565_v23 = vpop.f32.mrf.mxu0  ;;  %v6569_v51 = vpop.f32.mrf.mxu2 }
 0x600   :  { %7752 = vst [vmem:[#allocation28_spill] sm:$0xff] %v6565_v23  ;;  %v2219_v23 = vadd.f32 %v2218_v61, %v6580_v17 }
 0x601   :  { %7754 = vst [vmem:[#allocation31_spill] sm:$0xff] %v6569_v51  ;;  %v6571_v13 = vpop.f32.mrf.mxu3 }
 0x602   :  { %7755 = vst [vmem:[#allocation23_spill] sm:$0xff] %v6571_v13 }
 0x603   :  { %v6567_v50 = vpop.f32.mrf.mxu1 }
 0x604   :  { %7753 = vst [vmem:[#allocation22_spill] sm:$0xff] %v6567_v50  ;;  %v2260_v50 = vadd.f32 %v2259_v30, %v6582_v34 }
 0x607   :  { %v6586_v46 = vpop.f32.mrf.mxu2 }
 0x608   :  { %7760 = vst [vmem:[#allocation47_spill] sm:$0xff] %v6586_v46 }
 0x640   :  { %v6576_v38 = vpop.f32.mrf.mxu0  ;;  %v6578_v24 = vpop.f32.mrf.mxu1 }
 0x641   :  { %7756 = vst [vmem:[#allocation40_spill] sm:$0xff] %v6576_v38 }
 0x642   :  { %7757 = vst [vmem:[#allocation37_spill] sm:$0xff] %v6578_v24 }
 0x647   :  { %v6588_v51 = vpop.f32.mrf.mxu3  ;;  %v6593_v22 = vpop.f32.mrf.mxu2 }
 0x648   :  { %7761 = vst [vmem:[#allocation46_spill] sm:$0xff] %v6588_v51  ;;  %v2482_v13 = vpop.f32.mrf.mxu0  ;;  %v2502_v0 = vpop.f32.mrf.mxu1 }
 0x649   :  { %v2545_v52 = vadd.f32 %v2482_v13, %v2219_v23  ;;  %v2546_v43 = vadd.f32 %v2502_v0, %v2260_v50  ;;  %7763 = vst [vmem:[#allocation63_spill] sm:$0xff] %v6593_v22  ;;  %v6595_v23 = vperm.slane %v2191_v4, 2 }
 0x64b   :  { %v4355_v38 = vmul.f32 -1.442695, %v2545_v52  ;;  %v4356_v24 = vmul.f32 -1.442695, %v2546_v43  ;;  %7764 = vst [vmem:[#allocation24_spill] sm:$0xff] %v6595_v23  ;;  %v2301_v43 = vadd.f32 %v2300_v36, %v6595_v23 }
 0x64d   :  { %4522 = vpow2.f32 %v4355_v38 }
 0x64e   :  { %4524 = vpow2.f32 %v4356_v24 }
 0x64f   :  { %v2542_v61 = vpop.f32.mrf.mxu3  ;;  %v2522_v52 = vpop.f32.mrf.mxu2 }
 0x650   :  { %v2548_v30 = vadd.f32 %v2542_v61, %v2342_v31  ;;  %v2547_v24 = vadd.f32 %v2522_v52, %v2301_v43 }
 0x652   :  { %v4357_v49 = vmul.f32 -1.442695, %v2548_v30 }
 0x653   :  { %v4523_v46 = vpop.eup %4522 }
 0x654   :  { %v4525_v56 = vpop.eup %4524  ;;  %v2552_v51 = vadd.f32 1.0, %v4523_v46  ;;  %4526 = vpow2.f32 %v4357_v49 }
 0x655   :  { %v2571_v15 = vadd.f32 1.0, %v4525_v56 }
 0x656   :  { %4528 = vrcp.f32 %v2552_v51  ;;  %v2564_v46 = vand.u32 2147483648, %v2552_v51  ;;  %v2562_v4 = vand.u32 2147483647, %v2552_v51  ;;  %vm2558_vm3 = vweird.f32 %v2552_v51 }
 0x657   :  { %4530 = vrcp.f32 %v2571_v15  ;;  %v2583_v56 = vand.u32 2147483648, %v2571_v15  ;;  %v2581_v44 = vand.u32 2147483647, %v2571_v15  ;;  %vm2577_vm4 = vweird.f32 %v2571_v15 }
 0x658   :  { %v2565_v52 = vor.u32 1.1754944e-38, %v2564_v46  ;;  %vm2563_vm6 = vcmp.eq.f32.partialorder %v2562_v4, 8.507059e+37  ;;  %v6627_v4 = vld [vmem:[#allocation9 + $0x1a8] sm:$0xff] }
 0x659   :  { %v2584_v23 = vor.u32 1.1754944e-38, %v2583_v56  ;;  %vm2582_vm8 = vcmp.eq.f32.partialorder %v2581_v44, 8.507059e+37 }
 0x65a   :  { %v4527_v0 = vpop.eup %4526 }
 0x65b   :  { %v2591_v9 = vadd.f32 1.0, %v4527_v0 }
 0x65c   :  { %v4529_v38 = vpop.eup %4528 }
 0x65d   :  { %v4531_v50 = vpop.eup %4530  ;;  %v2554_v13 = vmul.f32 %v4529_v38, %v2552_v51  ;;  %4532 = vrcp.f32 %v2591_v9  ;;  %vm2559_vm1 = vweird.f32 %v4529_v38  ;;  %vm2597_vm10 = vweird.f32 %v2591_v9 }
 0x65e   :  { %v2573_v31 = vmul.f32 %v4531_v50, %v2571_v15  ;;  %4534 = vtanh.f32 %v2547_v24  ;;  %vm2578_vm2 = vweird.f32 %v4531_v50  ;;  %vm2560_vm5 = vmor %vm2558_vm3, %vm2559_vm1  ;;  %v2601_v51 = vand.u32 2147483647, %v2591_v9 }
 0x65f   :  { %v2555_v61 = vsub.f32 1.0, %v2554_v13  ;;  %vm2579_vm7 = vmor %vm2577_vm4, %vm2578_vm2 }
 0x660   :  { %v2574_v30 = vsub.f32 1.0, %v2573_v31  ;;  %vm2602_vm12 = vcmp.eq.f32.partialorder %v2601_v51, 8.507059e+37 }
 0x661   :  { %v2556_v49 = vmul.f32 %v4529_v38, %v2555_v61 }
 0x662   :  { %v2575_v22 = vmul.f32 %v4531_v50, %v2574_v30 }
 0x663   :  { %v4533_v32 = vpop.eup %4532  ;;  %v2557_v36 = vadd.f32 %v4529_v38, %v2556_v49 }
 0x664   :  { %v2576_v0 = vadd.f32 %v4531_v50, %v2575_v22  ;;  %v2593_v43 = vmul.f32 %v4533_v32, %v2591_v9  ;;  %v4535_v24 = vpop.eup %4534  ;;  %vm2598_vm9 = vweird.f32 %v4533_v32  ;;  %v2603_v22 = vand.u32 2147483648, %v2591_v9  ;;  %v6625_v9 = vld [vmem:[#allocation9 + $0x1a0] sm:$0xff] }
 0x665   :  { %v2561_v13 = vsel %vm2560_vm5, %v4529_v38, %v2557_v36  ;;  %vm2599_vm11 = vmor %vm2597_vm10, %vm2598_vm9  ;;  %v6632_v36 = vld [vmem:[#allocation9 + $0x180] sm:$0xff] }
 0x666   :  { %v2566_v31 = vsel %vm2563_vm6, %v2565_v52, %v2561_v13  ;;  %v2580_v61 = vsel %vm2579_vm7, %v4531_v50, %v2576_v0  ;;  %v2594_v2 = vsub.f32 1.0, %v2593_v43  ;;  %v2604_v46 = vor.u32 1.1754944e-38, %v2603_v22  ;;  %v6634_v52 = vld [vmem:[#allocation9 + $0x188] sm:$0xff]  ;;  %v6639_v0 = vld [vmem:[#allocation9 + $0x160] sm:$0xff] }
 0x667   :  { %v2585_v30 = vsel %vm2582_vm8, %v2584_v23, %v2580_v61  ;;  %v2608_v18 = vmul.f32 %v4535_v24, %v2566_v31  ;;  %v6620_v23 = vld [vmem:[#allocation9 + $0x1d8] sm:$0xff]  ;;  %v6641_v43 = vld [vmem:[#allocation9 + $0x168] sm:$0xff] }
 0x668   :  { %v2607_v40 = vmul.f32 0.0, %v2585_v30  ;;  %v2595_v3 = vmul.f32 %v4533_v32, %v2594_v2  ;;  %v6616_v2 = vld [vmem:[#allocation9 + $0x1c0] sm:$0xff] }
 0x66a   :  { %v6598_v49 = vadd.f32 %v2608_v18, %v2607_v40  ;;  %v2596_v15 = vadd.f32 %v4533_v32, %v2595_v3  ;;  %v6607_v3 = vld [vmem:[#allocation9 + $0x1e0] sm:$0xff]  ;;  %v6609_v40 = vld [vmem:[#allocation9 + $0x1e8] sm:$0xff]  ;;  %v6611_v18 = vld [vmem:[#allocation9 + $0x1f8] sm:$0xff] }
 0x66b   :  { %2897 = vmatpush.msra.mxu0 %v6607_v3  ;;  %2917 = vmatpush.msra.mxu1 %v6609_v40 }
 0x66c   :  { %4536 = vtanh.f32 %v6598_v49  ;;  %v2600_v38 = vsel %vm2599_vm11, %v4533_v32, %v2596_v15  ;;  %2957 = vmatpush.msrb.mxu3 %v6611_v18  ;;  %v6618_v32 = vld [vmem:[#allocation9 + $0x1c8] sm:$0xff] }
 0x66d   :  { %v2605_v44 = vsel %vm2602_vm12, %v2604_v46, %v2600_v38  ;;  %2898 = vmatpush.msra.mxu0 %v6616_v2  ;;  %2918 = vmatpush.msra.mxu1 %v6618_v32 }
 0x66e   :  { %2958 = vmatpush.msrb.mxu3 %v6620_v23 }
 0x66f   :  { %2899 = vmatpush.msra.mxu0 %v6625_v9  ;;  %2919 = vmatpush.msra.mxu1 %v6627_v4 }
 0x670   :  { %2959 = vmatpush.msrb.mxu3 %v6242_v7  ;;  %v2222_v7 = vadd.f32 %v6527_v59, %v6580_v17 }
 0x671   :  { %2900 = vmatpush.msra.mxu0 %v6632_v36  ;;  %2920 = vmatpush.msra.mxu1 %v6634_v52 }
 0x672   :  { %v4537_v50 = vpop.eup %4536  ;;  %2960 = vmatpush.msrb.mxu3 %v6258_v63  ;;  %v2263_v63 = vadd.f32 %v6529_v45, %v6582_v34 }
 0x673   :  { %v6601_v56 = vmul.f32 %v4537_v50, %v2605_v44  ;;  %2901 = vmatpush.msra.mxu0 %v6639_v0  ;;  %2921 = vmatpush.msra.mxu1 %v6641_v43 }
 0x674   :  { %2961 = vmatpush.msrb.mxu3 %v6266_v27 }
 0x675   :  { %7765 = vst [vmem:[#allocation25_spill] sm:$0xff] %v6601_v56  ;;  %2697 = vmatmul.f32.vlgmr.msrb.gmra.mxu0 %v6601_v56  ;;  %2717 = vmatmul.f32.vlgmr.msrb.gmra.mxu1 %v6601_v56 }
 0x676   :  { %2737 = vmatmul.f32.vlgmr.msra.gmra.mxu2 %v6601_v56  ;;  %2757 = vmatmul.f32.vlgmr.msra.gmra.mxu3 %v6601_v56  ;;  %v6837_v56 = vld [vmem:[#allocation9 + $0x50] sm:$0xff] }
 0x677   :  { %2902 = vmatpush.msra.mxu0 %v6276_v41  ;;  %2922 = vmatpush.msra.mxu1 %v6278_v28 }
 0x678   :  { %2962 = vmatpush.msrb.mxu3 %v6280_v55 }
 0x679   :  { %2903 = vmatpush.msra.mxu0 %v6286_v8  ;;  %2923 = vmatpush.msra.mxu1 %v6288_v26 }
 0x67a   :  { %2963 = vmatpush.msrb.mxu3 %v6291_v58  ;;  %v2345_v58 = vadd.f32 %v6531_v19, %v6590_v35 }
 0x67b   :  { %2904 = vmatpush.msra.mxu0 %v6298_v11  ;;  %2924 = vmatpush.msra.mxu1 %v6300_v37 }
 0x67c   :  { %2964 = vmatpush.msrb.mxu3 %v6310_v10 }
 0x67d   :  { %2905 = vmatpush.msra.mxu0 %v6306_v57  ;;  %2925 = vmatpush.msra.mxu1 %v6308_v21 }
 0x67e   :  { %2965 = vmatpush.msrb.mxu3 %v6317_v39 }
 0x67f   :  { %2906 = vmatpush.msra.mxu0 %v6313_v48  ;;  %2926 = vmatpush.msra.mxu1 %v6315_v33  ;;  %v7766_v33 = vld [vmem:[#allocation41_spill] sm:$0xff] }
 0x680   :  { %2966 = vmatpush.msrb.mxu3 %v6323_v5  ;;  %v7767_v5 = vld [vmem:[#allocation27_spill] sm:$0xff] }
 0x681   :  { %2907 = vmatpush.msra.mxu0 %v6326_v20  ;;  %2927 = vmatpush.msra.mxu1 %v6328_v25  ;;  %v7768_v20 = vld [vmem:[#allocation30_spill] sm:$0xff]  ;;  %v7769_v25 = vld [vmem:[#allocation29_spill] sm:$0xff] }
 0x682   :  { %2967 = vmatpush.msrb.mxu3 %v6334_v60 }
 0x683   :  { %2908 = vmatpush.msra.mxu0 %v6340_v14  ;;  %2928 = vmatpush.msra.mxu1 %v7721_v53  ;;  %v7771_v53 = vld [vmem:[#allocation33_spill] sm:$0xff] }
 0x684   :  { %2968 = vmatpush.msrb.mxu3 %v7722_v42 }
 0x685   :  { %2909 = vmatpush.msra.mxu0 %v7724_v16  ;;  %2929 = vmatpush.msra.mxu1 %v7725_v1 }
 0x686   :  { %2969 = vmatpush.msrb.mxu3 %v7726_v54 }
 0x687   :  { %2910 = vmatpush.msra.mxu0 %v7727_v6  ;;  %2930 = vmatpush.msra.mxu1 %v7728_v29 }
 0x688   :  { %2970 = vmatpush.msrb.mxu3 %v7729_v62 }
 0x689   :  { %2911 = vmatpush.msra.mxu0 %v6380_v12  ;;  %2931 = vmatpush.msra.mxu1 %v7731_v47  ;;  %v7770_v12 = vld [vmem:[#allocation24_spill] sm:$0xff] }
 0x68a   :  { %2971 = vmatpush.msrb.mxu3 %v7766_v33  ;;  %v2304_v42 = vadd.f32 %v7771_v53, %v7770_v12  ;;  %v6729_v53 = vld [vmem:[#allocation9 + $0x178] sm:$0xff] }
 0x68b   :  { %2912 = vmatpush.msra.mxu0 %v7767_v5  ;;  %2932 = vmatpush.msra.mxu1 %v7768_v20  ;;  %v6715_v5 = vld [vmem:[#allocation9 + $0x1b0] sm:$0xff]  ;;  %v6717_v20 = vld [vmem:[#allocation9 + $0x1b8] sm:$0xff] }
 0x68c   :  { %2972 = vmatpush.msrb.mxu3 %v7769_v25  ;;  %v6721_v25 = vld [vmem:[#allocation9 + $0x190] sm:$0xff] }
 0x68d   :  { %3113 = vmatpush.msrb.mxu0 %v6607_v3  ;;  %3133 = vmatpush.msrb.mxu1 %v6609_v40 }
 0x68e   :  { %3173 = vmatpush.msra.mxu3 %v6611_v18 }
 0x68f   :  { %3114 = vmatpush.msrb.mxu0 %v6616_v2  ;;  %3134 = vmatpush.msrb.mxu1 %v6618_v32 }
 0x690   :  { %3174 = vmatpush.msra.mxu3 %v6620_v23 }
 0x691   :  { %3115 = vmatpush.msrb.mxu0 %v6625_v9  ;;  %3135 = vmatpush.msrb.mxu1 %v6627_v4 }
 0x692   :  { %3175 = vmatpush.msra.mxu3 %v6717_v20 }
 0x693   :  { %3116 = vmatpush.msrb.mxu0 %v6632_v36  ;;  %3136 = vmatpush.msrb.mxu1 %v6634_v52 }
 0x695   :  { %3117 = vmatpush.msrb.mxu0 %v6639_v0  ;;  %3137 = vmatpush.msrb.mxu1 %v6641_v43 }
 0x6f2   :  { %v2698_v27 = vpop.f32.mrf.mxu0  ;;  %v2718_v41 = vpop.f32.mrf.mxu1 }
 0x6f3   :  { %v2761_v28 = vadd.f32 %v2698_v27, %v2222_v7  ;;  %v2762_v55 = vadd.f32 %v2718_v41, %v2263_v63 }
 0x6f5   :  { %v4358_v8 = vmul.f32 -1.442695, %v2761_v28  ;;  %v4359_v26 = vmul.f32 -1.442695, %v2762_v55 }
 0x6f7   :  { %4538 = vpow2.f32 %v4358_v8 }
 0x6f8   :  { %4540 = vpow2.f32 %v4359_v26 }
 0x6f9   :  { %v2758_v11 = vpop.f32.mrf.mxu3  ;;  %v2738_v60 = vpop.f32.mrf.mxu2 }
 0x6fa   :  { %v2764_v37 = vadd.f32 %v2758_v11, %v2345_v58  ;;  %v2763_v54 = vadd.f32 %v2738_v60, %v2304_v42  ;;  %v6723_v60 = vld [vmem:[#allocation9 + $0x198] sm:$0xff]  ;;  %v6733_v42 = vld [vmem:[#allocation9 + $0x140] sm:$0xff] }
 0x6fb   :  { %3176 = vmatpush.msra.mxu3 %v6723_v60  ;;  %3118 = vmatpush.msrb.mxu0 %v6733_v42 }
 0x6fc   :  { %v4360_v57 = vmul.f32 -1.442695, %v2764_v37 }
 0x6fd   :  { %v4539_v21 = vpop.eup %4538  ;;  %3177 = vmatpush.msra.mxu3 %v6729_v53 }
 0x6fe   :  { %v4541_v10 = vpop.eup %4540  ;;  %v2768_v48 = vadd.f32 1.0, %v4539_v21  ;;  %4542 = vpow2.f32 %v4360_v57 }
 0x6ff   :  { %v2787_v39 = vadd.f32 1.0, %v4541_v10 }
 0x700   :  { %4544 = vrcp.f32 %v2768_v48  ;;  %v2780_v45 = vand.u32 2147483648, %v2768_v48  ;;  %v2778_v24 = vand.u32 2147483647, %v2768_v48  ;;  %vm2774_vm15 = vweird.f32 %v2768_v48 }
 0x701   :  { %4546 = vrcp.f32 %v2787_v39  ;;  %v2799_v19 = vand.u32 2147483648, %v2787_v39  ;;  %v2797_v61 = vand.u32 2147483647, %v2787_v39  ;;  %vm2793_vm0 = vweird.f32 %v2787_v39 }
 0x702   :  { %v2781_v22 = vor.u32 1.1754944e-38, %v2780_v45  ;;  %vm2779_vm3 = vcmp.eq.f32.partialorder %v2778_v24, 8.507059e+37  ;;  %v6759_v45 = vld [vmem:[#allocation9 + $0x108] sm:$0xff]  ;;  %v6769_v24 = vld [vmem:[#allocation9 + $0xe0] sm:$0xff] }
 0x703   :  { %v2800_v46 = vor.u32 1.1754944e-38, %v2799_v19  ;;  %vm2798_vm4 = vcmp.eq.f32.partialorder %v2797_v61, 8.507059e+37  ;;  %v6761_v19 = vld [vmem:[#allocation9 + $0x110] sm:$0xff] }
 0x704   :  { %v4543_v14 = vpop.eup %4542  ;;  %v6773_v61 = vld [vmem:[#allocation9 + $0xf0] sm:$0xff] }
 0x705   :  { %v2807_v16 = vadd.f32 1.0, %v4543_v14  ;;  %v6727_v14 = vld [vmem:[#allocation9 + $0x170] sm:$0xff] }
 0x706   :  { %v4545_v1 = vpop.eup %4544 }
 0x707   :  { %v4547_v6 = vpop.eup %4546  ;;  %v2770_v29 = vmul.f32 %v4545_v1, %v2768_v48  ;;  %4548 = vrcp.f32 %v2807_v16  ;;  %vm2775_vm13 = vweird.f32 %v4545_v1  ;;  %v2819_v11 = vand.u32 2147483648, %v2807_v16 }
 0x708   :  { %v2789_v62 = vmul.f32 %v4547_v6, %v2787_v39  ;;  %4550 = vtanh.f32 %v2763_v54  ;;  %vm2794_vm14 = vweird.f32 %v4547_v6  ;;  %vm2776_vm1 = vmor %vm2774_vm15, %vm2775_vm13  ;;  %vm2813_vm6 = vweird.f32 %v2807_v16  ;;  %v6712_v39 = vld [vmem:[#allocation9 + $0x1d0] sm:$0xff]  ;;  %v6741_v54 = vld [vmem:[#allocation9 + $0x158] sm:$0xff] }
 0x709   :  { %v2771_v47 = vsub.f32 1.0, %v2770_v29  ;;  %vm2795_vm2 = vmor %vm2793_vm0, %vm2794_vm14  ;;  %v2817_v37 = vand.u32 2147483647, %v2807_v16  ;;  %v2820_v21 = vor.u32 1.1754944e-38, %v2819_v11  ;;  %3178 = vmatpush.msra.mxu3 %v6741_v54  ;;  %v6747_v29 = vld [vmem:[#allocation9 + $0x128] sm:$0xff] }
 0x70a   :  { %v2790_v59 = vsub.f32 1.0, %v2789_v62  ;;  %v6749_v62 = vld [vmem:[#allocation9 + $0x130] sm:$0xff] }
 0x70b   :  { %v2772_v13 = vmul.f32 %v4545_v1, %v2771_v47  ;;  %vm2818_vm8 = vcmp.eq.f32.partialorder %v2817_v37, 8.507059e+37  ;;  %v6753_v47 = vld [vmem:[#allocation9 + $0x138] sm:$0xff] }
 0x70c   :  { %v2791_v31 = vmul.f32 %v4547_v6, %v2790_v59  ;;  %7773 = vst [vmem:[#allocation38_spill] sm:$0xff] %v6753_v47  ;;  %3179 = vmatpush.msra.mxu3 %v6753_v47  ;;  %v6757_v59 = vld [vmem:[#allocation9 + $0x100] sm:$0xff] }
 0x70d   :  { %v4549_v30 = vpop.eup %4548  ;;  %v2773_v15 = vadd.f32 %v4545_v1, %v2772_v13  ;;  %v6765_v13 = vld [vmem:[#allocation9 + $0x118] sm:$0xff] }
 0x70e   :  { %v2792_v51 = vadd.f32 %v4547_v6, %v2791_v31  ;;  %v2809_v38 = vmul.f32 %v4549_v30, %v2807_v16  ;;  %v4551_v44 = vpop.eup %4550  ;;  %vm2814_vm5 = vweird.f32 %v4549_v30  ;;  %v6735_v16 = vld [vmem:[#allocation9 + $0x148] sm:$0xff]  ;;  %3180 = vmatpush.msra.mxu3 %v6765_v13 }
 0x70f   :  { %v2777_v50 = vsel %vm2776_vm1, %v4545_v1, %v2773_v15  ;;  %vm2815_vm7 = vmor %vm2813_vm6, %vm2814_vm5  ;;  %v6737_v1 = vld [vmem:[#allocation9 + $0x150] sm:$0xff]  ;;  %3138 = vmatpush.msrb.mxu1 %v6735_v16  ;;  %v6771_v31 = vld [vmem:[#allocation9 + $0xe8] sm:$0xff] }
 0x710   :  { %v2782_v7 = vsel %vm2779_vm3, %v2781_v22, %v2777_v50  ;;  %v2796_v63 = vsel %vm2795_vm2, %v4547_v6, %v2792_v51  ;;  %v2810_v27 = vsub.f32 1.0, %v2809_v38  ;;  %v6745_v6 = vld [vmem:[#allocation9 + $0x120] sm:$0xff]  ;;  %v7775_v22 = vld [vmem:[#allocation19_spill] sm:$0xff]  ;;  %v6781_v38 = vld [vmem:[#allocation9 + $0xf8] sm:$0xff] }
 0x711   :  { %v2801_v41 = vsel %vm2798_vm4, %v2800_v46, %v2796_v63  ;;  %v2824_v28 = vmul.f32 %v4551_v44, %v2782_v7  ;;  %3119 = vmatpush.msrb.mxu0 %v6745_v6  ;;  %3139 = vmatpush.msrb.mxu1 %v6747_v29  ;;  %v2266_v51 = vadd.f32 %v7775_v22, %v6582_v34  ;;  %v6785_v44 = vld [vmem:[#allocation9 + $0xc0] sm:$0xff]  ;;  %v6787_v7 = vld [vmem:[#allocation9 + $0xc8] sm:$0xff]  ;;  %v6789_v63 = vld [vmem:[#allocation9 + $0xd0] sm:$0xff] }
 0x712   :  { %v2823_v55 = vmul.f32 %v2801_v41, %v6598_v49  ;;  %v2811_v8 = vmul.f32 %v4549_v30, %v2810_v27  ;;  %v6709_v49 = vld [vmem:[#allocation9 + $0x1f0] sm:$0xff]  ;;  %3181 = vmatpush.msra.mxu3 %v6781_v38  ;;  %v6821_v22 = vld [vmem:[#allocation9 + $0x68] sm:$0xff] }
 0x713   :  { %3153 = vmatpush.msra.mxu2 %v6709_v49  ;;  %3120 = vmatpush.msrb.mxu0 %v6757_v59  ;;  %7778 = vst [vmem:[#allocation58_spill] sm:$0xff] %v6821_v22  ;;  %v6845_v34 = vld [vmem:[#allocation9 + $0x28] sm:$0xff] }
 0x714   :  { %v6700_v26 = vadd.f32 %v2824_v28, %v2823_v55  ;;  %v2812_v58 = vadd.f32 %v4549_v30, %v2811_v8  ;;  %3140 = vmatpush.msrb.mxu1 %v6759_v45  ;;  %v6793_v28 = vld [vmem:[#allocation9 + $0xd8] sm:$0xff]  ;;  %v6797_v55 = vld [vmem:[#allocation9 + $0xa0] sm:$0xff]  ;;  %v6799_v8 = vld [vmem:[#allocation9 + $0xa8] sm:$0xff] }
 0x715   :  { %3154 = vmatpush.msra.mxu2 %v6712_v39  ;;  %3121 = vmatpush.msrb.mxu0 %v6769_v24 }
 0x716   :  { %4552 = vtanh.f32 %v6700_v26  ;;  %v2816_v57 = vsel %vm2815_vm7, %v4549_v30, %v2812_v58  ;;  %v7774_v30 = vld [vmem:[#allocation18_spill] sm:$0xff]  ;;  %3141 = vmatpush.msrb.mxu1 %v6771_v31  ;;  %3182 = vmatpush.msra.mxu3 %v6793_v28  ;;  %v6801_v58 = vld [vmem:[#allocation9 + $0xb0] sm:$0xff] }
 0x717   :  { %v2821_v48 = vsel %vm2818_vm8, %v2820_v21, %v2816_v57  ;;  %3155 = vmatpush.msra.mxu2 %v6715_v5  ;;  %v2225_v15 = vadd.f32 %v7774_v30, %v6580_v17  ;;  %3122 = vmatpush.msrb.mxu0 %v6785_v44  ;;  %v6805_v57 = vld [vmem:[#allocation9 + $0xb8] sm:$0xff]  ;;  %v6809_v21 = vld [vmem:[#allocation9 + $0x80] sm:$0xff]  ;;  %v6849_v17 = vld [vmem:[#allocation9 + $0x30] sm:$0xff] }
 0x718   :  { %3142 = vmatpush.msrb.mxu1 %v6787_v7  ;;  %3183 = vmatpush.msra.mxu3 %v6805_v57  ;;  %v6817_v30 = vld [vmem:[#allocation9 + $0x98] sm:$0xff] }
 0x719   :  { %3156 = vmatpush.msra.mxu2 %v6721_v25  ;;  %3123 = vmatpush.msrb.mxu0 %v6797_v55  ;;  %7776 = vst [vmem:[#allocation51_spill] sm:$0xff] %v6817_v30 }
 0x71a   :  { %3143 = vmatpush.msrb.mxu1 %v6799_v8  ;;  %3184 = vmatpush.msra.mxu3 %v6817_v30 }
 0x71b   :  { %3157 = vmatpush.msra.mxu2 %v6727_v14  ;;  %3124 = vmatpush.msrb.mxu0 %v6809_v21 }
 0x71c   :  { %v4553_v10 = vpop.eup %4552 }
 0x71d   :  { %v6703_v33 = vmul.f32 %v4553_v10, %v2821_v48  ;;  %3158 = vmatpush.msra.mxu2 %v6737_v1  ;;  %v6811_v10 = vld [vmem:[#allocation9 + $0x88] sm:$0xff]  ;;  %v6813_v48 = vld [vmem:[#allocation9 + $0x90] sm:$0xff] }
 0x71e   :  { %3144 = vmatpush.msrb.mxu1 %v6811_v10 }
 0x71f   :  { %7772 = vst [vmem:[#allocation39_spill] sm:$0xff] %v6703_v33  ;;  %2913 = vmatmul.f32.vlgmr.msra.gmra.mxu0 %v6703_v33  ;;  %2933 = vmatmul.f32.vlgmr.msra.gmra.mxu1 %v6703_v33 }
 0x720   :  { %2953 = vmatmul.f32.vlgmr.msrb.gmra.mxu2 %v6703_v33  ;;  %2973 = vmatmul.f32.vlgmr.msrb.gmra.mxu3 %v6703_v33  ;;  %v6835_v33 = vld [vmem:[#allocation9 + $0x48] sm:$0xff] }
 0x721   :  { %3159 = vmatpush.msra.mxu2 %v6749_v62  ;;  %3145 = vmatpush.msrb.mxu1 %v6821_v22  ;;  %7783 = vst [vmem:[#allocation56_spill] sm:$0xff] %v6835_v33  ;;  %v6851_v22 = vld [vmem:[#allocation9 + $0x38] sm:$0xff] }
 0x723   :  { %3160 = vmatpush.msra.mxu2 %v6761_v19  ;;  %3146 = vmatpush.msrb.mxu1 %v6835_v33  ;;  %v6863_v33 = vld [vmem:[#allocation9 + $0x18] sm:$0xff] }
 0x725   :  { %3161 = vmatpush.msra.mxu2 %v6773_v61  ;;  %3147 = vmatpush.msrb.mxu1 %v6845_v34 }
 0x727   :  { %3162 = vmatpush.msra.mxu2 %v6789_v63 }
 0x729   :  { %3163 = vmatpush.msra.mxu2 %v6801_v58 }
 0x72b   :  { %3164 = vmatpush.msra.mxu2 %v6813_v48 }
 0x79c   :  { %v2914_v46 = vpop.f32.mrf.mxu0  ;;  %v2934_v50 = vpop.f32.mrf.mxu1 }
 0x79d   :  { %v2977_v27 = vadd.f32 %v2914_v46, %v2225_v15  ;;  %v2978_v41 = vadd.f32 %v2934_v50, %v2266_v51  ;;  %v6819_v15 = vld [vmem:[#allocation9 + $0x60] sm:$0xff]  ;;  %v7779_v51 = vld [vmem:[#allocation32_spill] sm:$0xff] }
 0x79e   :  { %7777 = vst [vmem:[#allocation52_spill] sm:$0xff] %v6819_v15  ;;  %v2348_v46 = vadd.f32 %v7779_v51, %v6590_v35  ;;  %v6827_v50 = vld [vmem:[#allocation9 + $0x70] sm:$0xff]  ;;  %3125 = vmatpush.msrb.mxu0 %v6819_v15  ;;  %v6843_v35 = vld [vmem:[#allocation9 + $0x20] sm:$0xff] }
 0x79f   :  { %v4361_v11 = vmul.f32 -1.442695, %v2977_v27  ;;  %v4362_v37 = vmul.f32 -1.442695, %v2978_v41  ;;  %7780 = vst [vmem:[#allocation53_spill] sm:$0xff] %v6827_v50  ;;  %v6829_v27 = vld [vmem:[#allocation9 + $0x78] sm:$0xff]  ;;  %3165 = vmatpush.msra.mxu2 %v6827_v50 }
 0x7a0   :  { %7781 = vst [vmem:[#allocation54_spill] sm:$0xff] %v6829_v27  ;;  %v6831_v41 = vld [vmem:[#allocation9 + $0x40] sm:$0xff]  ;;  %3185 = vmatpush.msra.mxu3 %v6829_v27 }
 0x7a1   :  { %4554 = vpow2.f32 %v4361_v11  ;;  %7782 = vst [vmem:[#allocation55_spill] sm:$0xff] %v6831_v41  ;;  %3126 = vmatpush.msrb.mxu0 %v6831_v41  ;;  %3166 = vmatpush.msra.mxu2 %v6837_v56  ;;  %v6861_v41 = vld [vmem:[#allocation9 + $0x10] sm:$0xff] }
 0x7a2   :  { %4556 = vpow2.f32 %v4362_v37  ;;  %v6839_v37 = vld [vmem:[#allocation9 + $0x58] sm:$0xff]  ;;  %7784 = vst [vmem:[#allocation57_spill] sm:$0xff] %v6861_v41 }
 0x7a3   :  { %v2974_v11 = vpop.f32.mrf.mxu3  ;;  %3186 = vmatpush.msra.mxu3 %v6839_v37  ;;  %3127 = vmatpush.msrb.mxu0 %v6843_v35 }
 0x7a4   :  { %v2980_v51 = vadd.f32 %v2974_v11, %v2348_v46  ;;  %v6855_v46 = vld [vmem:[#allocation9] sm:$0xff]  ;;  %v6857_v11 = vld [vmem:[#allocation9 + $0x8] sm:$0xff]  ;;  %3167 = vmatpush.msra.mxu2 %v6849_v17 }
 0x7a5   :  { %3187 = vmatpush.msra.mxu3 %v6851_v22  ;;  %3128 = vmatpush.msrb.mxu0 %v6855_v46 }
 0x7a6   :  { %v4363_v15 = vmul.f32 -1.442695, %v2980_v51  ;;  %3148 = vmatpush.msrb.mxu1 %v6857_v11  ;;  %3168 = vmatpush.msra.mxu2 %v6861_v41 }
 0x7a7   :  { %v4555_v27 = vpop.eup %4554  ;;  %3188 = vmatpush.msra.mxu3 %v6863_v33  ;;  %3329 = vmatpush.msra.mxu0 %v6607_v3 }
 0x7a8   :  { %v4557_v50 = vpop.eup %4556  ;;  %v6865_v30 = vadd.f32 1.0, %v4555_v27  ;;  %4558 = vpow2.f32 %v4363_v15  ;;  %3349 = vmatpush.msra.mxu1 %v6609_v40  ;;  %3369 = vmatpush.msrb.mxu2 %v6709_v49  ;;  %v2954_v15 = vpop.f32.mrf.mxu2  ;;  %v7785_v27 = vld [vmem:[#allocation35_spill] sm:$0xff] }
 0x7a9   :  { %v6869_v51 = vadd.f32 1.0, %v4557_v50  ;;  %3389 = vmatpush.msrb.mxu3 %v6611_v18  ;;  %3330 = vmatpush.msra.mxu0 %v6616_v2  ;;  %v2307_v41 = vadd.f32 %v7785_v27, %v7770_v12 }
 0x7aa   :  { %4560 = vrcp.f32 %v6865_v30  ;;  %3350 = vmatpush.msra.mxu1 %v6618_v32  ;;  %3370 = vmatpush.msrb.mxu2 %v6712_v39  ;;  %vm2990_vm11 = vweird.f32 %v6865_v30 }
 0x7ab   :  { %4562 = vrcp.f32 %v6869_v51  ;;  %3390 = vmatpush.msrb.mxu3 %v6620_v23  ;;  %3331 = vmatpush.msra.mxu0 %v6625_v9  ;;  %v2979_v18 = vadd.f32 %v2954_v15, %v2307_v41  ;;  %v2996_v41 = vand.u32 2147483648, %v6865_v30  ;;  %v2994_v15 = vand.u32 2147483647, %v6865_v30 }
 0x7ac   :  { %3351 = vmatpush.msra.mxu1 %v6627_v4  ;;  %3371 = vmatpush.msrb.mxu2 %v6715_v5  ;;  %vm3009_vm12 = vweird.f32 %v6869_v51 }
 0x7ad   :  { %3391 = vmatpush.msrb.mxu3 %v6717_v20  ;;  %3332 = vmatpush.msra.mxu0 %v6632_v36  ;;  %v3015_v36 = vand.u32 2147483648, %v6869_v51  ;;  %vm2995_vm15 = vcmp.eq.f32.partialorder %v2994_v15, 8.507059e+37 }
 0x7ae   :  { %v4559_v50 = vpop.eup %4558  ;;  %3352 = vmatpush.msra.mxu1 %v6634_v52  ;;  %3372 = vmatpush.msrb.mxu2 %v6721_v25 }
 0x7af   :  { %v6887_v3 = vadd.f32 1.0, %v4559_v50  ;;  %3392 = vmatpush.msrb.mxu3 %v6723_v60  ;;  %3333 = vmatpush.msra.mxu0 %v6639_v0 }
 0x7b0   :  { %v4561_v40 = vpop.eup %4560  ;;  %3353 = vmatpush.msra.mxu1 %v6641_v43  ;;  %3373 = vmatpush.msrb.mxu2 %v6727_v14  ;;  %v3013_v43 = vand.u32 2147483647, %v6869_v51 }
 0x7b1   :  { %v4563_v2 = vpop.eup %4562  ;;  %v2986_v32 = vmul.f32 %v4561_v40, %v6865_v30  ;;  %4564 = vrcp.f32 %v6887_v3  ;;  %3393 = vmatpush.msrb.mxu3 %v6729_v53  ;;  %vm2991_vm9 = vweird.f32 %v4561_v40  ;;  %3334 = vmatpush.msra.mxu0 %v6733_v42  ;;  %v3016_v30 = vor.u32 1.1754944e-38, %v3015_v36 }
 0x7b2   :  { %v3005_v23 = vmul.f32 %v4563_v2, %v6869_v51  ;;  %4566 = vtanh.f32 %v2979_v18  ;;  %3354 = vmatpush.msra.mxu1 %v6735_v16  ;;  %vm3010_vm10 = vweird.f32 %v4563_v2  ;;  %3374 = vmatpush.msrb.mxu2 %v6737_v1  ;;  %vm2992_vm13 = vmor %vm2990_vm11, %vm2991_vm9  ;;  %v2997_v18 = vor.u32 1.1754944e-38, %v2996_v41 }
 0x7b3   :  { %v2987_v9 = vsub.f32 1.0, %v2986_v32  ;;  %3394 = vmatpush.msrb.mxu3 %v6741_v54  ;;  %3335 = vmatpush.msra.mxu0 %v6745_v6  ;;  %vm3011_vm14 = vmor %vm3009_vm12, %vm3010_vm10  ;;  %vm3014_vm0 = vcmp.eq.f32.partialorder %v3013_v43, 8.507059e+37  ;;  %v3035_v15 = vand.u32 2147483648, %v6887_v3  ;;  %vm3029_vm2 = vweird.f32 %v6887_v3  ;;  %v7786_v43 = vld [vmem:[#allocation51_spill] sm:$0xff] }
 0x7b4   :  { %v3006_v4 = vsub.f32 1.0, %v3005_v23  ;;  %3355 = vmatpush.msra.mxu1 %v6747_v29  ;;  %3375 = vmatpush.msrb.mxu2 %v6749_v62 }
 0x7b5   :  { %v2988_v52 = vmul.f32 %v4561_v40, %v2987_v9  ;;  %3395 = vmatpush.msrb.mxu3 %v6753_v47  ;;  %3336 = vmatpush.msra.mxu0 %v6757_v59 }
 0x7b6   :  { %v3007_v0 = vmul.f32 %v4563_v2, %v3006_v4  ;;  %3356 = vmatpush.msra.mxu1 %v6759_v45  ;;  %3376 = vmatpush.msrb.mxu2 %v6761_v19 }
 0x7b7   :  { %v6912_v50 = vpop.eup %4564  ;;  %v2989_v27 = vadd.f32 %v4561_v40, %v2988_v52  ;;  %3396 = vmatpush.msrb.mxu3 %v6765_v13  ;;  %3337 = vmatpush.msra.mxu0 %v6769_v24 }
 0x7b8   :  { %v3008_v32 = vadd.f32 %v4563_v2, %v3007_v0  ;;  %v3025_v23 = vmul.f32 %v6912_v50, %v6887_v3  ;;  %v4567_v51 = vpop.eup %4566  ;;  %3357 = vmatpush.msra.mxu1 %v6771_v31  ;;  %3377 = vmatpush.msrb.mxu2 %v6773_v61  ;;  %vm3030_vm1 = vweird.f32 %v6912_v50 }
 0x7b9   :  { %v2993_v9 = vsel %vm2992_vm13, %v4561_v40, %v2989_v27  ;;  %3397 = vmatpush.msrb.mxu3 %v6781_v38  ;;  %3338 = vmatpush.msra.mxu0 %v6785_v44  ;;  %vm3031_vm3 = vmor %vm3029_vm2, %vm3030_vm1 }
 0x7ba   :  { %v2998_v4 = vsel %vm2995_vm15, %v2997_v18, %v2993_v9  ;;  %v3012_v41 = vsel %vm3011_vm14, %v4563_v2, %v3008_v32  ;;  %v3026_v52 = vsub.f32 1.0, %v3025_v23  ;;  %3358 = vmatpush.msra.mxu1 %v6787_v7  ;;  %3378 = vmatpush.msrb.mxu2 %v6789_v63  ;;  %v7787_v18 = vld [vmem:[#allocation52_spill] sm:$0xff]  ;;  %v7788_v32 = vld [vmem:[#allocation58_spill] sm:$0xff]  ;;  %v3036_v23 = vor.u32 1.1754944e-38, %v3035_v15 }
 0x7bb   :  { %v3017_v0 = vsel %vm3014_vm0, %v3016_v30, %v3012_v41  ;;  %v3040_v47 = vmul.f32 %v4567_v51, %v2998_v4  ;;  %3398 = vmatpush.msrb.mxu3 %v6793_v28  ;;  %3339 = vmatpush.msra.mxu0 %v6797_v55  ;;  %v7789_v30 = vld [vmem:[#allocation53_spill] sm:$0xff]  ;;  %v7790_v9 = vld [vmem:[#allocation54_spill] sm:$0xff]  ;;  %v7792_v51 = vld [vmem:[#allocation56_spill] sm:$0xff] }
 0x7bc   :  { %v3039_v40 = vmul.f32 %v3017_v0, %v6700_v26  ;;  %v3027_v36 = vmul.f32 %v6912_v50, %v3026_v52  ;;  %3359 = vmatpush.msra.mxu1 %v6799_v8  ;;  %3379 = vmatpush.msrb.mxu2 %v6801_v58  ;;  %v7794_v52 = vld [vmem:[#allocation57_spill] sm:$0xff]  ;;  %v7799_v0 = vld [vmem:[#allocation60_spill] sm:$0xff] }
 0x7bd   :  { %3399 = vmatpush.msrb.mxu3 %v6805_v57  ;;  %3340 = vmatpush.msra.mxu0 %v6809_v21 }
 0x7be   :  { %v6936_v2 = vadd.f32 %v3040_v47, %v3039_v40  ;;  %v3028_v26 = vadd.f32 %v6912_v50, %v3027_v36  ;;  %v3033_v47 = vand.u32 2147483647, %v6887_v3  ;;  %3360 = vmatpush.msra.mxu1 %v6811_v10  ;;  %3380 = vmatpush.msrb.mxu2 %v6813_v48  ;;  %v7791_v3 = vld [vmem:[#allocation55_spill] sm:$0xff]  ;;  %v7800_v40 = vld [vmem:[#allocation34_spill] sm:$0xff] }
 0x7bf   :  { %3400 = vmatpush.msrb.mxu3 %v7786_v43  ;;  %3341 = vmatpush.msra.mxu0 %v7787_v18 }
 0x7c0   :  { %4568 = vtanh.f32 %v6936_v2  ;;  %v3032_v27 = vsel %vm3031_vm3, %v6912_v50, %v3028_v26  ;;  %3361 = vmatpush.msra.mxu1 %v7788_v32  ;;  %3381 = vmatpush.msrb.mxu2 %v7789_v30  ;;  %vm3034_vm4 = vcmp.eq.f32.partialorder %v3033_v47, 8.507059e+37 }
 0x7c1   :  { %3401 = vmatpush.msrb.mxu3 %v7790_v9  ;;  %3342 = vmatpush.msra.mxu0 %v7791_v3  ;;  %v3037_v41 = vsel %vm3034_vm4, %v3036_v23, %v3032_v27 }
 0x7c2   :  { %3362 = vmatpush.msra.mxu1 %v7792_v51  ;;  %3382 = vmatpush.msrb.mxu2 %v6837_v56 }
 0x7c3   :  { %3402 = vmatpush.msrb.mxu3 %v6839_v37  ;;  %3343 = vmatpush.msra.mxu0 %v6843_v35 }
 0x7c4   :  { %3363 = vmatpush.msra.mxu1 %v6845_v34  ;;  %3383 = vmatpush.msrb.mxu2 %v6849_v17 }
 0x7c5   :  { %3403 = vmatpush.msrb.mxu3 %v6851_v22  ;;  %3344 = vmatpush.msra.mxu0 %v6855_v46 }
 0x7c6   :  { %v4569_v4 = vpop.eup %4568  ;;  %3364 = vmatpush.msra.mxu1 %v6857_v11  ;;  %3384 = vmatpush.msrb.mxu2 %v7794_v52 }
 0x7c7   :  { %v6963_v50 = vmul.f32 %v4569_v4, %v3037_v41  ;;  %3404 = vmatpush.msrb.mxu3 %v6863_v33  ;;  %v7801_v41 = vld [vmem:[#allocation61_spill] sm:$0xff] }
 0x7c9   :  { %7793 = vst [vmem:[#allocation26_spill] sm:$0xff] %v6963_v50  ;;  %3129 = vmatmul.f32.vlgmr.msrb.gmra.mxu0 %v6963_v50  ;;  %3149 = vmatmul.f32.vlgmr.msrb.gmra.mxu1 %v6963_v50 }
 0x7ca   :  { %3169 = vmatmul.f32.vlgmr.msra.gmra.mxu2 %v6963_v50  ;;  %3189 = vmatmul.f32.vlgmr.msra.gmra.mxu3 %v6963_v50 }
 0x7cb   :  { %3585 = vmatpush.msra.mxu2 %v6709_v49  ;;  %v7795_v49 = vld [vmem:[#allocation36_spill] sm:$0xff] }
 0x7cd   :  { %3586 = vmatpush.msra.mxu2 %v6712_v39  ;;  %v7796_v39 = vld [vmem:[#allocation20_spill] sm:$0xff] }
 0x7cf   :  { %3587 = vmatpush.msra.mxu2 %v6715_v5  ;;  %v2228_v5 = vadd.f32 %v7796_v39, %v7795_v49 }
 0x7d1   :  { %3588 = vmatpush.msra.mxu2 %v6721_v25  ;;  %v7797_v25 = vld [vmem:[#allocation42_spill] sm:$0xff] }
 0x7d3   :  { %3589 = vmatpush.msra.mxu2 %v6727_v14  ;;  %v7798_v14 = vld [vmem:[#allocation21_spill] sm:$0xff] }
 0x7d5   :  { %3590 = vmatpush.msra.mxu2 %v6737_v1  ;;  %v2269_v1 = vadd.f32 %v7798_v14, %v7797_v25 }
 0x7d7   :  { %3591 = vmatpush.msra.mxu2 %v6749_v62 }
 0x7d9   :  { %3592 = vmatpush.msra.mxu2 %v6761_v19 }
 0x7db   :  { %3593 = vmatpush.msra.mxu2 %v6773_v61 }
 0x7dd   :  { %3594 = vmatpush.msra.mxu2 %v6789_v63 }
 0x7df   :  { %3595 = vmatpush.msra.mxu2 %v6801_v58 }
 0x7e1   :  { %3596 = vmatpush.msra.mxu2 %v6813_v48 }
 0x7e3   :  { %3597 = vmatpush.msra.mxu2 %v7789_v30 }
 0x7e5   :  { %3598 = vmatpush.msra.mxu2 %v6837_v56  ;;  %v2351_v56 = vadd.f32 %v7800_v40, %v7799_v0 }
 0x7e7   :  { %3599 = vmatpush.msra.mxu2 %v6849_v17 }
 0x7e9   :  { %3600 = vmatpush.msra.mxu2 %v7794_v52  ;;  %v2310_v52 = vadd.f32 %v7801_v41, %v7770_v12 }
 0x846   :  { %v3130_v62 = vpop.f32.mrf.mxu0  ;;  %v3150_v19 = vpop.f32.mrf.mxu1 }
 0x847   :  { %v3193_v61 = vadd.f32 %v3130_v62, %v2228_v5  ;;  %v3194_v63 = vadd.f32 %v3150_v19, %v2269_v1 }
 0x849   :  { %v4364_v58 = vmul.f32 -1.442695, %v3193_v61  ;;  %v4365_v48 = vmul.f32 -1.442695, %v3194_v63 }
 0x84b   :  { %4570 = vpow2.f32 %v4364_v58 }
 0x84c   :  { %4572 = vpow2.f32 %v4365_v48 }
 0x84d   :  { %v3190_v17 = vpop.f32.mrf.mxu3  ;;  %v3170_v30 = vpop.f32.mrf.mxu2 }
 0x84e   :  { %v3196_v36 = vadd.f32 %v3190_v17, %v2351_v56  ;;  %v3195_v14 = vadd.f32 %v3170_v30, %v2310_v52 }
 0x850   :  { %v4366_v26 = vmul.f32 -1.442695, %v3196_v36 }
 0x851   :  { %v4571_v15 = vpop.eup %4570 }
 0x852   :  { %v4573_v47 = vpop.eup %4572  ;;  %v3200_v27 = vadd.f32 1.0, %v4571_v15  ;;  %4574 = vpow2.f32 %v4366_v26 }
 0x853   :  { %v3219_v23 = vadd.f32 1.0, %v4573_v47 }
 0x854   :  { %4576 = vrcp.f32 %v3200_v27  ;;  %v3212_v58 = vand.u32 2147483648, %v3200_v27  ;;  %v3210_v56 = vand.u32 2147483647, %v3200_v27  ;;  %vm3206_vm7 = vweird.f32 %v3200_v27 }
 0x855   :  { %4578 = vrcp.f32 %v3219_v23  ;;  %v3231_v48 = vand.u32 2147483648, %v3219_v23  ;;  %v3229_v36 = vand.u32 2147483647, %v3219_v23  ;;  %vm3225_vm8 = vweird.f32 %v3219_v23 }
 0x856   :  { %v3213_v47 = vor.u32 1.1754944e-38, %v3212_v58  ;;  %vm3211_vm11 = vcmp.eq.f32.partialorder %v3210_v56, 8.507059e+37 }
 0x857   :  { %v3232_v41 = vor.u32 1.1754944e-38, %v3231_v48  ;;  %vm3230_vm12 = vcmp.eq.f32.partialorder %v3229_v36, 8.507059e+37 }
 0x858   :  { %v4575_v4 = vpop.eup %4574 }
 0x859   :  { %v3239_v39 = vadd.f32 1.0, %v4575_v4 }
 0x85a   :  { %v4577_v5 = vpop.eup %4576 }
 0x85b   :  { %v4579_v1 = vpop.eup %4578  ;;  %v3202_v62 = vmul.f32 %v4577_v5, %v3200_v27  ;;  %4580 = vrcp.f32 %v3239_v39  ;;  %vm3207_vm5 = vweird.f32 %v4577_v5  ;;  %v3251_v58 = vand.u32 2147483648, %v3239_v39 }
 0x85c   :  { %v3221_v19 = vmul.f32 %v4579_v1, %v3219_v23  ;;  %4582 = vtanh.f32 %v3195_v14  ;;  %vm3226_vm6 = vweird.f32 %v4579_v1  ;;  %vm3208_vm9 = vmor %vm3206_vm7, %vm3207_vm5  ;;  %vm3245_vm14 = vweird.f32 %v3239_v39 }
 0x85d   :  { %v3203_v61 = vsub.f32 1.0, %v3202_v62  ;;  %vm3227_vm10 = vmor %vm3225_vm8, %vm3226_vm6  ;;  %v3252_v56 = vor.u32 1.1754944e-38, %v3251_v58 }
 0x85e   :  { %v3222_v63 = vsub.f32 1.0, %v3221_v19 }
 0x85f   :  { %v3204_v40 = vmul.f32 %v4577_v5, %v3203_v61 }
 0x860   :  { %v3223_v17 = vmul.f32 %v4579_v1, %v3222_v63 }
 0x861   :  { %v4581_v26 = vpop.eup %4580  ;;  %v3205_v15 = vadd.f32 %v4577_v5, %v3204_v40 }
 0x862   :  { %v3224_v30 = vadd.f32 %v4579_v1, %v3223_v17  ;;  %v3241_v4 = vmul.f32 %v4581_v26, %v3239_v39  ;;  %v4583_v14 = vpop.eup %4582  ;;  %vm3246_vm13 = vweird.f32 %v4581_v26 }
 0x863   :  { %v3209_v52 = vsel %vm3208_vm9, %v4577_v5, %v3205_v15  ;;  %v3249_v5 = vand.u32 2147483647, %v3239_v39  ;;  %vm3247_vm15 = vmor %vm3245_vm14, %vm3246_vm13  ;;  %v7020_v39 = vld [vmem:[#allocation9 + $0x1c0] sm:$0xff]  ;;  %v7024_v15 = vld [vmem:[#allocation9 + $0x1d8] sm:$0xff] }
 0x864   :  { %v3214_v62 = vsel %vm3211_vm11, %v3213_v47, %v3209_v52  ;;  %v3228_v19 = vsel %vm3227_vm10, %v4579_v1, %v3224_v30  ;;  %v3242_v61 = vsub.f32 1.0, %v3241_v4  ;;  %v7029_v47 = vld [vmem:[#allocation9 + $0x1a0] sm:$0xff]  ;;  %v7031_v30 = vld [vmem:[#allocation9 + $0x1a8] sm:$0xff] }
 0x865   :  { %v3233_v63 = vsel %vm3230_vm12, %v3232_v41, %v3228_v19  ;;  %v3256_v50 = vmul.f32 %v4583_v14, %v3214_v62  ;;  %vm3250_vm0 = vcmp.eq.f32.partialorder %v3249_v5, 8.507059e+37  ;;  %v7036_v4 = vld [vmem:[#allocation9 + $0x180] sm:$0xff]  ;;  %v7038_v41 = vld [vmem:[#allocation9 + $0x188] sm:$0xff] }
 0x866   :  { %v3255_v12 = vmul.f32 %v3233_v63, %v6936_v2  ;;  %v3243_v40 = vmul.f32 %v4581_v26, %v3242_v61  ;;  %v7013_v2 = vld [vmem:[#allocation9 + $0x1e8] sm:$0xff]  ;;  %v7043_v52 = vld [vmem:[#allocation9 + $0x160] sm:$0xff] }
 0x867   :  { %3565 = vmatpush.msrb.mxu1 %v7013_v2  ;;  %v7045_v14 = vld [vmem:[#allocation9 + $0x168] sm:$0xff] }
 0x868   :  { %v7002_v27 = vadd.f32 %v3256_v50, %v3255_v12  ;;  %v3244_v23 = vadd.f32 %v4581_v26, %v3243_v40  ;;  %v7011_v12 = vld [vmem:[#allocation9 + $0x1e0] sm:$0xff]  ;;  %v7015_v50 = vld [vmem:[#allocation9 + $0x1f8] sm:$0xff] }
 0x869   :  { %3545 = vmatpush.msrb.mxu0 %v7011_v12  ;;  %3605 = vmatpush.msra.mxu3 %v7015_v50 }
 0x86a   :  { %4584 = vtanh.f32 %v7002_v27  ;;  %v3248_v48 = vsel %vm3247_vm15, %v4581_v26, %v3244_v23  ;;  %v7022_v26 = vld [vmem:[#allocation9 + $0x1c8] sm:$0xff] }
 0x86b   :  { %v3253_v17 = vsel %vm3250_vm0, %v3252_v56, %v3248_v48  ;;  %3546 = vmatpush.msrb.mxu0 %v7020_v39  ;;  %3566 = vmatpush.msrb.mxu1 %v7022_v26 }
 0x86c   :  { %3606 = vmatpush.msra.mxu3 %v7024_v15 }
 0x86d   :  { %3547 = vmatpush.msrb.mxu0 %v7029_v47  ;;  %3567 = vmatpush.msrb.mxu1 %v7031_v30 }
 0x86e   :  { %3607 = vmatpush.msra.mxu3 %v6717_v20  ;;  %v7803_v20 = vld [vmem:[#allocation38_spill] sm:$0xff] }
 0x86f   :  { %3548 = vmatpush.msrb.mxu0 %v7036_v4  ;;  %3568 = vmatpush.msrb.mxu1 %v7038_v41 }
 0x870   :  { %v4585_v1 = vpop.eup %4584  ;;  %3608 = vmatpush.msra.mxu3 %v6723_v60  ;;  %v7804_v60 = vld [vmem:[#allocation44_spill] sm:$0xff] }
 0x871   :  { %v7005_v36 = vmul.f32 %v4585_v1, %v3253_v17  ;;  %3549 = vmatpush.msrb.mxu0 %v7043_v52  ;;  %3569 = vmatpush.msrb.mxu1 %v7045_v14 }
 0x872   :  { %3609 = vmatpush.msra.mxu3 %v6729_v53  ;;  %v2231_v53 = vadd.f32 %v7804_v60, %v7795_v49 }
 0x873   :  { %7802 = vst [vmem:[#allocation59_spill] sm:$0xff] %v7005_v36  ;;  %3345 = vmatmul.f32.vlgmr.msra.gmra.mxu0 %v7005_v36  ;;  %3365 = vmatmul.f32.vlgmr.msra.gmra.mxu1 %v7005_v36 }
 0x874   :  { %3385 = vmatmul.f32.vlgmr.msrb.gmra.mxu2 %v7005_v36  ;;  %3405 = vmatmul.f32.vlgmr.msrb.gmra.mxu3 %v7005_v36  ;;  %v7241_v36 = vld [vmem:[#allocation9 + $0x50] sm:$0xff] }
 0x875   :  { %3550 = vmatpush.msrb.mxu0 %v6733_v42  ;;  %3570 = vmatpush.msrb.mxu1 %v6735_v16  ;;  %v7805_v42 = vld [vmem:[#allocation45_spill] sm:$0xff] }
 0x876   :  { %3610 = vmatpush.msra.mxu3 %v6741_v54  ;;  %v2272_v16 = vadd.f32 %v7805_v42, %v7797_v25 }
 0x877   :  { %3551 = vmatpush.msrb.mxu0 %v6745_v6  ;;  %3571 = vmatpush.msrb.mxu1 %v6747_v29 }
 0x878   :  { %3611 = vmatpush.msra.mxu3 %v7803_v20 }
 0x879   :  { %3552 = vmatpush.msrb.mxu0 %v6757_v59  ;;  %3572 = vmatpush.msrb.mxu1 %v6759_v45 }
 0x87a   :  { %3612 = vmatpush.msra.mxu3 %v6765_v13 }
 0x87b   :  { %3553 = vmatpush.msrb.mxu0 %v6769_v24  ;;  %3573 = vmatpush.msrb.mxu1 %v6771_v31  ;;  %v7806_v24 = vld [vmem:[#allocation48_spill] sm:$0xff] }
 0x87c   :  { %3613 = vmatpush.msra.mxu3 %v6781_v38  ;;  %v2354_v31 = vadd.f32 %v7806_v24, %v7799_v0 }
 0x87d   :  { %3554 = vmatpush.msrb.mxu0 %v6785_v44  ;;  %3574 = vmatpush.msrb.mxu1 %v6787_v7 }
 0x87e   :  { %3614 = vmatpush.msra.mxu3 %v6793_v28 }
 0x87f   :  { %3555 = vmatpush.msrb.mxu0 %v6797_v55  ;;  %3575 = vmatpush.msrb.mxu1 %v6799_v8 }
 0x880   :  { %3615 = vmatpush.msra.mxu3 %v6805_v57 }
 0x881   :  { %3556 = vmatpush.msrb.mxu0 %v6809_v21  ;;  %3576 = vmatpush.msrb.mxu1 %v6811_v10  ;;  %v7807_v21 = vld [vmem:[#allocation24_spill] sm:$0xff]  ;;  %v7808_v10 = vld [vmem:[#allocation62_spill] sm:$0xff] }
 0x882   :  { %3616 = vmatpush.msra.mxu3 %v7786_v43 }
 0x883   :  { %3557 = vmatpush.msrb.mxu0 %v7787_v18  ;;  %3577 = vmatpush.msrb.mxu1 %v7788_v32 }
 0x884   :  { %3617 = vmatpush.msra.mxu3 %v7790_v9 }
 0x885   :  { %3558 = vmatpush.msrb.mxu0 %v7791_v3  ;;  %3578 = vmatpush.msrb.mxu1 %v7792_v51 }
 0x886   :  { %3618 = vmatpush.msra.mxu3 %v6839_v37 }
 0x887   :  { %3559 = vmatpush.msrb.mxu0 %v6843_v35  ;;  %3579 = vmatpush.msrb.mxu1 %v6845_v34 }
 0x888   :  { %3619 = vmatpush.msra.mxu3 %v6851_v22  ;;  %v2313_v22 = vadd.f32 %v7808_v10, %v7807_v21  ;;  %v7133_v10 = vld [vmem:[#allocation9 + $0x178] sm:$0xff] }
 0x889   :  { %3560 = vmatpush.msrb.mxu0 %v6855_v46  ;;  %3580 = vmatpush.msrb.mxu1 %v6857_v11 }
 0x88a   :  { %3620 = vmatpush.msra.mxu3 %v6863_v33 }
 0x88b   :  { %3761 = vmatpush.msra.mxu0 %v7011_v12  ;;  %3781 = vmatpush.msra.mxu1 %v7013_v2 }
 0x88c   :  { %3821 = vmatpush.msrb.mxu3 %v7015_v50 }
 0x88d   :  { %3762 = vmatpush.msra.mxu0 %v7020_v39  ;;  %3782 = vmatpush.msra.mxu1 %v7022_v26 }
 0x88e   :  { %3822 = vmatpush.msrb.mxu3 %v7024_v15 }
 0x88f   :  { %3763 = vmatpush.msra.mxu0 %v7029_v47  ;;  %3783 = vmatpush.msra.mxu1 %v7031_v30 }
 0x891   :  { %3764 = vmatpush.msra.mxu0 %v7036_v4  ;;  %3784 = vmatpush.msra.mxu1 %v7038_v41 }
 0x893   :  { %3765 = vmatpush.msra.mxu0 %v7043_v52  ;;  %3785 = vmatpush.msra.mxu1 %v7045_v14 }
 0x8f0   :  { %v3346_v54 = vpop.f32.mrf.mxu0  ;;  %v3366_v6 = vpop.f32.mrf.mxu1 }
 0x8f1   :  { %v3409_v29 = vadd.f32 %v3346_v54, %v2231_v53  ;;  %v3410_v59 = vadd.f32 %v3366_v6, %v2272_v16 }
 0x8f3   :  { %v4367_v45 = vmul.f32 -1.442695, %v3409_v29  ;;  %v4368_v13 = vmul.f32 -1.442695, %v3410_v59 }
 0x8f5   :  { %4586 = vpow2.f32 %v4367_v45 }
 0x8f6   :  { %4588 = vpow2.f32 %v4368_v13 }
 0x8f7   :  { %v3406_v38 = vpop.f32.mrf.mxu3  ;;  %v3386_v35 = vpop.f32.mrf.mxu2 }
 0x8f8   :  { %v3412_v44 = vadd.f32 %v3406_v38, %v2354_v31  ;;  %v3411_v46 = vadd.f32 %v3386_v35, %v2313_v22  ;;  %v7127_v35 = vld [vmem:[#allocation9 + $0x198] sm:$0xff]  ;;  %v7137_v22 = vld [vmem:[#allocation9 + $0x140] sm:$0xff] }
 0x8f9   :  { %3766 = vmatpush.msra.mxu0 %v7137_v22 }
 0x8fa   :  { %v4369_v7 = vmul.f32 -1.442695, %v3412_v44 }
 0x8fb   :  { %v4587_v28 = vpop.eup %4586 }
 0x8fc   :  { %v4589_v55 = vpop.eup %4588  ;;  %v3416_v8 = vadd.f32 1.0, %v4587_v28  ;;  %4590 = vpow2.f32 %v4369_v7  ;;  %v7116_v28 = vld [vmem:[#allocation9 + $0x1d0] sm:$0xff] }
 0x8fd   :  { %v3435_v57 = vadd.f32 1.0, %v4589_v55  ;;  %v7119_v55 = vld [vmem:[#allocation9 + $0x1b0] sm:$0xff] }
 0x8fe   :  { %4592 = vrcp.f32 %v3416_v8  ;;  %v3428_v3 = vand.u32 2147483648, %v3416_v8  ;;  %v3426_v19 = vand.u32 2147483647, %v3416_v8  ;;  %vm3422_vm3 = vweird.f32 %v3416_v8 }
 0x8ff   :  { %4594 = vrcp.f32 %v3435_v57  ;;  %v3447_v51 = vand.u32 2147483648, %v3435_v57  ;;  %v3445_v63 = vand.u32 2147483647, %v3435_v57  ;;  %vm3441_vm4 = vweird.f32 %v3435_v57 }
 0x900   :  { %v3429_v58 = vor.u32 1.1754944e-38, %v3428_v3  ;;  %vm3427_vm7 = vcmp.eq.f32.partialorder %v3426_v19, 8.507059e+37  ;;  %v7163_v3 = vld [vmem:[#allocation9 + $0x108] sm:$0xff]  ;;  %v7173_v19 = vld [vmem:[#allocation9 + $0xe0] sm:$0xff] }
 0x901   :  { %v3448_v56 = vor.u32 1.1754944e-38, %v3447_v51  ;;  %vm3446_vm8 = vcmp.eq.f32.partialorder %v3445_v63, 8.507059e+37  ;;  %v7165_v51 = vld [vmem:[#allocation9 + $0x110] sm:$0xff] }
 0x902   :  { %v4591_v34 = vpop.eup %4590  ;;  %v7177_v63 = vld [vmem:[#allocation9 + $0xf0] sm:$0xff] }
 0x903   :  { %v3455_v33 = vadd.f32 1.0, %v4591_v34  ;;  %v7131_v34 = vld [vmem:[#allocation9 + $0x170] sm:$0xff] }
 0x904   :  { %v4593_v37 = vpop.eup %4592 }
 0x905   :  { %v4595_v11 = vpop.eup %4594  ;;  %v3418_v43 = vmul.f32 %v4593_v37, %v3416_v8  ;;  %4596 = vrcp.f32 %v3455_v33  ;;  %vm3423_vm1 = vweird.f32 %v4593_v37  ;;  %v3467_v45 = vand.u32 2147483648, %v3455_v33  ;;  %v7121_v8 = vld [vmem:[#allocation9 + $0x1b8] sm:$0xff] }
 0x906   :  { %v3437_v18 = vmul.f32 %v4595_v11, %v3435_v57  ;;  %4598 = vtanh.f32 %v3411_v46  ;;  %vm3442_vm2 = vweird.f32 %v4595_v11  ;;  %vm3424_vm5 = vmor %vm3422_vm3, %vm3423_vm1  ;;  %vm3461_vm10 = vweird.f32 %v3455_v33  ;;  %3823 = vmatpush.msrb.mxu3 %v7121_v8  ;;  %v7125_v57 = vld [vmem:[#allocation9 + $0x190] sm:$0xff]  ;;  %v7145_v46 = vld [vmem:[#allocation9 + $0x158] sm:$0xff] }
 0x907   :  { %v3419_v32 = vsub.f32 1.0, %v3418_v43  ;;  %vm3443_vm6 = vmor %vm3441_vm4, %vm3442_vm2  ;;  %v3465_v13 = vand.u32 2147483647, %v3455_v33  ;;  %v3468_v31 = vor.u32 1.1754944e-38, %v3467_v45  ;;  %v7151_v43 = vld [vmem:[#allocation9 + $0x128] sm:$0xff] }
 0x908   :  { %v3438_v9 = vsub.f32 1.0, %v3437_v18  ;;  %3824 = vmatpush.msrb.mxu3 %v7127_v35  ;;  %v7153_v18 = vld [vmem:[#allocation9 + $0x130] sm:$0xff] }
 0x909   :  { %v3420_v62 = vmul.f32 %v4593_v37, %v3419_v32  ;;  %vm3466_vm12 = vcmp.eq.f32.partialorder %v3465_v13, 8.507059e+37  ;;  %v7157_v32 = vld [vmem:[#allocation9 + $0x138] sm:$0xff] }
 0x90a   :  { %v3439_v61 = vmul.f32 %v4595_v11, %v3438_v9  ;;  %3825 = vmatpush.msrb.mxu3 %v7133_v10  ;;  %v7161_v9 = vld [vmem:[#allocation9 + $0x100] sm:$0xff] }
 0x90b   :  { %v4597_v40 = vpop.eup %4596  ;;  %v3421_v23 = vadd.f32 %v4593_v37, %v3420_v62  ;;  %v7169_v62 = vld [vmem:[#allocation9 + $0x118] sm:$0xff] }
 0x90c   :  { %v3440_v5 = vadd.f32 %v4595_v11, %v3439_v61  ;;  %v3457_v48 = vmul.f32 %v4597_v40, %v3455_v33  ;;  %v4599_v17 = vpop.eup %4598  ;;  %vm3462_vm9 = vweird.f32 %v4597_v40  ;;  %v7139_v33 = vld [vmem:[#allocation9 + $0x148] sm:$0xff]  ;;  %3826 = vmatpush.msrb.mxu3 %v7145_v46 }
 0x90d   :  { %v3425_v1 = vsel %vm3424_vm5, %v4593_v37, %v3421_v23  ;;  %vm3463_vm11 = vmor %vm3461_vm10, %vm3462_vm9  ;;  %v7141_v37 = vld [vmem:[#allocation9 + $0x150] sm:$0xff]  ;;  %3786 = vmatpush.msra.mxu1 %v7139_v33  ;;  %v7175_v61 = vld [vmem:[#allocation9 + $0xe8] sm:$0xff] }
 0x90e   :  { %v3430_v20 = vsel %vm3427_vm7, %v3429_v58, %v3425_v1  ;;  %v3444_v60 = vsel %vm3443_vm6, %v4595_v11, %v3440_v5  ;;  %v3458_v53 = vsub.f32 1.0, %v3457_v48  ;;  %v7149_v11 = vld [vmem:[#allocation9 + $0x120] sm:$0xff]  ;;  %3827 = vmatpush.msrb.mxu3 %v7157_v32  ;;  %v7811_v58 = vld [vmem:[#allocation43_spill] sm:$0xff]  ;;  %v7185_v48 = vld [vmem:[#allocation9 + $0xf8] sm:$0xff] }
 0x90f   :  { %v3449_v42 = vsel %vm3446_vm8, %v3448_v56, %v3444_v60  ;;  %v3472_v16 = vmul.f32 %v4599_v17, %v3430_v20  ;;  %3767 = vmatpush.msra.mxu0 %v7149_v11  ;;  %3787 = vmatpush.msra.mxu1 %v7151_v43  ;;  %v2275_v5 = vadd.f32 %v7811_v58, %v7797_v25  ;;  %v7189_v17 = vld [vmem:[#allocation9 + $0xc0] sm:$0xff]  ;;  %v7191_v20 = vld [vmem:[#allocation9 + $0xc8] sm:$0xff]  ;;  %v7193_v60 = vld [vmem:[#allocation9 + $0xd0] sm:$0xff] }
 0x910   :  { %v3471_v54 = vmul.f32 %v3449_v42, %v7002_v27  ;;  %v3459_v6 = vmul.f32 %v4597_v40, %v3458_v53  ;;  %v7113_v27 = vld [vmem:[#allocation9 + $0x1f0] sm:$0xff]  ;;  %3828 = vmatpush.msrb.mxu3 %v7169_v62  ;;  %v7225_v58 = vld [vmem:[#allocation9 + $0x68] sm:$0xff] }
 0x911   :  { %3801 = vmatpush.msrb.mxu2 %v7113_v27  ;;  %3768 = vmatpush.msra.mxu0 %v7161_v9  ;;  %7814 = vst [vmem:[#allocation29_spill] sm:$0xff] %v7225_v58  ;;  %v7249_v25 = vld [vmem:[#allocation9 + $0x28] sm:$0xff] }
 0x912   :  { %v7104_v29 = vadd.f32 %v3472_v16, %v3471_v54  ;;  %v3460_v59 = vadd.f32 %v4597_v40, %v3459_v6  ;;  %3788 = vmatpush.msra.mxu1 %v7163_v3  ;;  %3829 = vmatpush.msrb.mxu3 %v7185_v48  ;;  %v7197_v16 = vld [vmem:[#allocation9 + $0xd8] sm:$0xff]  ;;  %v7201_v54 = vld [vmem:[#allocation9 + $0xa0] sm:$0xff]  ;;  %v7203_v6 = vld [vmem:[#allocation9 + $0xa8] sm:$0xff] }
 0x913   :  { %3802 = vmatpush.msrb.mxu2 %v7116_v28  ;;  %3769 = vmatpush.msra.mxu0 %v7173_v19 }
 0x914   :  { %4600 = vtanh.f32 %v7104_v29  ;;  %v3464_v24 = vsel %vm3463_vm11, %v4597_v40, %v3460_v59  ;;  %v7810_v40 = vld [vmem:[#allocation49_spill] sm:$0xff]  ;;  %3789 = vmatpush.msra.mxu1 %v7175_v61  ;;  %3830 = vmatpush.msrb.mxu3 %v7197_v16  ;;  %v7205_v59 = vld [vmem:[#allocation9 + $0xb0] sm:$0xff] }
 0x915   :  { %v3469_v44 = vsel %vm3466_vm12, %v3468_v31, %v3464_v24  ;;  %3803 = vmatpush.msrb.mxu2 %v7119_v55  ;;  %v2234_v23 = vadd.f32 %v7810_v40, %v7795_v49  ;;  %3770 = vmatpush.msra.mxu0 %v7189_v17  ;;  %v7209_v24 = vld [vmem:[#allocation9 + $0xb8] sm:$0xff]  ;;  %v7213_v31 = vld [vmem:[#allocation9 + $0x80] sm:$0xff]  ;;  %v7253_v49 = vld [vmem:[#allocation9 + $0x30] sm:$0xff] }
 0x916   :  { %3790 = vmatpush.msra.mxu1 %v7191_v20  ;;  %3831 = vmatpush.msrb.mxu3 %v7209_v24  ;;  %v7221_v40 = vld [vmem:[#allocation9 + $0x98] sm:$0xff] }
 0x917   :  { %3804 = vmatpush.msrb.mxu2 %v7125_v57  ;;  %3771 = vmatpush.msra.mxu0 %v7201_v54  ;;  %7812 = vst [vmem:[#allocation27_spill] sm:$0xff] %v7221_v40 }
 0x918   :  { %3791 = vmatpush.msra.mxu1 %v7203_v6  ;;  %3832 = vmatpush.msrb.mxu3 %v7221_v40 }
 0x919   :  { %3805 = vmatpush.msrb.mxu2 %v7131_v34  ;;  %3772 = vmatpush.msra.mxu0 %v7213_v31 }
 0x91a   :  { %v4601_v38 = vpop.eup %4600 }
 0x91b   :  { %v7107_v7 = vmul.f32 %v4601_v38, %v3469_v44  ;;  %3806 = vmatpush.msrb.mxu2 %v7141_v37  ;;  %v7215_v38 = vld [vmem:[#allocation9 + $0x88] sm:$0xff]  ;;  %v7217_v44 = vld [vmem:[#allocation9 + $0x90] sm:$0xff] }
 0x91c   :  { %3792 = vmatpush.msra.mxu1 %v7215_v38 }
 0x91d   :  { %7809 = vst [vmem:[#allocation41_spill] sm:$0xff] %v7107_v7  ;;  %3561 = vmatmul.f32.vlgmr.msrb.gmra.mxu0 %v7107_v7  ;;  %3581 = vmatmul.f32.vlgmr.msrb.gmra.mxu1 %v7107_v7 }
 0x91e   :  { %3601 = vmatmul.f32.vlgmr.msra.gmra.mxu2 %v7107_v7  ;;  %3621 = vmatmul.f32.vlgmr.msra.gmra.mxu3 %v7107_v7  ;;  %v7239_v7 = vld [vmem:[#allocation9 + $0x48] sm:$0xff] }
 0x91f   :  { %3807 = vmatpush.msrb.mxu2 %v7153_v18  ;;  %3793 = vmatpush.msra.mxu1 %v7225_v58  ;;  %7819 = vst [vmem:[#allocation32_spill] sm:$0xff] %v7239_v7  ;;  %v7255_v58 = vld [vmem:[#allocation9 + $0x38] sm:$0xff] }
 0x921   :  { %3808 = vmatpush.msrb.mxu2 %v7165_v51  ;;  %3794 = vmatpush.msra.mxu1 %v7239_v7  ;;  %v7267_v7 = vld [vmem:[#allocation9 + $0x18] sm:$0xff] }
 0x923   :  { %3809 = vmatpush.msrb.mxu2 %v7177_v63  ;;  %3795 = vmatpush.msra.mxu1 %v7249_v25 }
 0x925   :  { %3810 = vmatpush.msrb.mxu2 %v7193_v60 }
 0x927   :  { %3811 = vmatpush.msrb.mxu2 %v7205_v59 }
 0x929   :  { %3812 = vmatpush.msrb.mxu2 %v7217_v44 }
 0x99a   :  { %v3562_v56 = vpop.f32.mrf.mxu0  ;;  %v3582_v1 = vpop.f32.mrf.mxu1 }
 0x99b   :  { %v3625_v53 = vadd.f32 %v3562_v56, %v2234_v23  ;;  %v3626_v42 = vadd.f32 %v3582_v1, %v2275_v5  ;;  %v7223_v23 = vld [vmem:[#allocation9 + $0x60] sm:$0xff]  ;;  %v7231_v1 = vld [vmem:[#allocation9 + $0x70] sm:$0xff] }
 0x99c   :  { %7813 = vst [vmem:[#allocation30_spill] sm:$0xff] %v7223_v23  ;;  %v7815_v5 = vld [vmem:[#allocation50_spill] sm:$0xff]  ;;  %3773 = vmatpush.msra.mxu0 %v7223_v23  ;;  %3813 = vmatpush.msrb.mxu2 %v7231_v1 }
 0x99d   :  { %v4370_v45 = vmul.f32 -1.442695, %v3625_v53  ;;  %v4371_v13 = vmul.f32 -1.442695, %v3626_v42  ;;  %v2357_v56 = vadd.f32 %v7815_v5, %v7799_v0  ;;  %7816 = vst [vmem:[#allocation33_spill] sm:$0xff] %v7231_v1  ;;  %v7233_v53 = vld [vmem:[#allocation9 + $0x78] sm:$0xff] }
 0x99e   :  { %7817 = vst [vmem:[#allocation18_spill] sm:$0xff] %v7233_v53  ;;  %v7235_v42 = vld [vmem:[#allocation9 + $0x40] sm:$0xff]  ;;  %3833 = vmatpush.msrb.mxu3 %v7233_v53  ;;  %3814 = vmatpush.msrb.mxu2 %v7241_v36 }
 0x99f   :  { %4602 = vpow2.f32 %v4370_v45  ;;  %7818 = vst [vmem:[#allocation19_spill] sm:$0xff] %v7235_v42  ;;  %v7247_v0 = vld [vmem:[#allocation9 + $0x20] sm:$0xff]  ;;  %3774 = vmatpush.msra.mxu0 %v7235_v42  ;;  %v7265_v42 = vld [vmem:[#allocation9 + $0x10] sm:$0xff] }
 0x9a0   :  { %4604 = vpow2.f32 %v4371_v13  ;;  %v7243_v13 = vld [vmem:[#allocation9 + $0x58] sm:$0xff]  ;;  %7820 = vst [vmem:[#allocation35_spill] sm:$0xff] %v7265_v42  ;;  %3815 = vmatpush.msrb.mxu2 %v7253_v49 }
 0x9a1   :  { %v3622_v45 = vpop.f32.mrf.mxu3  ;;  %3834 = vmatpush.msrb.mxu3 %v7243_v13  ;;  %3775 = vmatpush.msra.mxu0 %v7247_v0 }
 0x9a2   :  { %v3628_v5 = vadd.f32 %v3622_v45, %v2357_v56  ;;  %v7259_v56 = vld [vmem:[#allocation9] sm:$0xff]  ;;  %v7261_v45 = vld [vmem:[#allocation9 + $0x8] sm:$0xff]  ;;  %3816 = vmatpush.msrb.mxu2 %v7265_v42 }
 0x9a3   :  { %3835 = vmatpush.msrb.mxu3 %v7255_v58  ;;  %3776 = vmatpush.msra.mxu0 %v7259_v56 }
 0x9a4   :  { %v4372_v23 = vmul.f32 -1.442695, %v3628_v5  ;;  %3796 = vmatpush.msra.mxu1 %v7261_v45  ;;  %4017 = vmatpush.msra.mxu2 %v7113_v27 }
 0x9a5   :  { %v4603_v53 = vpop.eup %4602  ;;  %3836 = vmatpush.msrb.mxu3 %v7267_v7  ;;  %3977 = vmatpush.msrb.mxu0 %v7011_v12 }
 0x9a6   :  { %v4605_v1 = vpop.eup %4604  ;;  %v7269_v40 = vadd.f32 1.0, %v4603_v53  ;;  %4606 = vpow2.f32 %v4372_v23  ;;  %3997 = vmatpush.msrb.mxu1 %v7013_v2  ;;  %v3602_v23 = vpop.f32.mrf.mxu2  ;;  %v7821_v53 = vld [vmem:[#allocation31_spill] sm:$0xff]  ;;  %4018 = vmatpush.msra.mxu2 %v7116_v28 }
 0x9a7   :  { %v7273_v5 = vadd.f32 1.0, %v4605_v1  ;;  %4037 = vmatpush.msra.mxu3 %v7015_v50  ;;  %3978 = vmatpush.msrb.mxu0 %v7020_v39  ;;  %v2316_v42 = vadd.f32 %v7821_v53, %v7807_v21  ;;  %v4142_v53 = vld [vmem:[#allocation10 + $0x48] sm:$0xff] }
 0x9a8   :  { %4608 = vrcp.f32 %v7269_v40  ;;  %3998 = vmatpush.msrb.mxu1 %v7022_v26  ;;  %4019 = vmatpush.msra.mxu2 %v7119_v55  ;;  %v3644_v27 = vand.u32 2147483648, %v7269_v40  ;;  %v3642_v28 = vand.u32 2147483647, %v7269_v40  ;;  %vm3638_vm15 = vweird.f32 %v7269_v40 }
 0x9a9   :  { %4610 = vrcp.f32 %v7273_v5  ;;  %4038 = vmatpush.msra.mxu3 %v7024_v15  ;;  %3979 = vmatpush.msrb.mxu0 %v7029_v47  ;;  %v3627_v50 = vadd.f32 %v3602_v23, %v2316_v42  ;;  %vm3657_vm0 = vweird.f32 %v7273_v5  ;;  %v7832_v42 = vld [vmem:[#allocation42_spill] sm:$0xff]  ;;  %v4143_v23 = vld [vmem:[#allocation10 + $0x50] sm:$0xff] }
 0x9aa   :  { %3999 = vmatpush.msrb.mxu1 %v7031_v30  ;;  %4020 = vmatpush.msra.mxu2 %v7125_v57  ;;  %v3645_v57 = vor.u32 1.1754944e-38, %v3644_v27  ;;  %vm3643_vm3 = vcmp.eq.f32.partialorder %v3642_v28, 8.507059e+37 }
 0x9ab   :  { %4039 = vmatpush.msra.mxu3 %v7121_v8  ;;  %3980 = vmatpush.msrb.mxu0 %v7036_v4  ;;  %v3663_v4 = vand.u32 2147483648, %v7273_v5 }
 0x9ac   :  { %v4607_v1 = vpop.eup %4606  ;;  %4000 = vmatpush.msrb.mxu1 %v7038_v41  ;;  %4021 = vmatpush.msra.mxu2 %v7131_v34 }
 0x9ad   :  { %v7291_v12 = vadd.f32 1.0, %v4607_v1  ;;  %4040 = vmatpush.msra.mxu3 %v7127_v35  ;;  %3981 = vmatpush.msrb.mxu0 %v7043_v52 }
 0x9ae   :  { %v4609_v2 = vpop.eup %4608  ;;  %4001 = vmatpush.msrb.mxu1 %v7045_v14  ;;  %v3661_v14 = vand.u32 2147483647, %v7273_v5  ;;  %4022 = vmatpush.msra.mxu2 %v7141_v37 }
 0x9af   :  { %v4611_v39 = vpop.eup %4610  ;;  %v3634_v26 = vmul.f32 %v4609_v2, %v7269_v40  ;;  %4612 = vrcp.f32 %v7291_v12  ;;  %4041 = vmatpush.msra.mxu3 %v7133_v10  ;;  %vm3639_vm13 = vweird.f32 %v4609_v2  ;;  %3982 = vmatpush.msrb.mxu0 %v7137_v22  ;;  %v3664_v10 = vor.u32 1.1754944e-38, %v3663_v4  ;;  %v7831_v40 = vld [vmem:[#allocation28_spill] sm:$0xff] }
 0x9b0   :  { %v3653_v15 = vmul.f32 %v4611_v39, %v7273_v5  ;;  %4614 = vtanh.f32 %v3627_v50  ;;  %4002 = vmatpush.msrb.mxu1 %v7139_v33  ;;  %vm3658_vm14 = vweird.f32 %v4611_v39  ;;  %vm3640_vm1 = vmor %vm3638_vm15, %vm3639_vm13  ;;  %4023 = vmatpush.msra.mxu2 %v7153_v18  ;;  %vm3662_vm4 = vcmp.eq.f32.partialorder %v3661_v14, 8.507059e+37  ;;  %v4141_v50 = vld [vmem:[#allocation10 + $0x40] sm:$0xff] }
 0x9b1   :  { %v3635_v47 = vsub.f32 1.0, %v3634_v26  ;;  %4042 = vmatpush.msra.mxu3 %v7145_v46  ;;  %3983 = vmatpush.msrb.mxu0 %v7149_v11  ;;  %vm3659_vm2 = vmor %vm3657_vm0, %vm3658_vm14  ;;  %vm3677_vm6 = vweird.f32 %v7291_v12  ;;  %v7834_v26 = vld [vmem:[#allocation60_spill] sm:$0xff] }
 0x9b2   :  { %v3654_v30 = vsub.f32 1.0, %v3653_v15  ;;  %4003 = vmatpush.msrb.mxu1 %v7151_v43  ;;  %4024 = vmatpush.msra.mxu2 %v7165_v51  ;;  %v3683_v51 = vand.u32 2147483648, %v7291_v12  ;;  %v7835_v15 = vld [vmem:[#allocation23_spill] sm:$0xff] }
 0x9b3   :  { %v3636_v41 = vmul.f32 %v4609_v2, %v3635_v47  ;;  %4043 = vmatpush.msra.mxu3 %v7157_v32  ;;  %3984 = vmatpush.msrb.mxu0 %v7161_v9  ;;  %v2360_v47 = vadd.f32 %v7835_v15, %v7834_v26  ;;  %v7838_v15 = vld [vmem:[#allocation39_spill] sm:$0xff] }
 0x9b4   :  { %v3655_v52 = vmul.f32 %v4611_v39, %v3654_v30  ;;  %4004 = vmatpush.msrb.mxu1 %v7163_v3  ;;  %4025 = vmatpush.msra.mxu2 %v7177_v63  ;;  %v7823_v63 = vld [vmem:[#allocation30_spill] sm:$0xff]  ;;  %v4139_v30 = vld [vmem:[#allocation10 + $0x30] sm:$0xff] }
 0x9b5   :  { %v7316_v55 = vpop.eup %4612  ;;  %v3637_v8 = vadd.f32 %v4609_v2, %v3636_v41  ;;  %4044 = vmatpush.msra.mxu3 %v7169_v62  ;;  %3985 = vmatpush.msrb.mxu0 %v7173_v19  ;;  %v3681_v62 = vand.u32 2147483647, %v7291_v12  ;;  %v7822_v19 = vld [vmem:[#allocation27_spill] sm:$0xff] }
 0x9b6   :  { %v3656_v35 = vadd.f32 %v4611_v39, %v3655_v52  ;;  %v3673_v34 = vmul.f32 %v7316_v55, %v7291_v12  ;;  %v4615_v33 = vpop.eup %4614  ;;  %4005 = vmatpush.msrb.mxu1 %v7175_v61  ;;  %4026 = vmatpush.msra.mxu2 %v7193_v60  ;;  %vm3678_vm5 = vweird.f32 %v7316_v55  ;;  %v7826_v60 = vld [vmem:[#allocation18_spill] sm:$0xff]  ;;  %v4138_v41 = vld [vmem:[#allocation10 + $0x28] sm:$0xff] }
 0x9b7   :  { %v3641_v22 = vsel %vm3640_vm1, %v4609_v2, %v3637_v8  ;;  %4045 = vmatpush.msra.mxu3 %v7185_v48  ;;  %3986 = vmatpush.msrb.mxu0 %v7189_v17  ;;  %vm3679_vm7 = vmor %vm3677_vm6, %vm3678_vm5  ;;  %v7824_v48 = vld [vmem:[#allocation29_spill] sm:$0xff]  ;;  %v3684_v17 = vor.u32 1.1754944e-38, %v3683_v51  ;;  %vm3682_vm8 = vcmp.eq.f32.partialorder %v3681_v62, 8.507059e+37  ;;  %v4137_v52 = vld [vmem:[#allocation10 + $0x20] sm:$0xff] }
 0x9b8   :  { %v3646_v37 = vsel %vm3643_vm3, %v3645_v57, %v3641_v22  ;;  %v3660_v46 = vsel %vm3659_vm2, %v4611_v39, %v3656_v35  ;;  %v3674_v11 = vsub.f32 1.0, %v3673_v34  ;;  %4006 = vmatpush.msrb.mxu1 %v7191_v20  ;;  %4027 = vmatpush.msra.mxu2 %v7205_v59  ;;  %v7825_v20 = vld [vmem:[#allocation33_spill] sm:$0xff]  ;;  %v4135_v34 = vld [vmem:[#allocation10 + $0x10] sm:$0xff] }
 0x9b9   :  { %v3665_v43 = vsel %vm3662_vm4, %v3664_v10, %v3660_v46  ;;  %v3688_v18 = vmul.f32 %v4615_v33, %v3646_v37  ;;  %4046 = vmatpush.msra.mxu3 %v7197_v16  ;;  %3987 = vmatpush.msrb.mxu0 %v7201_v54  ;;  %v7827_v16 = vld [vmem:[#allocation19_spill] sm:$0xff]  ;;  %v7828_v54 = vld [vmem:[#allocation32_spill] sm:$0xff]  ;;  %v4140_v39 = vld [vmem:[#allocation10 + $0x38] sm:$0xff] }
 0x9ba   :  { %v3687_v32 = vmul.f32 %v3665_v43, %v7104_v29  ;;  %v3675_v9 = vmul.f32 %v7316_v55, %v3674_v11  ;;  %4007 = vmatpush.msrb.mxu1 %v7203_v6  ;;  %4028 = vmatpush.msra.mxu2 %v7217_v44  ;;  %v7830_v44 = vld [vmem:[#allocation36_spill] sm:$0xff]  ;;  %v4136_v35 = vld [vmem:[#allocation10 + $0x18] sm:$0xff]  ;;  %v4134_v10 = vld [vmem:[#allocation10 + $0x8] sm:$0xff] }
 0x9bb   :  { %4047 = vmatpush.msra.mxu3 %v7209_v24  ;;  %3988 = vmatpush.msrb.mxu0 %v7213_v31  ;;  %v4145_v31 = vld [vmem:[#allocation10 + $0x60] sm:$0xff]  ;;  %v7836_v37 = vld [vmem:[#allocation47_spill] sm:$0xff] }
 0x9bc   :  { %v7340_v3 = vadd.f32 %v3688_v18, %v3687_v32  ;;  %v3676_v29 = vadd.f32 %v7316_v55, %v3675_v9  ;;  %4008 = vmatpush.msrb.mxu1 %v7215_v38  ;;  %4029 = vmatpush.msra.mxu2 %v7825_v20  ;;  %v4144_v38 = vld [vmem:[#allocation10 + $0x58] sm:$0xff]  ;;  %v2319_v46 = vadd.f32 %v7836_v37, %v7807_v21  ;;  %v4133_v11 = vld [vmem:[#allocation10] sm:$0xff]  ;;  %v4204_v37 = vld [vmem:[#allocation12 + $0x10] sm:$0xff] }
 0x9bd   :  { %4048 = vmatpush.msra.mxu3 %v7822_v19  ;;  %3989 = vmatpush.msrb.mxu0 %v7823_v63 }
 0x9be   :  { %4616 = vtanh.f32 %v7340_v3  ;;  %v3680_v61 = vsel %vm3679_vm7, %v7316_v55, %v3676_v29  ;;  %4009 = vmatpush.msrb.mxu1 %v7824_v48  ;;  %4030 = vmatpush.msra.mxu2 %v7241_v36  ;;  %v7829_v36 = vld [vmem:[#allocation35_spill] sm:$0xff] }
 0x9bf   :  { %4049 = vmatpush.msra.mxu3 %v7826_v60  ;;  %3990 = vmatpush.msrb.mxu0 %v7827_v16  ;;  %v3685_v59 = vsel %vm3682_vm8, %v3684_v17, %v3680_v61 }
 0x9c0   :  { %4010 = vmatpush.msrb.mxu1 %v7828_v54  ;;  %4031 = vmatpush.msra.mxu2 %v7253_v49  ;;  %v4147_v49 = vld [vmem:[#allocation10 + $0x70] sm:$0xff] }
 0x9c1   :  { %4050 = vmatpush.msra.mxu3 %v7243_v13  ;;  %3991 = vmatpush.msrb.mxu0 %v7247_v0  ;;  %v4146_v0 = vld [vmem:[#allocation10 + $0x68] sm:$0xff]  ;;  %v7833_v13 = vld [vmem:[#allocation22_spill] sm:$0xff] }
 0x9c2   :  { %4011 = vmatpush.msrb.mxu1 %v7249_v25  ;;  %4032 = vmatpush.msra.mxu2 %v7829_v36  ;;  %v4148_v25 = vld [vmem:[#allocation10 + $0x78] sm:$0xff] }
 0x9c3   :  { %4051 = vmatpush.msra.mxu3 %v7255_v58  ;;  %3992 = vmatpush.msrb.mxu0 %v7259_v56  ;;  %v2237_v58 = vadd.f32 %v7831_v40, %v7830_v44  ;;  %v2278_v56 = vadd.f32 %v7833_v13, %v7832_v42 }
 0x9c4   :  { %v4617_v6 = vpop.eup %4616  ;;  %4012 = vmatpush.msrb.mxu1 %v7261_v45 }
 0x9c5   :  { %v7367_v24 = vmul.f32 %v4617_v6, %v3685_v59  ;;  %4052 = vmatpush.msra.mxu3 %v7267_v7 }
 0x9c7   :  { %3777 = vmatmul.f32.vlgmr.msra.gmra.mxu0 %v7367_v24  ;;  %3797 = vmatmul.f32.vlgmr.msra.gmra.mxu1 %v7367_v24 }
 0x9c8   :  { %3817 = vmatmul.f32.vlgmr.msrb.gmra.mxu2 %v7367_v24  ;;  %3837 = vmatmul.f32.vlgmr.msrb.gmra.mxu3 %v7367_v24 }
 0x9c9   :  { %4153 = vmatpush.msra.mxu0 %v4148_v25 }
 0x9cb   :  { %4154 = vmatpush.msra.mxu0 %v4147_v49 }
 0x9cd   :  { %4155 = vmatpush.msra.mxu0 %v4146_v0 }
 0x9cf   :  { %4156 = vmatpush.msra.mxu0 %v4145_v31 }
 0x9d1   :  { %4157 = vmatpush.msra.mxu0 %v4144_v38 }
 0x9d3   :  { %4158 = vmatpush.msra.mxu0 %v4143_v23 }
 0x9d5   :  { %4159 = vmatpush.msra.mxu0 %v4142_v53 }
 0x9d7   :  { %4160 = vmatpush.msra.mxu0 %v4141_v50 }
 0x9d9   :  { %4161 = vmatpush.msra.mxu0 %v4140_v39 }
 0x9db   :  { %4162 = vmatpush.msra.mxu0 %v4139_v30  ;;  %v4217_v30 = vld [vmem:[#allocation12 + $0x78] sm:$0xff] }
 0x9dc   :  { %4222 = vmatpush.msra.mxu1 %v4217_v30 }
 0x9dd   :  { %4163 = vmatpush.msra.mxu0 %v4138_v41  ;;  %v4214_v41 = vld [vmem:[#allocation12 + $0x60] sm:$0xff] }
 0x9df   :  { %4164 = vmatpush.msra.mxu0 %v4137_v52  ;;  %v7840_v52 = vld [vmem:[#allocation59_spill] sm:$0xff] }
 0x9e1   :  { %4165 = vmatpush.msra.mxu0 %v4136_v35  ;;  %v4209_v35 = vld [vmem:[#allocation12 + $0x38] sm:$0xff] }
 0x9e3   :  { %4166 = vmatpush.msra.mxu0 %v4135_v34  ;;  %v4208_v34 = vld [vmem:[#allocation12 + $0x30] sm:$0xff] }
 0x9e5   :  { %4167 = vmatpush.msra.mxu0 %v4134_v10  ;;  %v4207_v10 = vld [vmem:[#allocation12 + $0x28] sm:$0xff] }
 0x9e7   :  { %4168 = vmatpush.msra.mxu0 %v4133_v11  ;;  %v4202_v11 = vld [vmem:[#allocation12] sm:$0xff] }
 0xa44   :  { %v3778_v45 = vpop.f32.mrf.mxu0  ;;  %v3798_v5 = vpop.f32.mrf.mxu1 }
 0xa45   :  { %v3841_v7 = vadd.f32 %v3778_v45, %v2237_v58  ;;  %v3842_v1 = vadd.f32 %v3798_v5, %v2278_v56 }
 0xa47   :  { %v4373_v12 = vmul.f32 -1.442695, %v3841_v7  ;;  %v4374_v2 = vmul.f32 -1.442695, %v3842_v1 }
 0xa49   :  { %4618 = vpow2.f32 %v4373_v12 }
 0xa4a   :  { %4620 = vpow2.f32 %v4374_v2 }
 0xa4b   :  { %v3838_v27 = vpop.f32.mrf.mxu3  ;;  %v3818_v22 = vpop.f32.mrf.mxu2 }
 0xa4c   :  { %v3844_v4 = vadd.f32 %v3838_v27, %v2360_v47  ;;  %v3843_v32 = vadd.f32 %v3818_v22, %v2319_v46  ;;  %v7839_v47 = vld [vmem:[#allocation26_spill] sm:$0xff]  ;;  %v4216_v27 = vld [vmem:[#allocation12 + $0x70] sm:$0xff]  ;;  %v4203_v46 = vld [vmem:[#allocation12 + $0x8] sm:$0xff] }
 0xa4d   :  { %4223 = vmatpush.msra.mxu1 %v4216_v27  ;;  %v4206_v22 = vld [vmem:[#allocation12 + $0x20] sm:$0xff] }
 0xa4e   :  { %v4375_v28 = vmul.f32 -1.442695, %v3844_v4  ;;  %v4215_v4 = vld [vmem:[#allocation12 + $0x68] sm:$0xff] }
 0xa4f   :  { %v4619_v14 = vpop.eup %4618  ;;  %4224 = vmatpush.msra.mxu1 %v4215_v4 }
 0xa50   :  { %v4621_v55 = vpop.eup %4620  ;;  %v3848_v8 = vadd.f32 1.0, %v4619_v14  ;;  %4622 = vpow2.f32 %v4375_v28  ;;  %v4213_v28 = vld [vmem:[#allocation12 + $0x58] sm:$0xff]  ;;  %v4212_v14 = vld [vmem:[#allocation12 + $0x50] sm:$0xff] }
 0xa51   :  { %v3867_v57 = vadd.f32 1.0, %v4621_v55  ;;  %4225 = vmatpush.msra.mxu1 %v4214_v41  ;;  %v4211_v55 = vld [vmem:[#allocation12 + $0x48] sm:$0xff] }
 0xa52   :  { %4624 = vrcp.f32 %v3848_v8  ;;  %v3860_v61 = vand.u32 2147483648, %v3848_v8  ;;  %v3858_v17 = vand.u32 2147483647, %v3848_v8  ;;  %vm3854_vm11 = vweird.f32 %v3848_v8 }
 0xa53   :  { %4626 = vrcp.f32 %v3867_v57  ;;  %v3879_v63 = vand.u32 2147483648, %v3867_v57  ;;  %v3877_v60 = vand.u32 2147483647, %v3867_v57  ;;  %vm3873_vm12 = vweird.f32 %v3867_v57  ;;  %4226 = vmatpush.msra.mxu1 %v4213_v28 }
 0xa54   :  { %v3861_v6 = vor.u32 1.1754944e-38, %v3860_v61  ;;  %vm3859_vm15 = vcmp.eq.f32.partialorder %v3858_v17, 8.507059e+37 }
 0xa55   :  { %v3880_v25 = vor.u32 1.1754944e-38, %v3879_v63  ;;  %vm3878_vm0 = vcmp.eq.f32.partialorder %v3877_v60, 8.507059e+37  ;;  %4227 = vmatpush.msra.mxu1 %v4212_v14  ;;  %v7406_v63 = vld [vmem:[%s7445_s8] ss:$0 sm:$0xff] }
 0xa56   :  { %v4623_v33 = vpop.eup %4622 }
 0xa57   :  { %v3887_v43 = vadd.f32 1.0, %v4623_v33  ;;  %4228 = vmatpush.msra.mxu1 %v4211_v55  ;;  %v4205_v33 = vld [vmem:[#allocation12 + $0x18] sm:$0xff] }
 0xa58   :  { %v4625_v18 = vpop.eup %4624 }
 0xa59   :  { %v4627_v9 = vpop.eup %4626  ;;  %v3850_v29 = vmul.f32 %v4625_v18, %v3848_v8  ;;  %4628 = vrcp.f32 %v3887_v43  ;;  %vm3855_vm9 = vweird.f32 %v4625_v18  ;;  %v3899_v7 = vand.u32 2147483648, %v3887_v43  ;;  %v7841_v8 = vld [vmem:[#allocation41_spill] sm:$0xff] }
 0xa5a   :  { %v3869_v51 = vmul.f32 %v4627_v9, %v3867_v57  ;;  %4630 = vtanh.f32 %v3843_v32  ;;  %vm3874_vm10 = vweird.f32 %v4627_v9  ;;  %vm3856_vm13 = vmor %vm3854_vm11, %vm3855_vm9  ;;  %vm3893_vm2 = vweird.f32 %v3887_v43  ;;  %v4210_v57 = vld [vmem:[#allocation12 + $0x40] sm:$0xff] }
 0xa5b   :  { %v3851_v62 = vsub.f32 1.0, %v3850_v29  ;;  %vm3875_vm14 = vmor %vm3873_vm12, %vm3874_vm10  ;;  %v3897_v1 = vand.u32 2147483647, %v3887_v43  ;;  %v3900_v12 = vor.u32 1.1754944e-38, %v3899_v7  ;;  %4229 = vmatpush.msra.mxu1 %v4210_v57 }
 0xa5c   :  { %v3870_v19 = vsub.f32 1.0, %v3869_v51 }
 0xa5d   :  { %v3852_v48 = vmul.f32 %v4625_v18, %v3851_v62  ;;  %vm3898_vm4 = vcmp.eq.f32.partialorder %v3897_v1, 8.507059e+37  ;;  %4230 = vmatpush.msra.mxu1 %v4209_v35 }
 0xa5e   :  { %v3871_v20 = vmul.f32 %v4627_v9, %v3870_v19 }
 0xa5f   :  { %v4629_v16 = vpop.eup %4628  ;;  %v3853_v54 = vadd.f32 %v4625_v18, %v3852_v48  ;;  %4231 = vmatpush.msra.mxu1 %v4208_v34  ;;  %v7844_v48 = vld [vmem:[#allocation46_spill] sm:$0xff] }
 0xa60   :  { %v3872_v59 = vadd.f32 %v4627_v9, %v3871_v20  ;;  %v3889_v36 = vmul.f32 %v4629_v16, %v3887_v43  ;;  %v4631_v0 = vpop.eup %4630  ;;  %vm3894_vm1 = vweird.f32 %v4629_v16  ;;  %v2363_v17 = vadd.f32 %v7844_v48, %v7834_v26 }
 0xa61   :  { %v3857_v49 = vsel %vm3856_vm13, %v4625_v18, %v3853_v54  ;;  %vm3895_vm3 = vmor %vm3893_vm2, %vm3894_vm1  ;;  %4232 = vmatpush.msra.mxu1 %v4207_v10  ;;  %v7843_v18 = vld [vmem:[#allocation37_spill] sm:$0xff] }
 0xa62   :  { %v3862_v31 = vsel %vm3859_vm15, %v3861_v6, %v3857_v49  ;;  %v3876_v38 = vsel %vm3875_vm14, %v4627_v9, %v3872_v59  ;;  %v3890_v40 = vsub.f32 1.0, %v3889_v36  ;;  %v2281_v32 = vadd.f32 %v7843_v18, %v7832_v42 }
 0xa63   :  { %v3881_v58 = vsel %vm3878_vm0, %v3880_v25, %v3876_v38  ;;  %v3904_v13 = vmul.f32 %v4631_v0, %v3862_v31  ;;  %4233 = vmatpush.msra.mxu1 %v4206_v22  ;;  %v7845_v38 = vld [vmem:[#allocation63_spill] sm:$0xff] }
 0xa64   :  { %v3903_v56 = vmul.f32 %v3881_v58, %v7340_v3  ;;  %v3891_v45 = vmul.f32 %v4629_v16, %v3890_v40  ;;  %v7837_v3 = vld [vmem:[#allocation25_spill] sm:$0xff]  ;;  %v2322_v40 = vadd.f32 %v7845_v38, %v7807_v21 }
 0xa65   :  { %4234 = vmatpush.msra.mxu1 %v4205_v33 }
 0xa66   :  { %v7390_v5 = vadd.f32 %v3904_v13, %v3903_v56  ;;  %v3892_v23 = vadd.f32 %v4629_v16, %v3891_v45 }
 0xa67   :  { %4235 = vmatpush.msra.mxu1 %v4204_v37 }
 0xa68   :  { %4632 = vtanh.f32 %v7390_v5  ;;  %v3896_v53 = vsel %vm3895_vm3, %v4629_v16, %v3892_v23 }
 0xa69   :  { %v3901_v50 = vsel %vm3898_vm4, %v3900_v12, %v3896_v53  ;;  %4236 = vmatpush.msra.mxu1 %v4203_v46 }
 0xa6b   :  { %4237 = vmatpush.msra.mxu1 %v4202_v11 }
 0xa6e   :  { %v4633_v2 = vpop.eup %4632 }
 0xa6f   :  { %v3907_v39 = vmul.f32 %v4633_v2, %v3901_v50 }
 0xa71   :  { %3993 = vmatmul.f32.vlgmr.msrb.gmra.mxu0 %v3907_v39  ;;  %4013 = vmatmul.f32.vlgmr.msrb.gmra.mxu1 %v3907_v39 }
 0xa72   :  { %4033 = vmatmul.f32.vlgmr.msra.gmra.mxu2 %v3907_v39  ;;  %4053 = vmatmul.f32.vlgmr.msra.gmra.mxu3 %v3907_v39 }
 0xa79   :  { %4169 = vmatmul.f32.vlgmr.msra.gmra.mxu0 %v7837_v3 }
 0xa81   :  { %4172 = vmatmul.f32.gmra.mxu0 %v7838_v15 }
 0xa89   :  { %4175 = vmatmul.f32.gmra.mxu0 %v7839_v47 }
 0xa91   :  { %4178 = vmatmul.f32.gmra.mxu0 %v7840_v52 }
 0xa99   :  { %4181 = vmatmul.f32.gmra.mxu0 %v7841_v8 }
 0xaa1   :  { %4184 = vmatmul.f32.gmra.mxu0 %v7367_v24  ;;  %v7842_v24 = vld [vmem:[#allocation40_spill] sm:$0xff] }
 0xaa2   :  { %v2240_v43 = vadd.f32 %v7842_v24, %v7830_v44 }
 0xaa9   :  { %4187 = vmatmul.f32.gmra.mxu0 %v3907_v39 }
 0xaee   :  { %v3994_v9 = vpop.f32.mrf.mxu0  ;;  %v4014_v29 = vpop.f32.mrf.mxu1 }
 0xaef   :  { %v4057_v51 = vadd.f32 %v3994_v9, %v2240_v43  ;;  %v4058_v62 = vadd.f32 %v4014_v29, %v2281_v32 }
 0xaf1   :  { %v4376_v19 = vmul.f32 -1.442695, %v4057_v51  ;;  %v4377_v61 = vmul.f32 -1.442695, %v4058_v62 }
 0xaf3   :  { %4634 = vpow2.f32 %v4376_v19 }
 0xaf4   :  { %4636 = vpow2.f32 %v4377_v61 }
 0xaf5   :  { %v4054_v44 = vpop.f32.mrf.mxu3  ;;  %v4034_v0 = vpop.f32.mrf.mxu2 }
 0xaf6   :  { %v4060_v20 = vadd.f32 %v4054_v44, %v2363_v17  ;;  %v4170_v60 = vpop.f32.mrf.mxu0  ;;  %v4059_v56 = vadd.f32 %v4034_v0, %v2322_v40 }
 0xaf7   :  { %v4171_v42 = vadd.f32 %v7406_v63, %v4170_v60 }
 0xaf8   :  { %v4378_v16 = vmul.f32 -1.442695, %v4060_v20 }
 0xaf9   :  { %v4635_v54 = vpop.eup %4634  ;;  %4638 = vtanh.f32 %v4171_v42 }
 0xafa   :  { %v4637_v6 = vpop.eup %4636  ;;  %v4064_v59 = vadd.f32 1.0, %v4635_v54  ;;  %4640 = vpow2.f32 %v4378_v16 }
 0xafb   :  { %v4083_v36 = vadd.f32 1.0, %v4637_v6 }
 0xafc   :  { %4642 = vrcp.f32 %v4064_v59  ;;  %v4074_v12 = vand.u32 2147483647, %v4064_v59  ;;  %v4076_v2 = vand.u32 2147483648, %v4064_v59  ;;  %vm4070_vm7 = vweird.f32 %v4064_v59 }
 0xafd   :  { %4644 = vrcp.f32 %v4083_v36  ;;  %v4095_v3 = vand.u32 2147483648, %v4083_v36  ;;  %v4093_v30 = vand.u32 2147483647, %v4083_v36  ;;  %vm4089_vm8 = vweird.f32 %v4083_v36 }
 0xafe   :  { %v4173_v25 = vpop.f32.mrf.mxu0  ;;  %v4077_v41 = vor.u32 1.1754944e-38, %v4076_v2  ;;  %vm4075_vm11 = vcmp.eq.f32.partialorder %v4074_v12, 8.507059e+37 }
 0xaff   :  { %v4639_v49 = vpop.eup %4638  ;;  %v4174_v26 = vadd.f32 %v7406_v63, %v4173_v25  ;;  %v4096_v14 = vor.u32 1.1754944e-38, %v4095_v3  ;;  %vm4094_vm12 = vcmp.eq.f32.partialorder %v4093_v30, 8.507059e+37 }
 0xb00   :  { %v4641_v31 = vpop.eup %4640  ;;  %4238 = vmatmul.f32.vlgmr.msra.gmra.mxu1 %v4639_v49 }
 0xb01   :  { %v7414_v58 = vadd.f32 1.0, %v4641_v31  ;;  %4646 = vtanh.f32 %v4174_v26 }
 0xb02   :  { %v4643_v13 = vpop.eup %4642 }
 0xb03   :  { %v4645_v45 = vpop.eup %4644  ;;  %v4066_v23 = vmul.f32 %v4643_v13, %v4064_v59  ;;  %4648 = vrcp.f32 %v7414_v58  ;;  %vm4071_vm5 = vweird.f32 %v4643_v13  ;;  %v4115_v32 = vand.u32 2147483648, %v7414_v58  ;;  %v4393_v59 = vld [vmem:[%s7447_s10] ss:$0 sm:$0xff]  ;;  %s4828_s10 = smov [#allocation13]  }
 0xb04   :  { %v4085_v7 = vmul.f32 %v4645_v45, %v4083_v36  ;;  %4650 = vtanh.f32 %v4059_v56  ;;  %vm4090_vm6 = vweird.f32 %v4645_v45  ;;  %vm4072_vm9 = vmor %vm4070_vm7, %vm4071_vm5  ;;  %vm4109_vm14 = vweird.f32 %v7414_v58  ;;  %s4275_s27 = sshll.u32 %s4828_s10, 4  ;;  %s4276_s27 = int_to_ptr.vmem [resolvable:$true] %s4275_s27 }
 0xb05   :  { %v4067_v1 = vsub.f32 1.0, %v4066_v23  ;;  %vm4091_vm10 = vmor %vm4089_vm8, %vm4090_vm6  ;;  %v4113_v9 = vand.u32 2147483647, %v7414_v58  ;;  %v4116_v51 = vor.u32 1.1754944e-38, %v4115_v32 }
 0xb06   :  { %v4086_v53 = vsub.f32 1.0, %v4085_v7  ;;  %v4176_v50 = vpop.f32.mrf.mxu0 }
 0xb07   :  { %v4647_v39 = vpop.eup %4646  ;;  %v4068_v21 = vmul.f32 %v4643_v13, %v4067_v1  ;;  %v4177_v15 = vadd.f32 %v7406_v63, %v4176_v50  ;;  %vm4114_vm0 = vcmp.eq.f32.partialorder %v4113_v9, 8.507059e+37 }
 0xb08   :  { %v4087_v47 = vmul.f32 %v4645_v45, %v4086_v53  ;;  %4241 = vmatmul.f32.gmra.mxu1 %v4647_v39 }
 0xb09   :  { %v4649_v27 = vpop.eup %4648  ;;  %v4069_v4 = vadd.f32 %v4643_v13, %v4068_v21  ;;  %4652 = vtanh.f32 %v4177_v15 }
 0xb0a   :  { %v4088_v28 = vadd.f32 %v4645_v45, %v4087_v47  ;;  %v4105_v52 = vmul.f32 %v4649_v27, %v7414_v58  ;;  %v4651_v8 = vpop.eup %4650  ;;  %vm4110_vm13 = vweird.f32 %v4649_v27 }
 0xb0b   :  { %v4073_v55 = vsel %vm4072_vm9, %v4643_v13, %v4069_v4  ;;  %vm4111_vm15 = vmor %vm4109_vm14, %vm4110_vm13 }
 0xb0c   :  { %v4078_v57 = vsel %vm4075_vm11, %v4077_v41, %v4073_v55  ;;  %v4092_v35 = vsel %vm4091_vm10, %v4645_v45, %v4088_v28  ;;  %v4106_v34 = vsub.f32 1.0, %v4105_v52 }
 0xb0d   :  { %v4097_v10 = vsel %vm4094_vm12, %v4096_v14, %v4092_v35  ;;  %v4120_v22 = vmul.f32 %v4651_v8, %v4078_v57 }
 0xb0e   :  { %v4119_v33 = vmul.f32 %v4097_v10, %v7390_v5  ;;  %v4179_v37 = vpop.f32.mrf.mxu0  ;;  %v4107_v46 = vmul.f32 %v4649_v27, %v4106_v34 }
 0xb0f   :  { %v4653_v11 = vpop.eup %4652  ;;  %v4180_v24 = vadd.f32 %v7406_v63, %v4179_v37 }
 0xb10   :  { %v4121_v43 = vadd.f32 %v4120_v22, %v4119_v33  ;;  %4244 = vmatmul.f32.gmra.mxu1 %v4653_v11  ;;  %v4108_v18 = vadd.f32 %v4649_v27, %v4107_v46 }
 0xb11   :  { %4654 = vtanh.f32 %v4180_v24 }
 0xb12   :  { %4656 = vtanh.f32 %v4121_v43  ;;  %v4112_v29 = vsel %vm4111_vm15, %v4649_v27, %v4108_v18 }
 0xb13   :  { %v4117_v48 = vsel %vm4114_vm0, %v4116_v51, %v4112_v29 }
 0xb16   :  { %v4182_v5 = vpop.f32.mrf.mxu0 }
 0xb17   :  { %v4655_v62 = vpop.eup %4654  ;;  %v4183_v19 = vadd.f32 %v7406_v63, %v4182_v5 }
 0xb18   :  { %v4657_v61 = vpop.eup %4656  ;;  %4247 = vmatmul.f32.gmra.mxu1 %v4655_v62 }
 0xb19   :  { %4658 = vtanh.f32 %v4183_v19  ;;  %v4123_v17 = vmul.f32 %v4657_v61, %v4117_v48 }
 0xb1b   :  { %4190 = vmatmul.f32.gmra.mxu0 %v4123_v17 }
 0xb1e   :  { %v4185_v44 = vpop.f32.mrf.mxu0 }
 0xb1f   :  { %v4659_v20 = vpop.eup %4658  ;;  %v4186_v60 = vadd.f32 %v7406_v63, %v4185_v44 }
 0xb20   :  { %4250 = vmatmul.f32.gmra.mxu1 %v4659_v20 }
 0xb21   :  { %4660 = vtanh.f32 %v4186_v60 }
 0xb26   :  { %v4188_v42 = vpop.f32.mrf.mxu0 }
 0xb27   :  { %v4661_v16 = vpop.eup %4660  ;;  %v4189_v54 = vadd.f32 %v7406_v63, %v4188_v42 }
 0xb28   :  { %4253 = vmatmul.f32.gmra.mxu1 %v4661_v16 }
 0xb29   :  { %4662 = vtanh.f32 %v4189_v54 }
 0xb2f   :  { %v4663_v6 = vpop.eup %4662 }
 0xb30   :  { %4256 = vmatmul.f32.gmra.mxu1 %v4663_v6 }
 0xb7d   :  { %v4239_v36 = vpop.f32.mrf.mxu1 }
 0xb7e   :  { %v4240_v25 = vadd.f32 %v4393_v59, %v4239_v36 }
 0xb80   :  { %4263 = vst [vmem:[#allocation13] sm:$0xff] %v4240_v25 }
 0xb85   :  { %v4242_v49 = vpop.f32.mrf.mxu1 }
 0xb86   :  { %v4243_v0 = vadd.f32 %v4393_v59, %v4242_v49 }
 0xb88   :  { %4264 = vst [vmem:[#allocation13 + $0x8] sm:$0xff] %v4243_v0 }
 0xb8d   :  { %v4245_v26 = vpop.f32.mrf.mxu1 }
 0xb8e   :  { %v4246_v31 = vadd.f32 %v4393_v59, %v4245_v26 }
 0xb90   :  { %4265 = vst [vmem:[#allocation13 + $0x10] sm:$0xff] %v4246_v31 }
 0xb95   :  { %v4248_v38 = vpop.f32.mrf.mxu1 }
 0xb96   :  { %v4249_v40 = vadd.f32 %v4393_v59, %v4248_v38 }
 0xb98   :  { %4266 = vst [vmem:[#allocation13 + $0x18] sm:$0xff] %v4249_v40  ;;  %v4191_v58 = vpop.f32.mrf.mxu0 }
 0xb99   :  { %v4192_v13 = vadd.f32 %v7406_v63, %v4191_v58 }
 0xb9b   :  { %4664 = vtanh.f32 %v4192_v13 }
 0xb9d   :  { %v4251_v56 = vpop.f32.mrf.mxu1 }
 0xb9e   :  { %v4252_v45 = vadd.f32 %v4393_v59, %v4251_v56 }
 0xba0   :  { %4267 = vst [vmem:[#allocation13 + $0x20] sm:$0xff] %v4252_v45 }
 0xba1   :  { %v4665_v23 = vpop.eup %4664 }
 0xba2   :  { %4259 = vmatmul.f32.gmra.mxu1 %v4665_v23 }
 0xba5   :  { %v4254_v7 = vpop.f32.mrf.mxu1 }
 0xba6   :  { %v4255_v1 = vadd.f32 %v4393_v59, %v4254_v7 }
 0xba8   :  { %4268 = vst [vmem:[#allocation13 + $0x28] sm:$0xff] %v4255_v1 }
 0xbad   :  { %v4257_v53 = vpop.f32.mrf.mxu1 }
 0xbae   :  { %v4258_v12 = vadd.f32 %v4393_v59, %v4257_v53 }
 0xbb0   :  { %4269 = vst [vmem:[#allocation13 + $0x30] sm:$0xff] %v4258_v12 }
 0xc1f   :  { %v4260_v2 = vpop.f32.mrf.mxu1 }
 0xc20   :  { %v4261_v63 = vadd.f32 %v4393_v59, %v4260_v2 }
 0xc22   :  { %4270 = vst [vmem:[#allocation13 + $0x38] sm:$0xff] %v4261_v63 }
 0xc23   :  { %4283 = dma.vmem_to_hbm [thread:$0]  %s4276_s27, 1024, %s4278_s12, [#allocation6], %s4822_s29, %s4822_s29, %s4823_s30  }
 0xc24   :  { %4816 = dma.done.wait [#allocation6], 1024  }
 0xc25   :  { %4817 = vsyncadd [#allocation6], 4294966272 }
 0xc26   :  { %4288 = vsyncpa [#allocation5], 1 }
 0xc27   :  { %4289 = vsyncpa [#allocation8], 1 }
 0xc28   :  { %4290 = vsyncpa [#allocation11], 1 }
 0xc29   :  { %4291 = vsyncpa [#allocation6], 1 }

</bundles_post_ra>
